<compile_context>
chip_gen: v5e
topology: v5e:2x2
jax: 0.10.0
libtpu: 0.0.40
codegen_flags: <defaults>
</compile_context>

<pallas_src>
import functools
import math

import jax
import jax.numpy as jnp
from jax.experimental import pallas as pl
from jax.experimental.pallas import tpu as pltpu


_VMEM_CAP = 48 * 1024 * 1024     # never request more than this scoped VMEM
_VMEM_FLOOR = 24 * 1024 * 1024   # never request less than this


def _vmem_budget(est_bytes):
    """Per-kernel scoped-VMEM request derived from the tile footprint."""
    return int(min(_VMEM_CAP, max(_VMEM_FLOOR, int(est_bytes * 1.5))))


# ------------------------------ small helpers -------------------------------

def _gelu_exact(x):
    # F.gelu default: 0.5 * x * (1 + erf(x / sqrt(2)))
    return 0.5 * x * (1.0 + jax.lax.erf(x * (1.0 / math.sqrt(2.0))))


def _pick_tile(dim, target, align):
    """Largest tile <= target that is a multiple of `align` and divides `dim`,
    or the full dim when dim is small / has no aligned divisor (keeps the
    (8,128) BlockSpec constraint satisfied at any scale)."""
    if dim <= target:
        return dim
    t = (target // align) * align
    while t >= align:
        if dim % t == 0:
            return t
        t -= align
    return dim


def _m_align(m):
    return 16 if m % 16 == 0 else 8   # bf16 sublane packing


# ----------------------------- Pallas kernels ------------------------------

def _linear_kernel(*refs, act, has_bias, has_res, fuse_ln, ln_eps):
    """Tiled o = x @ w (+ b) (+gelu) (+ residual) (+ fused LayerNorm).

    f32 accumulation in a VMEM scratch; when fuse_ln the epilogue writes BOTH
    the f32 residual stream and the bf16 LayerNorm of it (requires tn == N so
    the full feature row is present at finalize)."""
    idx = 0
    x_ref = refs[idx]; idx += 1
    w_ref = refs[idx]; idx += 1
    b_ref = None
    if has_bias:
        b_ref = refs[idx]; idx += 1
    res_ref = None
    if has_res:
        res_ref = refs[idx]; idx += 1
    g_ref = beta_ref = None
    if fuse_ln:
        g_ref = refs[idx]; idx += 1
        beta_ref = refs[idx]; idx += 1
    if fuse_ln:
        resout_ref = refs[idx]; idx += 1
        o_ref = refs[idx]; idx += 1
    else:
        o_ref = refs[idx]; idx += 1
    acc_ref = refs[idx]

    k = pl.program_id(2)

    @pl.when(k == 0)
    def _():
        acc_ref[...] = jnp.zeros(acc_ref.shape, jnp.float32)

    acc_ref[...] += jnp.dot(x_ref[...], w_ref[...],
                            preferred_element_type=jnp.float32)

    @pl.when(k == pl.num_programs(2) - 1)
    def _():
        y = acc_ref[...]
        if has_bias:
            y = y + b_ref[...].astype(jnp.float32)
        if act == "gelu":
            y = _gelu_exact(y)
        if has_res:
            y = y + res_ref[...].astype(jnp.float32)
        if fuse_ln:
            resout_ref[...] = y.astype(resout_ref.dtype)
            mean = jnp.mean(y, axis=-1, keepdims=True)
            yc = y - mean
            var = jnp.mean(yc * yc, axis=-1, keepdims=True)
            inv = jax.lax.rsqrt(var + ln_eps)
            o_ref[...] = (yc * inv * g_ref[...].astype(jnp.float32)
                          + beta_ref[...].astype(jnp.float32)).astype(o_ref.dtype)
        else:
            o_ref[...] = y.astype(o_ref.dtype)


def _layernorm_kernel(x_ref, g_ref, b_ref, o_ref, *, eps):
    x = x_ref[...].astype(jnp.float32)
    mean = jnp.mean(x, axis=-1, keepdims=True)
    xc = x - mean
    var = jnp.mean(xc * xc, axis=-1, keepdims=True)
    inv = jax.lax.rsqrt(var + eps)
    y = xc * inv * g_ref[...].astype(jnp.float32) + b_ref[...].astype(jnp.float32)
    o_ref[...] = y.astype(o_ref.dtype)


def _attn_kernel(q_ref, k_ref, v_ref, o_ref, q_scr, m_ref, l_ref, acc_ref,
                 *, n_head):
    """Flash-style multi-head attention over one (batch, q-tile).

    No sqrt(dh) scaling, no causal mask (matches reference: scale=False,
    attn_mask is never passed).  kv tiles stream along the innermost grid
    axis; q is reshaped to heads ONCE per q tile into a VMEM scratch."""
    _, tq, d_model = q_ref.shape
    tkv = k_ref.shape[1]
    dh = d_model // n_head
    j = pl.program_id(2)

    @pl.when(j == 0)
    def _():
        q_scr[...] = q_ref[0].reshape(tq, n_head, dh)    # head-split relayout, hoisted
        m_ref[...] = jnp.full(m_ref.shape, -jnp.inf, jnp.float32)
        l_ref[...] = jnp.zeros(l_ref.shape, jnp.float32)
        acc_ref[...] = jnp.zeros(acc_ref.shape, jnp.float32)

    k = k_ref[0].reshape(tkv, n_head, dh)
    v = v_ref[0].reshape(tkv, n_head, dh)

    # scores per head: (H, tq, tkv), f32 accumulation on the MXU
    s = jnp.einsum("qhd,khd->hqk", q_scr[...], k,
                   preferred_element_type=jnp.float32)

    m_prev = m_ref[...]
    m_new = jnp.maximum(m_prev, jnp.max(s, axis=-1, keepdims=True))
    alpha = jnp.exp(m_prev - m_new)
    p = jnp.exp(s - m_new)
    l_ref[...] = alpha * l_ref[...] + jnp.sum(p, axis=-1, keepdims=True)
    pv = jnp.einsum("hqk,khd->hqd", p.astype(v.dtype), v,
                    preferred_element_type=jnp.float32)
    acc_ref[...] = alpha * acc_ref[...] + pv
    m_ref[...] = m_new

    @pl.when(j == pl.num_programs(2) - 1)
    def _():
        inv_l = pl.reciprocal(l_ref[...], approx=True)          # EUP vrcp
        out = acc_ref[...] * inv_l                              # (H, tq, dh)
        out = jnp.transpose(out, (1, 0, 2)).reshape(tq, d_model)  # merge heads once
        o_ref[...] = out.reshape(1, tq, d_model).astype(o_ref.dtype)


# ----------------------------- kernel wrappers ------------------------------

def linear_pallas(x2d, w, b=None, *, residual=None, act=None, ln=None,
                  ln_eps=1e-5, out_dtype=jnp.bfloat16, res_dtype=jnp.float32,
                  tm=512, tn=1024, tk=512):
    M, K = x2d.shape
    Kw, N = w.shape
    assert K == Kw
    fuse_ln = ln is not None

    tm = _pick_tile(M, tm, _m_align(M))
    tn = N if fuse_ln else _pick_tile(N, tn, 128)   # fused LN needs the full row
    tk = _pick_tile(K, tk, 128)
    grid = (M // tm, N // tn, K // tk)

    in_specs = [pl.BlockSpec((tm, tk), lambda i, j, k: (i, k)),
                pl.BlockSpec((tk, tn), lambda i, j, k: (k, j))]
    operands = [x2d.astype(jnp.bfloat16), w.astype(jnp.bfloat16)]
    est = 2 * (tm * tk * 2 + tk * tn * 2)            # double-buffered bf16 inputs
    if b is not None:
        in_specs.append(pl.BlockSpec((1, tn), lambda i, j, k: (0, j)))
        operands.append(b.reshape(1, N).astype(jnp.float32))
        est += 2 * tn * 4
    if residual is not None:
        in_specs.append(pl.BlockSpec((tm, tn), lambda i, j, k: (i, j)))
        operands.append(residual)
        est += 2 * tm * tn * residual.dtype.itemsize
    if fuse_ln:
        g, beta = ln
        in_specs.append(pl.BlockSpec((1, tn), lambda i, j, k: (0, j)))
        in_specs.append(pl.BlockSpec((1, tn), lambda i, j, k: (0, j)))
        operands.append(g.reshape(1, N).astype(jnp.float32))
        operands.append(beta.reshape(1, N).astype(jnp.float32))
        est += 4 * tn * 4

    out_block = pl.BlockSpec((tm, tn), lambda i, j, k: (i, j))
    if fuse_ln:
        out_specs = (out_block, out_block)
        out_shape = (jax.ShapeDtypeStruct((M, N), res_dtype),
                     jax.ShapeDtypeStruct((M, N), out_dtype))
        est += 2 * tm * tn * (jnp.dtype(res_dtype).itemsize
                              + jnp.dtype(out_dtype).itemsize)
    else:
        out_specs = out_block
        out_shape = jax.ShapeDtypeStruct((M, N), out_dtype)
        est += 2 * tm * tn * jnp.dtype(out_dtype).itemsize
    est += tm * tn * 4                                # f32 accumulator scratch

    kern = functools.partial(_linear_kernel, act=act, has_bias=b is not None,
                             has_res=residual is not None, fuse_ln=fuse_ln,
                             ln_eps=ln_eps)
    return pl.pallas_call(
        kern,
        grid=grid,
        in_specs=in_specs,
        out_specs=out_specs,
        out_shape=out_shape,
        scratch_shapes=[pltpu.VMEM((tm, tn), jnp.float32)],
        compiler_params=pltpu.CompilerParams(
            dimension_semantics=("parallel", "parallel", "arbitrary"),
            vmem_limit_bytes=_vmem_budget(est)),
    )(*operands)


def layernorm_pallas(x2d, g, b, *, eps=1e-5, out_dtype=jnp.bfloat16, tm=512):
    M, D = x2d.shape
    tm = _pick_tile(M, tm, _m_align(M))
    est = 2 * tm * D * (x2d.dtype.itemsize + jnp.dtype(out_dtype).itemsize) + 4 * D * 4
    return pl.pallas_call(
        functools.partial(_layernorm_kernel, eps=eps),
        grid=(M // tm,),
        in_specs=[pl.BlockSpec((tm, D), lambda i: (i, 0)),
                  pl.BlockSpec((1, D), lambda i: (0, 0)),
                  pl.BlockSpec((1, D), lambda i: (0, 0))],
        out_specs=pl.BlockSpec((tm, D), lambda i: (i, 0)),
        out_shape=jax.ShapeDtypeStruct((M, D), out_dtype),
        compiler_params=pltpu.CompilerParams(
            dimension_semantics=("parallel",),
            vmem_limit_bytes=_vmem_budget(est)),
    )(x2d, g.reshape(1, D), b.reshape(1, D))


def attention_pallas(q, k, v, *, n_head, tq=256, tkv=256):
    # q, k, v: (B, S, d_model) bf16, heads packed along the last dim.
    B, S, D = q.shape
    dh = D // n_head
    s_align = 16 if S % 16 == 0 else 8
    tq = _pick_tile(S, tq, s_align)
    tkv = _pick_tile(S, tkv, s_align)
    grid = (B, S // tq, S // tkv)    # kv axis innermost ("arbitrary")

    q_spec = pl.BlockSpec((1, tq, D), lambda b, i, j: (b, i, 0))
    k_spec = pl.BlockSpec((1, tkv, D), lambda b, i, j: (b, j, 0))
    v_spec = pl.BlockSpec((1, tkv, D), lambda b, i, j: (b, j, 0))
    out_spec = pl.BlockSpec((1, tq, D), lambda b, i, j: (b, i, 0))

    est = (2 * tq * D * q.dtype.itemsize        # q blocks (double-buffered)
           + 4 * tkv * D * k.dtype.itemsize     # k + v blocks (double-buffered)
           + 2 * tq * D * 2                     # output blocks (bf16)
           + tq * D * q.dtype.itemsize          # hoisted q scratch
           + 2 * n_head * tq * 128 * 4          # m, l (lane-padded f32)
           + n_head * tq * dh * 4               # f32 accumulator
           + 2 * n_head * tq * tkv * 4)         # s, p temporaries

    return pl.pallas_call(
        functools.partial(_attn_kernel, n_head=n_head),
        grid=grid,
        in_specs=[q_spec, k_spec, v_spec],
        out_specs=out_spec,
        out_shape=jax.ShapeDtypeStruct((B, S, D), jnp.bfloat16),
        scratch_shapes=[
            pltpu.VMEM((tq, n_head, dh), q.dtype),       # hoisted head-split q
            pltpu.VMEM((n_head, tq, 1), jnp.float32),    # running max
            pltpu.VMEM((n_head, tq, 1), jnp.float32),    # running sum
            pltpu.VMEM((n_head, tq, dh), jnp.float32),   # accumulator
        ],
        compiler_params=pltpu.CompilerParams(
            dimension_semantics=("parallel", "parallel", "arbitrary"),
            vmem_limit_bytes=_vmem_budget(est)),
    )(q, k, v)


# ----------------------------- model definition -----------------------------

def init_params(key, *, nlayers, d_model, d_ff, vocab, n_ctx):
    def normal(k, shape, dtype=jnp.float32):
        return (0.02 * jax.random.normal(k, shape, jnp.float32)).astype(dtype)

    keys = jax.random.split(key, 2 + nlayers)
    wte = normal(keys[0], (vocab, d_model))               # embedding (f32)
    # tied output head: pre-transposed ONCE at init, stored bf16, vocab padded
    # to a lane multiple (128) so the logits store stays lane-dense.
    vpad = (-vocab) % 128
    wte_head = wte.T.astype(jnp.bfloat16)
    if vpad:
        wte_head = jnp.pad(wte_head, ((0, 0), (0, vpad)))
    params = {
        "wte": wte,
        "wte_head": wte_head,                             # (d_model, vocab_padded)
        "wpe": normal(keys[1], (n_ctx, d_model)),
        "lnf_g": jnp.ones((d_model,), jnp.float32),
        "lnf_b": jnp.zeros((d_model,), jnp.float32),
        "layers": [],
    }
    for i in range(nlayers):
        lk = jax.random.split(keys[2 + i], 6)
        params["layers"].append({
            "ln1_g": jnp.ones((d_model,), jnp.float32),
            "ln1_b": jnp.zeros((d_model,), jnp.float32),
            "ln2_g": jnp.ones((d_model,), jnp.float32),
            "ln2_b": jnp.zeros((d_model,), jnp.float32),
            # c_attn weight stored pre-split into q / k / v columns (identical
            # math to the fused Conv1D; lets attention stream lane-dense D-wide
            # blocks instead of slicing a 3D slab in-kernel).
            "wq": normal(lk[0], (d_model, d_model), jnp.bfloat16),
            "wk": normal(lk[1], (d_model, d_model), jnp.bfloat16),
            "wv": normal(lk[2], (d_model, d_model), jnp.bfloat16),
            "bq": jnp.zeros((d_model,), jnp.float32),
            "bk": jnp.zeros((d_model,), jnp.float32),
            "bv": jnp.zeros((d_model,), jnp.float32),
            "proj_w": normal(lk[3], (d_model, d_model), jnp.bfloat16),
            "proj_b": jnp.zeros((d_model,), jnp.float32),
            "fc_w": normal(lk[4], (d_model, d_ff), jnp.bfloat16),
            "fc_b": jnp.zeros((d_ff,), jnp.float32),
            "fcproj_w": normal(lk[5], (d_ff, d_model), jnp.bfloat16),
            "fcproj_b": jnp.zeros((d_model,), jnp.float32),
        })
    return params


def gpt2_forward(params, src, *, n_head):
    B, S = src.shape
    vocab, d_model = params["wte"].shape
    M = B * S
    layers = params["layers"]
    nlayers = len(layers)

    # embeddings (gather glue in plain JAX); residual stream kept in f32
    pos = jnp.arange(S)
    x = params["wte"][src] + params["wpe"][pos][None, :, :]        # (B, S, D) f32
    x2 = x.reshape(M, d_model).astype(jnp.float32)

    # only standalone LayerNorm: layer 0's ln_1 (all later LNs are fused into
    # the epilogue of the preceding residual-producing linear).
    h = layernorm_pallas(x2, layers[0]["ln1_g"], layers[0]["ln1_b"])

    for li, lp in enumerate(layers):
        # --- attention sub-block: x = x + proj(attn(q,k,v)),  h2 = ln_2(x) ---
        q = linear_pallas(h, lp["wq"], lp["bq"])
        k = linear_pallas(h, lp["wk"], lp["bk"])
        v = linear_pallas(h, lp["wv"], lp["bv"])
        o = attention_pallas(q.reshape(B, S, d_model),
                             k.reshape(B, S, d_model),
                             v.reshape(B, S, d_model), n_head=n_head)
        x2, h2 = linear_pallas(o.reshape(M, d_model), lp["proj_w"], lp["proj_b"],
                               residual=x2, ln=(lp["ln2_g"], lp["ln2_b"]))

        # --- feedforward sub-block: x = x + fcproj(gelu(fc(h2))),  h = nextLN(x)
        f = linear_pallas(h2, lp["fc_w"], lp["fc_b"], act="gelu")
        if li + 1 < nlayers:
            nxt_g, nxt_b = layers[li + 1]["ln1_g"], layers[li + 1]["ln1_b"]
        else:
            nxt_g, nxt_b = params["lnf_g"], params["lnf_b"]   # final ln_f
        x2, h = linear_pallas(f, lp["fcproj_w"], lp["fcproj_b"],
                              residual=x2, ln=(nxt_g, nxt_b))

    # tied output head on the (fused) ln_f output: logits = h @ wte^T (no bias)
    logits = linear_pallas(h, params["wte_head"], out_dtype=jnp.float32)
    if logits.shape[1] != vocab:
        logits = logits[:, :vocab]          # drop vocab padding
    return logits.reshape(B, S, vocab)


# ---------------------------------- main ------------------------------------

if __name__ == "__main__":
    # Small shapes consistent with the module (scaled-down GPT2).
    B, S = 2, 8
    d_model, n_head = 64, 4
    d_ff = 4 * d_model
    vocab, n_ctx = 128, 16
    nlayers = 2

    key = jax.random.PRNGKey(0)
    pkey, dkey = jax.random.split(key)
    params = init_params(pkey, nlayers=nlayers, d_model=d_model,
                         d_ff=d_ff, vocab=vocab, n_ctx=n_ctx)
    src = jax.random.randint(dkey, (B, S), 0, vocab, dtype=jnp.int32)

    fwd = jax.jit(functools.partial(gpt2_forward, n_head=n_head))
    logits = fwd(params, src)
    logits = jax.block_until_ready(logits)
    assert logits.shape == (B, S, vocab) and logits.dtype == jnp.float32
    assert bool(jnp.all(jnp.isfinite(logits)))
    print("KERNEL_OK")
</pallas_src>

<mosaic_0001>
module attributes {stable_mosaic.version = 11 : i64} {
  func.func @_linear_kernel(%arg0: i32, %arg1: i32, %arg2: i32, %arg3: memref<16x64xbf16, #tpu.memory_space<vmem>>, %arg4: memref<64x64xbf16, #tpu.memory_space<vmem>>, %arg5: memref<1x64xf32, #tpu.memory_space<vmem>>, %arg6: memref<16x64xbf16, #tpu.memory_space<vmem>>, %arg7: memref<16x64xf32, #tpu.memory_space<vmem>>) attributes {dimension_semantics = [#tpu.dimension_semantics<parallel>, #tpu.dimension_semantics<parallel>, #tpu.dimension_semantics<arbitrary>], iteration_bounds = array<i64: 1, 1, 1>, scalar_prefetch = 0 : i64, scratch_operands = 1 : i64, tpu.core_type = #tpu.core_type<tc>, window_params = [{transform_indices = @transform_0, window_bounds = array<i64: 16, 64>}, {transform_indices = @transform_1, window_bounds = array<i64: 64, 64>}, {transform_indices = @transform_2, window_bounds = array<i64: 1, 64>}, {transform_indices = @transform_3, window_bounds = array<i64: 16, 64>}]} {
    %c0_i32 = arith.constant 0 : i32
    %0 = arith.cmpi eq, %arg2, %c0_i32 : i32
    %1 = arith.extui %0 : i1 to i32
    %c0_i32_0 = arith.constant 0 : i32
    %2 = arith.cmpi ne, %1, %c0_i32_0 : i32
    scf.if %2 {
      %cst_10 = arith.constant 0.000000e+00 : f32
      %12 = vector.broadcast %cst_10 : f32 to vector<16x64xf32>
      %c0_11 = arith.constant 0 : index
      %c0_12 = arith.constant 0 : index
      %13 = vector.load %arg7[%c0_11, %c0_12] : memref<16x64xf32, #tpu.memory_space<vmem>>, vector<16x64xf32>
      tpu.vector_store %arg7[%c0_11, %c0_12], %12 {strides = array<i32>} : memref<16x64xf32, #tpu.memory_space<vmem>>, vector<16x64xf32>,
    } else {
    }
    %c0 = arith.constant 0 : index
    %c0_1 = arith.constant 0 : index
    %3 = vector.load %arg7[%c0, %c0_1] : memref<16x64xf32, #tpu.memory_space<vmem>>, vector<16x64xf32>
    %c0_2 = arith.constant 0 : index
    %c0_3 = arith.constant 0 : index
    %4 = vector.load %arg3[%c0_2, %c0_3] : memref<16x64xbf16, #tpu.memory_space<vmem>>, vector<16x64xbf16>
    %c0_4 = arith.constant 0 : index
    %c0_5 = arith.constant 0 : index
    %5 = vector.load %arg4[%c0_4, %c0_5] : memref<64x64xbf16, #tpu.memory_space<vmem>>, vector<64x64xbf16>
    %cst = arith.constant dense<0.000000e+00> : vector<16x64xf32>
    %6 = tpu.matmul %4, %5, %cst {dimension_numbers = #tpu.dot_dimension_numbers<[1], [0], [0], [1], [0, 0, 1, 1], [], []>} : vector<16x64xbf16>, vector<64x64xbf16>, vector<16x64xf32> -> vector<16x64xf32>
    %7 = arith.addf %3, %6 : vector<16x64xf32>
    %c0_6 = arith.constant 0 : index
    %c0_7 = arith.constant 0 : index
    %8 = vector.load %arg7[%c0_6, %c0_7] : memref<16x64xf32, #tpu.memory_space<vmem>>, vector<16x64xf32>
    tpu.vector_store %arg7[%c0_6, %c0_7], %7 {strides = array<i32>} : memref<16x64xf32, #tpu.memory_space<vmem>>, vector<16x64xf32>,
    %c0_i32_8 = arith.constant 0 : i32
    %9 = arith.cmpi eq, %arg2, %c0_i32_8 : i32
    %10 = arith.extui %9 : i1 to i32
    %c0_i32_9 = arith.constant 0 : i32
    %11 = arith.cmpi ne, %10, %c0_i32_9 : i32
    scf.if %11 {
      %c0_10 = arith.constant 0 : index
      %c0_11 = arith.constant 0 : index
      %12 = vector.load %arg7[%c0_10, %c0_11] : memref<16x64xf32, #tpu.memory_space<vmem>>, vector<16x64xf32>
      %c0_12 = arith.constant 0 : index
      %c0_13 = arith.constant 0 : index
      %13 = vector.load %arg5[%c0_12, %c0_13] : memref<1x64xf32, #tpu.memory_space<vmem>>, vector<1x64xf32>
      %14 = vector.broadcast %13 : vector<1x64xf32> to vector<16x64xf32>
      %15 = arith.addf %12, %14 : vector<16x64xf32>
      %16 = arith.truncf %15 : vector<16x64xf32> to vector<16x64xbf16>
      %c0_14 = arith.constant 0 : index
      %c0_15 = arith.constant 0 : index
      %17 = vector.load %arg6[%c0_14, %c0_15] : memref<16x64xbf16, #tpu.memory_space<vmem>>, vector<16x64xbf16>
      tpu.vector_store %arg6[%c0_14, %c0_15], %16 {strides = array<i32>} : memref<16x64xbf16, #tpu.memory_space<vmem>>, vector<16x64xbf16>,
    } else {
    }
    return
  }
  func.func @transform_0(%arg0: i32, %arg1: i32, %arg2: i32) -> (i32, i32) {
    %c0_i32 = arith.constant 0 : i32
    return %arg0, %arg2 : i32, i32
  }
  func.func @transform_1(%arg0: i32, %arg1: i32, %arg2: i32) -> (i32, i32) {
    %c0_i32 = arith.constant 0 : i32
    return %arg2, %arg1 : i32, i32
  }
  func.func @transform_2(%arg0: i32, %arg1: i32, %arg2: i32) -> (i32, i32) {
    %c0_i32 = arith.constant 0 : i32
    %c0_i32_0 = arith.constant 0 : i32
    return %c0_i32, %arg1 : i32, i32
  }
  func.func @transform_3(%arg0: i32, %arg1: i32, %arg2: i32) -> (i32, i32) {
    %c0_i32 = arith.constant 0 : i32
    return %arg0, %arg1 : i32, i32
  }
}

module attributes {stable_mosaic.version = 11 : i64} {
  func.func @_attn_kernel(%arg0: i32, %arg1: i32, %arg2: i32, %arg3: memref<1x8x64xbf16, #tpu.memory_space<vmem>>, %arg4: memref<1x8x64xbf16, #tpu.memory_space<vmem>>, %arg5: memref<1x8x64xbf16, #tpu.memory_space<vmem>>, %arg6: memref<1x8x64xbf16, #tpu.memory_space<vmem>>, %arg7: memref<8x4x16xbf16, #tpu.memory_space<vmem>>, %arg8: memref<4x8x1xf32, #tpu.memory_space<vmem>>, %arg9: memref<4x8x1xf32, #tpu.memory_space<vmem>>, %arg10: memref<4x8x16xf32, #tpu.memory_space<vmem>>) attributes {dimension_semantics = [#tpu.dimension_semantics<parallel>, #tpu.dimension_semantics<parallel>, #tpu.dimension_semantics<arbitrary>], iteration_bounds = array<i64: 2, 1, 1>, scalar_prefetch = 0 : i64, scratch_operands = 4 : i64, tpu.core_type = #tpu.core_type<tc>, window_params = [{transform_indices = @transform_0, window_bounds = array<i64: 1, 8, 64>}, {transform_indices = @transform_1, window_bounds = array<i64: 1, 8, 64>}, {transform_indices = @transform_2, window_bounds = array<i64: 1, 8, 64>}, {transform_indices = @transform_3, window_bounds = array<i64: 1, 8, 64>}]} {
    %c0_i32 = arith.constant 0 : i32
    %0 = arith.cmpi eq, %arg2, %c0_i32 : i32
    %1 = arith.extui %0 : i1 to i32
    %c0_i32_0 = arith.constant 0 : i32
    %2 = arith.cmpi ne, %1, %c0_i32_0 : i32
    scf.if %2 {
      %c0_32 = arith.constant 0 : index
      %c0_33 = arith.constant 0 : index
      %c0_34 = arith.constant 0 : index
      %37 = vector.load %arg3[%c0_32, %c0_33, %c0_34] : memref<1x8x64xbf16, #tpu.memory_space<vmem>>, vector<1x8x64xbf16>
      %38 = vector.shape_cast %37 : vector<1x8x64xbf16> to vector<8x64xbf16>
      %39 = vector.shape_cast %38 : vector<8x64xbf16> to vector<8x4x16xbf16>
      %c0_35 = arith.constant 0 : index
      %c0_36 = arith.constant 0 : index
      %c0_37 = arith.constant 0 : index
      %40 = vector.load %arg7[%c0_35, %c0_36, %c0_37] : memref<8x4x16xbf16, #tpu.memory_space<vmem>>, vector<8x4x16xbf16>
      tpu.vector_store %arg7[%c0_35, %c0_36, %c0_37], %39 {strides = array<i32>} : memref<8x4x16xbf16, #tpu.memory_space<vmem>>, vector<8x4x16xbf16>,
      %cst_38 = arith.constant 0xFF800000 : f32
      %41 = vector.broadcast %cst_38 : f32 to vector<4x8x1xf32>
      %c0_39 = arith.constant 0 : index
      %c0_40 = arith.constant 0 : index
      %c0_41 = arith.constant 0 : index
      %42 = vector.load %arg8[%c0_39, %c0_40, %c0_41] : memref<4x8x1xf32, #tpu.memory_space<vmem>>, vector<4x8x1xf32>
      tpu.vector_store %arg8[%c0_39, %c0_40, %c0_41], %41 {strides = array<i32>} : memref<4x8x1xf32, #tpu.memory_space<vmem>>, vector<4x8x1xf32>,
      %cst_42 = arith.constant 0.000000e+00 : f32
      %43 = vector.broadcast %cst_42 : f32 to vector<4x8x1xf32>
      %c0_43 = arith.constant 0 : index
      %c0_44 = arith.constant 0 : index
      %c0_45 = arith.constant 0 : index
      %44 = vector.load %arg9[%c0_43, %c0_44, %c0_45] : memref<4x8x1xf32, #tpu.memory_space<vmem>>, vector<4x8x1xf32>
      tpu.vector_store %arg9[%c0_43, %c0_44, %c0_45], %43 {strides = array<i32>} : memref<4x8x1xf32, #tpu.memory_space<vmem>>, vector<4x8x1xf32>,
      %cst_46 = arith.constant 0.000000e+00 : f32
      %45 = vector.broadcast %cst_46 : f32 to vector<4x8x16xf32>
      %c0_47 = arith.constant 0 : index
      %c0_48 = arith.constant 0 : index
      %c0_49 = arith.constant 0 : index
      %46 = vector.load %arg10[%c0_47, %c0_48, %c0_49] : memref<4x8x16xf32, #tpu.memory_space<vmem>>, vector<4x8x16xf32>
      tpu.vector_store %arg10[%c0_47, %c0_48, %c0_49], %45 {strides = array<i32>} : memref<4x8x16xf32, #tpu.memory_space<vmem>>, vector<4x8x16xf32>,
    } else {
    }
    %c0 = arith.constant 0 : index
    %c0_1 = arith.constant 0 : index
    %c0_2 = arith.constant 0 : index
    %3 = vector.load %arg4[%c0, %c0_1, %c0_2] : memref<1x8x64xbf16, #tpu.memory_space<vmem>>, vector<1x8x64xbf16>
    %4 = vector.shape_cast %3 : vector<1x8x64xbf16> to vector<8x64xbf16>
    %5 = vector.shape_cast %4 : vector<8x64xbf16> to vector<8x4x16xbf16>
    %c0_3 = arith.constant 0 : index
    %c0_4 = arith.constant 0 : index
    %c0_5 = arith.constant 0 : index
    %6 = vector.load %arg5[%c0_3, %c0_4, %c0_5] : memref<1x8x64xbf16, #tpu.memory_space<vmem>>, vector<1x8x64xbf16>
    %7 = vector.shape_cast %6 : vector<1x8x64xbf16> to vector<8x64xbf16>
    %8 = vector.shape_cast %7 : vector<8x64xbf16> to vector<8x4x16xbf16>
    %c0_6 = arith.constant 0 : index
    %c0_7 = arith.constant 0 : index
    %c0_8 = arith.constant 0 : index
    %9 = vector.load %arg7[%c0_6, %c0_7, %c0_8] : memref<8x4x16xbf16, #tpu.memory_space<vmem>>, vector<8x4x16xbf16>
    "tpu.trace_start"() <{level = 10 : i32, message = "qhd,khd->hqk"}> : () -> ()
    %cst = arith.constant dense<0.000000e+00> : vector<4x8x8xf32>
    %10 = tpu.matmul %9, %5, %cst {dimension_numbers = #tpu.dot_dimension_numbers<[2], [2], [0], [0], [0, 1, 0, 0, 1, 0], [1], [1]>} : vector<8x4x16xbf16>, vector<8x4x16xbf16>, vector<4x8x8xf32> -> vector<4x8x8xf32>
    "tpu.trace_stop"() : () -> ()
    %c0_9 = arith.constant 0 : index
    %c0_10 = arith.constant 0 : index
    %c0_11 = arith.constant 0 : index
    %11 = vector.load %arg8[%c0_9, %c0_10, %c0_11] : memref<4x8x1xf32, #tpu.memory_space<vmem>>, vector<4x8x1xf32>
    %cst_12 = arith.constant dense<0xFF800000> : vector<4x8xf32>
    %12 = vector.multi_reduction <maximumf>, %10, %cst_12 [2] : vector<4x8x8xf32> to vector<4x8xf32>
    %13 = vector.shape_cast %12 : vector<4x8xf32> to vector<4x8x1xf32>
    %14 = arith.maximumf %11, %13 : vector<4x8x1xf32>
    %15 = arith.subf %11, %14 : vector<4x8x1xf32>
    %16 = math.exp %15 : vector<4x8x1xf32>
    %17 = vector.broadcast %14 : vector<4x8x1xf32> to vector<4x8x8xf32>
    %18 = arith.subf %10, %17 : vector<4x8x8xf32>
    %19 = math.exp %18 : vector<4x8x8xf32>
    %c0_13 = arith.constant 0 : index
    %c0_14 = arith.constant 0 : index
    %c0_15 = arith.constant 0 : index
    %20 = vector.load %arg9[%c0_13, %c0_14, %c0_15] : memref<4x8x1xf32, #tpu.memory_space<vmem>>, vector<4x8x1xf32>
    %21 = arith.mulf %16, %20 : vector<4x8x1xf32>
    %cst_16 = arith.constant dense<0.000000e+00> : vector<4x8xf32>
    %22 = vector.multi_reduction <add>, %19, %cst_16 [2] : vector<4x8x8xf32> to vector<4x8xf32>
    %23 = vector.shape_cast %22 : vector<4x8xf32> to vector<4x8x1xf32>
    %24 = arith.addf %21, %23 : vector<4x8x1xf32>
    %c0_17 = arith.constant 0 : index
    %c0_18 = arith.constant 0 : index
    %c0_19 = arith.constant 0 : index
    %25 = vector.load %arg9[%c0_17, %c0_18, %c0_19] : memref<4x8x1xf32, #tpu.memory_space<vmem>>, vector<4x8x1xf32>
    tpu.vector_store %arg9[%c0_17, %c0_18, %c0_19], %24 {strides = array<i32>} : memref<4x8x1xf32, #tpu.memory_space<vmem>>, vector<4x8x1xf32>,
    %26 = arith.truncf %19 : vector<4x8x8xf32> to vector<4x8x8xbf16>
    "tpu.trace_start"() <{level = 10 : i32, message = "hqk,khd->hqd"}> : () -> ()
    %cst_20 = arith.constant dense<0.000000e+00> : vector<4x8x16xf32>
    %27 = tpu.matmul %26, %8, %cst_20 {dimension_numbers = #tpu.dot_dimension_numbers<[2], [0], [1], [2], [0, 0, 0, 1, 1, 2], [0], [1]>} : vector<4x8x8xbf16>, vector<8x4x16xbf16>, vector<4x8x16xf32> -> vector<4x8x16xf32>
    "tpu.trace_stop"() : () -> ()
    %c0_21 = arith.constant 0 : index
    %c0_22 = arith.constant 0 : index
    %c0_23 = arith.constant 0 : index
    %28 = vector.load %arg10[%c0_21, %c0_22, %c0_23] : memref<4x8x16xf32, #tpu.memory_space<vmem>>, vector<4x8x16xf32>
    %29 = vector.broadcast %16 : vector<4x8x1xf32> to vector<4x8x16xf32>
    %30 = arith.mulf %29, %28 : vector<4x8x16xf32>
    %31 = arith.addf %30, %27 : vector<4x8x16xf32>
    %c0_24 = arith.constant 0 : index
    %c0_25 = arith.constant 0 : index
    %c0_26 = arith.constant 0 : index
    %32 = vector.load %arg10[%c0_24, %c0_25, %c0_26] : memref<4x8x16xf32, #tpu.memory_space<vmem>>, vector<4x8x16xf32>
    tpu.vector_store %arg10[%c0_24, %c0_25, %c0_26], %31 {strides = array<i32>} : memref<4x8x16xf32, #tpu.memory_space<vmem>>, vector<4x8x16xf32>,
    %c0_27 = arith.constant 0 : index
    %c0_28 = arith.constant 0 : index
    %c0_29 = arith.constant 0 : index
    %33 = vector.load %arg8[%c0_27, %c0_28, %c0_29] : memref<4x8x1xf32, #tpu.memory_space<vmem>>, vector<4x8x1xf32>
    tpu.vector_store %arg8[%c0_27, %c0_28, %c0_29], %14 {strides = array<i32>} : memref<4x8x1xf32, #tpu.memory_space<vmem>>, vector<4x8x1xf32>,
    %c0_i32_30 = arith.constant 0 : i32
    %34 = arith.cmpi eq, %arg2, %c0_i32_30 : i32
    %35 = arith.extui %34 : i1 to i32
    %c0_i32_31 = arith.constant 0 : i32
    %36 = arith.cmpi ne, %35, %c0_i32_31 : i32
    scf.if %36 {
      %c0_32 = arith.constant 0 : index
      %c0_33 = arith.constant 0 : index
      %c0_34 = arith.constant 0 : index
      %37 = vector.load %arg9[%c0_32, %c0_33, %c0_34] : memref<4x8x1xf32, #tpu.memory_space<vmem>>, vector<4x8x1xf32>
      %38 = tpu.reciprocal %37 {approx = true} : vector<4x8x1xf32> -> vector<4x8x1xf32>
      %c0_35 = arith.constant 0 : index
      %c0_36 = arith.constant 0 : index
      %c0_37 = arith.constant 0 : index
      %39 = vector.load %arg10[%c0_35, %c0_36, %c0_37] : memref<4x8x16xf32, #tpu.memory_space<vmem>>, vector<4x8x16xf32>
      %40 = vector.broadcast %38 : vector<4x8x1xf32> to vector<4x8x16xf32>
      %41 = arith.mulf %39, %40 : vector<4x8x16xf32>
      %42 = tpu.transpose %41, [1, 0, 2] : vector<4x8x16xf32> -> vector<8x4x16xf32>
      %43 = vector.shape_cast %42 : vector<8x4x16xf32> to vector<8x64xf32>
      %44 = vector.shape_cast %43 : vector<8x64xf32> to vector<1x8x64xf32>
      %45 = arith.truncf %44 : vector<1x8x64xf32> to vector<1x8x64xbf16>
      %c0_38 = arith.constant 0 : index
      %c0_39 = arith.constant 0 : index
      %c0_40 = arith.constant 0 : index
      %46 = vector.load %arg6[%c0_38, %c0_39, %c0_40] : memref<1x8x64xbf16, #tpu.memory_space<vmem>>, vector<1x8x64xbf16>
      tpu.vector_store %arg6[%c0_38, %c0_39, %c0_40], %45 {strides = array<i32>} : memref<1x8x64xbf16, #tpu.memory_space<vmem>>, vector<1x8x64xbf16>,
    } else {
    }
    return
  }
  func.func @transform_0(%arg0: i32, %arg1: i32, %arg2: i32) -> (i32, i32, i32) {
    %c0_i32 = arith.constant 0 : i32
    %c0_i32_0 = arith.constant 0 : i32
    return %arg0, %arg1, %c0_i32 : i32, i32, i32
  }
  func.func @transform_1(%arg0: i32, %arg1: i32, %arg2: i32) -> (i32, i32, i32) {
    %c0_i32 = arith.constant 0 : i32
    %c0_i32_0 = arith.constant 0 : i32
    return %arg0, %arg2, %c0_i32 : i32, i32, i32
  }
  func.func @transform_2(%arg0: i32, %arg1: i32, %arg2: i32) -> (i32, i32, i32) {
    %c0_i32 = arith.constant 0 : i32
    %c0_i32_0 = arith.constant 0 : i32
    return %arg0, %arg2, %c0_i32 : i32, i32, i32
  }
  func.func @transform_3(%arg0: i32, %arg1: i32, %arg2: i32) -> (i32, i32, i32) {
    %c0_i32 = arith.constant 0 : i32
    %c0_i32_0 = arith.constant 0 : i32
    return %arg0, %arg1, %c0_i32 : i32, i32, i32
  }
}

module attributes {stable_mosaic.version = 11 : i64} {
  func.func @_layernorm_kernel(%arg0: i32, %arg1: memref<16x64xf32, #tpu.memory_space<vmem>>, %arg2: memref<1x64xf32, #tpu.memory_space<vmem>>, %arg3: memref<1x64xf32, #tpu.memory_space<vmem>>, %arg4: memref<16x64xbf16, #tpu.memory_space<vmem>>) attributes {dimension_semantics = [#tpu.dimension_semantics<parallel>], iteration_bounds = array<i64: 1>, scalar_prefetch = 0 : i64, scratch_operands = 0 : i64, tpu.core_type = #tpu.core_type<tc>, window_params = [{transform_indices = @transform_0, window_bounds = array<i64: 16, 64>}, {pipeline_mode = #tpu.pipeline_mode<synchronous>, transform_indices = @transform_1, window_bounds = array<i64: 1, 64>}, {pipeline_mode = #tpu.pipeline_mode<synchronous>, transform_indices = @transform_2, window_bounds = array<i64: 1, 64>}, {transform_indices = @transform_3, window_bounds = array<i64: 16, 64>}]} {
    %c0 = arith.constant 0 : index
    %c0_0 = arith.constant 0 : index
    %0 = vector.load %arg1[%c0, %c0_0] : memref<16x64xf32, #tpu.memory_space<vmem>>, vector<16x64xf32>
    %cst = arith.constant dense<0.000000e+00> : vector<16xf32>
    %1 = vector.multi_reduction <add>, %0, %cst [1] : vector<16x64xf32> to vector<16xf32>
    %2 = vector.shape_cast %1 : vector<16xf32> to vector<16x1xf32>
    %cst_1 = arith.constant 6.400000e+01 : f32
    %3 = vector.broadcast %cst_1 : f32 to vector<16x1xf32>
    %4 = arith.divf %2, %3 : vector<16x1xf32>
    %5 = vector.broadcast %4 : vector<16x1xf32> to vector<16x64xf32>
    %6 = arith.subf %0, %5 : vector<16x64xf32>
    %7 = arith.mulf %6, %6 : vector<16x64xf32>
    %cst_2 = arith.constant dense<0.000000e+00> : vector<16xf32>
    %8 = vector.multi_reduction <add>, %7, %cst_2 [1] : vector<16x64xf32> to vector<16xf32>
    %9 = vector.shape_cast %8 : vector<16xf32> to vector<16x1xf32>
    %cst_3 = arith.constant 6.400000e+01 : f32
    %10 = vector.broadcast %cst_3 : f32 to vector<16x1xf32>
    %11 = arith.divf %9, %10 : vector<16x1xf32>
    %cst_4 = arith.constant 9.99999974E-6 : f32
    %12 = vector.broadcast %cst_4 : f32 to vector<16x1xf32>
    %13 = arith.addf %11, %12 : vector<16x1xf32>
    %14 = math.rsqrt %13 : vector<16x1xf32>
    %15 = vector.broadcast %14 : vector<16x1xf32> to vector<16x64xf32>
    %16 = arith.mulf %6, %15 : vector<16x64xf32>
    %c0_5 = arith.constant 0 : index
    %c0_6 = arith.constant 0 : index
    %17 = vector.load %arg2[%c0_5, %c0_6] : memref<1x64xf32, #tpu.memory_space<vmem>>, vector<1x64xf32>
    %18 = vector.broadcast %17 : vector<1x64xf32> to vector<16x64xf32>
    %19 = arith.mulf %16, %18 : vector<16x64xf32>
    %c0_7 = arith.constant 0 : index
    %c0_8 = arith.constant 0 : index
    %20 = vector.load %arg3[%c0_7, %c0_8] : memref<1x64xf32, #tpu.memory_space<vmem>>, vector<1x64xf32>
    %21 = vector.broadcast %20 : vector<1x64xf32> to vector<16x64xf32>
    %22 = arith.addf %19, %21 : vector<16x64xf32>
    %23 = arith.truncf %22 : vector<16x64xf32> to vector<16x64xbf16>
    %c0_9 = arith.constant 0 : index
    %c0_10 = arith.constant 0 : index
    %24 = vector.load %arg4[%c0_9, %c0_10] : memref<16x64xbf16, #tpu.memory_space<vmem>>, vector<16x64xbf16>
    tpu.vector_store %arg4[%c0_9, %c0_10], %23 {strides = array<i32>} : memref<16x64xbf16, #tpu.memory_space<vmem>>, vector<16x64xbf16>,
    return
  }
  func.func @transform_0(%arg0: i32) -> (i32, i32) {
    %c0_i32 = arith.constant 0 : i32
    %c0_i32_0 = arith.constant 0 : i32
    return %arg0, %c0_i32 : i32, i32
  }
  func.func @transform_1(%arg0: i32) -> (i32, i32) {
    %c0_i32 = arith.constant 0 : i32
    %c0_i32_0 = arith.constant 0 : i32
    %c0_i32_1 = arith.constant 0 : i32
    return %c0_i32, %c0_i32_0 : i32, i32
  }
  func.func @transform_2(%arg0: i32) -> (i32, i32) {
    %c0_i32 = arith.constant 0 : i32
    %c0_i32_0 = arith.constant 0 : i32
    %c0_i32_1 = arith.constant 0 : i32
    return %c0_i32, %c0_i32_0 : i32, i32
  }
  func.func @transform_3(%arg0: i32) -> (i32, i32) {
    %c0_i32 = arith.constant 0 : i32
    %c0_i32_0 = arith.constant 0 : i32
    return %arg0, %c0_i32 : i32, i32
  }
}

module attributes {stable_mosaic.version = 11 : i64} {
  func.func @_linear_kernel(%arg0: i32, %arg1: i32, %arg2: i32, %arg3: memref<16x64xbf16, #tpu.memory_space<vmem>>, %arg4: memref<64x64xbf16, #tpu.memory_space<vmem>>, %arg5: memref<1x64xf32, #tpu.memory_space<vmem>>, %arg6: memref<16x64xf32, #tpu.memory_space<vmem>>, %arg7: memref<1x64xf32, #tpu.memory_space<vmem>>, %arg8: memref<1x64xf32, #tpu.memory_space<vmem>>, %arg9: memref<16x64xf32, #tpu.memory_space<vmem>>, %arg10: memref<16x64xbf16, #tpu.memory_space<vmem>>, %arg11: memref<16x64xf32, #tpu.memory_space<vmem>>) attributes {dimension_semantics = [#tpu.dimension_semantics<parallel>, #tpu.dimension_semantics<parallel>, #tpu.dimension_semantics<arbitrary>], iteration_bounds = array<i64: 1, 1, 1>, scalar_prefetch = 0 : i64, scratch_operands = 1 : i64, tpu.core_type = #tpu.core_type<tc>, window_params = [{transform_indices = @transform_0, window_bounds = array<i64: 16, 64>}, {transform_indices = @transform_1, window_bounds = array<i64: 64, 64>}, {transform_indices = @transform_2, window_bounds = array<i64: 1, 64>}, {transform_indices = @transform_3, window_bounds = array<i64: 16, 64>}, {transform_indices = @transform_4, window_bounds = array<i64: 1, 64>}, {transform_indices = @transform_5, window_bounds = array<i64: 1, 64>}, {transform_indices = @transform_6, window_bounds = array<i64: 16, 64>}, {transform_indices = @transform_7, window_bounds = array<i64: 16, 64>}]} {
    %c0_i32 = arith.constant 0 : i32
    %0 = arith.cmpi eq, %arg2, %c0_i32 : i32
    %1 = arith.extui %0 : i1 to i32
    %c0_i32_0 = arith.constant 0 : i32
    %2 = arith.cmpi ne, %1, %c0_i32_0 : i32
    scf.if %2 {
      %cst_10 = arith.constant 0.000000e+00 : f32
      %12 = vector.broadcast %cst_10 : f32 to vector<16x64xf32>
      %c0_11 = arith.constant 0 : index
      %c0_12 = arith.constant 0 : index
      %13 = vector.load %arg11[%c0_11, %c0_12] : memref<16x64xf32, #tpu.memory_space<vmem>>, vector<16x64xf32>
      tpu.vector_store %arg11[%c0_11, %c0_12], %12 {strides = array<i32>} : memref<16x64xf32, #tpu.memory_space<vmem>>, vector<16x64xf32>,
    } else {
    }
    %c0 = arith.constant 0 : index
    %c0_1 = arith.constant 0 : index
    %3 = vector.load %arg11[%c0, %c0_1] : memref<16x64xf32, #tpu.memory_space<vmem>>, vector<16x64xf32>
    %c0_2 = arith.constant 0 : index
    %c0_3 = arith.constant 0 : index
    %4 = vector.load %arg3[%c0_2, %c0_3] : memref<16x64xbf16, #tpu.memory_space<vmem>>, vector<16x64xbf16>
    %c0_4 = arith.constant 0 : index
    %c0_5 = arith.constant 0 : index
    %5 = vector.load %arg4[%c0_4, %c0_5] : memref<64x64xbf16, #tpu.memory_space<vmem>>, vector<64x64xbf16>
    %cst = arith.constant dense<0.000000e+00> : vector<16x64xf32>
    %6 = tpu.matmul %4, %5, %cst {dimension_numbers = #tpu.dot_dimension_numbers<[1], [0], [0], [1], [0, 0, 1, 1], [], []>} : vector<16x64xbf16>, vector<64x64xbf16>, vector<16x64xf32> -> vector<16x64xf32>
    %7 = arith.addf %3, %6 : vector<16x64xf32>
    %c0_6 = arith.constant 0 : index
    %c0_7 = arith.constant 0 : index
    %8 = vector.load %arg11[%c0_6, %c0_7] : memref<16x64xf32, #tpu.memory_space<vmem>>, vector<16x64xf32>
    tpu.vector_store %arg11[%c0_6, %c0_7], %7 {strides = array<i32>} : memref<16x64xf32, #tpu.memory_space<vmem>>, vector<16x64xf32>,
    %c0_i32_8 = arith.constant 0 : i32
    %9 = arith.cmpi eq, %arg2, %c0_i32_8 : i32
    %10 = arith.extui %9 : i1 to i32
    %c0_i32_9 = arith.constant 0 : i32
    %11 = arith.cmpi ne, %10, %c0_i32_9 : i32
    scf.if %11 {
      %c0_10 = arith.constant 0 : index
      %c0_11 = arith.constant 0 : index
      %12 = vector.load %arg11[%c0_10, %c0_11] : memref<16x64xf32, #tpu.memory_space<vmem>>, vector<16x64xf32>
      %c0_12 = arith.constant 0 : index
      %c0_13 = arith.constant 0 : index
      %13 = vector.load %arg5[%c0_12, %c0_13] : memref<1x64xf32, #tpu.memory_space<vmem>>, vector<1x64xf32>
      %14 = vector.broadcast %13 : vector<1x64xf32> to vector<16x64xf32>
      %15 = arith.addf %12, %14 : vector<16x64xf32>
      %c0_14 = arith.constant 0 : index
      %c0_15 = arith.constant 0 : index
      %16 = vector.load %arg6[%c0_14, %c0_15] : memref<16x64xf32, #tpu.memory_space<vmem>>, vector<16x64xf32>
      %17 = arith.addf %15, %16 : vector<16x64xf32>
      %c0_16 = arith.constant 0 : index
      %c0_17 = arith.constant 0 : index
      %18 = vector.load %arg9[%c0_16, %c0_17] : memref<16x64xf32, #tpu.memory_space<vmem>>, vector<16x64xf32>
      tpu.vector_store %arg9[%c0_16, %c0_17], %17 {strides = array<i32>} : memref<16x64xf32, #tpu.memory_space<vmem>>, vector<16x64xf32>,
      %cst_18 = arith.constant dense<0.000000e+00> : vector<16xf32>
      %19 = vector.multi_reduction <add>, %17, %cst_18 [1] : vector<16x64xf32> to vector<16xf32>
      %20 = vector.shape_cast %19 : vector<16xf32> to vector<16x1xf32>
      %cst_19 = arith.constant 6.400000e+01 : f32
      %21 = vector.broadcast %cst_19 : f32 to vector<16x1xf32>
      %22 = arith.divf %20, %21 : vector<16x1xf32>
      %23 = vector.broadcast %22 : vector<16x1xf32> to vector<16x64xf32>
      %24 = arith.subf %17, %23 : vector<16x64xf32>
      %25 = arith.mulf %24, %24 : vector<16x64xf32>
      %cst_20 = arith.constant dense<0.000000e+00> : vector<16xf32>
      %26 = vector.multi_reduction <add>, %25, %cst_20 [1] : vector<16x64xf32> to vector<16xf32>
      %27 = vector.shape_cast %26 : vector<16xf32> to vector<16x1xf32>
      %cst_21 = arith.constant 6.400000e+01 : f32
      %28 = vector.broadcast %cst_21 : f32 to vector<16x1xf32>
      %29 = arith.divf %27, %28 : vector<16x1xf32>
      %cst_22 = arith.constant 9.99999974E-6 : f32
      %30 = vector.broadcast %cst_22 : f32 to vector<16x1xf32>
      %31 = arith.addf %29, %30 : vector<16x1xf32>
      %32 = math.rsqrt %31 : vector<16x1xf32>
      %33 = vector.broadcast %32 : vector<16x1xf32> to vector<16x64xf32>
      %34 = arith.mulf %24, %33 : vector<16x64xf32>
      %c0_23 = arith.constant 0 : index
      %c0_24 = arith.constant 0 : index
      %35 = vector.load %arg7[%c0_23, %c0_24] : memref<1x64xf32, #tpu.memory_space<vmem>>, vector<1x64xf32>
      %36 = vector.broadcast %35 : vector<1x64xf32> to vector<16x64xf32>
      %37 = arith.mulf %34, %36 : vector<16x64xf32>
      %c0_25 = arith.constant 0 : index
      %c0_26 = arith.constant 0 : index
      %38 = vector.load %arg8[%c0_25, %c0_26] : memref<1x64xf32, #tpu.memory_space<vmem>>, vector<1x64xf32>
      %39 = vector.broadcast %38 : vector<1x64xf32> to vector<16x64xf32>
      %40 = arith.addf %37, %39 : vector<16x64xf32>
      %41 = arith.truncf %40 : vector<16x64xf32> to vector<16x64xbf16>
      %c0_27 = arith.constant 0 : index
      %c0_28 = arith.constant 0 : index
      %42 = vector.load %arg10[%c0_27, %c0_28] : memref<16x64xbf16, #tpu.memory_space<vmem>>, vector<16x64xbf16>
      tpu.vector_store %arg10[%c0_27, %c0_28], %41 {strides = array<i32>} : memref<16x64xbf16, #tpu.memory_space<vmem>>, vector<16x64xbf16>,
    } else {
    }
    return
  }
  func.func @transform_0(%arg0: i32, %arg1: i32, %arg2: i32) -> (i32, i32) {
    %c0_i32 = arith.constant 0 : i32
    return %arg0, %arg2 : i32, i32
  }
  func.func @transform_1(%arg0: i32, %arg1: i32, %arg2: i32) -> (i32, i32) {
    %c0_i32 = arith.constant 0 : i32
    return %arg2, %arg1 : i32, i32
  }
  func.func @transform_2(%arg0: i32, %arg1: i32, %arg2: i32) -> (i32, i32) {
    %c0_i32 = arith.constant 0 : i32
    %c0_i32_0 = arith.constant 0 : i32
    return %c0_i32, %arg1 : i32, i32
  }
  func.func @transform_3(%arg0: i32, %arg1: i32, %arg2: i32) -> (i32, i32) {
    %c0_i32 = arith.constant 0 : i32
    return %arg0, %arg1 : i32, i32
  }
  func.func @transform_4(%arg0: i32, %arg1: i32, %arg2: i32) -> (i32, i32) {
    %c0_i32 = arith.constant 0 : i32
    %c0_i32_0 = arith.constant 0 : i32
    return %c0_i32, %arg1 : i32, i32
  }
  func.func @transform_5(%arg0: i32, %arg1: i32, %arg2: i32) -> (i32, i32) {
    %c0_i32 = arith.constant 0 : i32
    %c0_i32_0 = arith.constant 0 : i32
    return %c0_i32, %arg1 : i32, i32
  }
  func.func @transform_6(%arg0: i32, %arg1: i32, %arg2: i32) -> (i32, i32) {
    %c0_i32 = arith.constant 0 : i32
    return %arg0, %arg1 : i32, i32
  }
  func.func @transform_7(%arg0: i32, %arg1: i32, %arg2: i32) -> (i32, i32) {
    %c0_i32 = arith.constant 0 : i32
    return %arg0, %arg1 : i32, i32
  }
}

module attributes {stable_mosaic.version = 11 : i64} {
  func.func @_linear_kernel(%arg0: i32, %arg1: i32, %arg2: i32, %arg3: memref<16x64xbf16, #tpu.memory_space<vmem>>, %arg4: memref<64x256xbf16, #tpu.memory_space<vmem>>, %arg5: memref<1x256xf32, #tpu.memory_space<vmem>>, %arg6: memref<16x256xbf16, #tpu.memory_space<vmem>>, %arg7: memref<16x256xf32, #tpu.memory_space<vmem>>) attributes {dimension_semantics = [#tpu.dimension_semantics<parallel>, #tpu.dimension_semantics<parallel>, #tpu.dimension_semantics<arbitrary>], iteration_bounds = array<i64: 1, 1, 1>, scalar_prefetch = 0 : i64, scratch_operands = 1 : i64, tpu.core_type = #tpu.core_type<tc>, window_params = [{transform_indices = @transform_0, window_bounds = array<i64: 16, 64>}, {transform_indices = @transform_1, window_bounds = array<i64: 64, 256>}, {transform_indices = @transform_2, window_bounds = array<i64: 1, 256>}, {transform_indices = @transform_3, window_bounds = array<i64: 16, 256>}]} {
    %c0_i32 = arith.constant 0 : i32
    %0 = arith.cmpi eq, %arg2, %c0_i32 : i32
    %1 = arith.extui %0 : i1 to i32
    %c0_i32_0 = arith.constant 0 : i32
    %2 = arith.cmpi ne, %1, %c0_i32_0 : i32
    scf.if %2 {
      %cst_10 = arith.constant 0.000000e+00 : f32
      %12 = vector.broadcast %cst_10 : f32 to vector<16x256xf32>
      %c0_11 = arith.constant 0 : index
      %c0_12 = arith.constant 0 : index
      %13 = vector.load %arg7[%c0_11, %c0_12] : memref<16x256xf32, #tpu.memory_space<vmem>>, vector<16x256xf32>
      tpu.vector_store %arg7[%c0_11, %c0_12], %12 {strides = array<i32>} : memref<16x256xf32, #tpu.memory_space<vmem>>, vector<16x256xf32>,
    } else {
    }
    %c0 = arith.constant 0 : index
    %c0_1 = arith.constant 0 : index
    %3 = vector.load %arg7[%c0, %c0_1] : memref<16x256xf32, #tpu.memory_space<vmem>>, vector<16x256xf32>
    %c0_2 = arith.constant 0 : index
    %c0_3 = arith.constant 0 : index
    %4 = vector.load %arg3[%c0_2, %c0_3] : memref<16x64xbf16, #tpu.memory_space<vmem>>, vector<16x64xbf16>
    %c0_4 = arith.constant 0 : index
    %c0_5 = arith.constant 0 : index
    %5 = vector.load %arg4[%c0_4, %c0_5] : memref<64x256xbf16, #tpu.memory_space<vmem>>, vector<64x256xbf16>
    %cst = arith.constant dense<0.000000e+00> : vector<16x256xf32>
    %6 = tpu.matmul %4, %5, %cst {dimension_numbers = #tpu.dot_dimension_numbers<[1], [0], [0], [1], [0, 0, 1, 1], [], []>} : vector<16x64xbf16>, vector<64x256xbf16>, vector<16x256xf32> -> vector<16x256xf32>
    %7 = arith.addf %3, %6 : vector<16x256xf32>
    %c0_6 = arith.constant 0 : index
    %c0_7 = arith.constant 0 : index
    %8 = vector.load %arg7[%c0_6, %c0_7] : memref<16x256xf32, #tpu.memory_space<vmem>>, vector<16x256xf32>
    tpu.vector_store %arg7[%c0_6, %c0_7], %7 {strides = array<i32>} : memref<16x256xf32, #tpu.memory_space<vmem>>, vector<16x256xf32>,
    %c0_i32_8 = arith.constant 0 : i32
    %9 = arith.cmpi eq, %arg2, %c0_i32_8 : i32
    %10 = arith.extui %9 : i1 to i32
    %c0_i32_9 = arith.constant 0 : i32
    %11 = arith.cmpi ne, %10, %c0_i32_9 : i32
    scf.if %11 {
      %c0_10 = arith.constant 0 : index
      %c0_11 = arith.constant 0 : index
      %12 = vector.load %arg7[%c0_10, %c0_11] : memref<16x256xf32, #tpu.memory_space<vmem>>, vector<16x256xf32>
      %c0_12 = arith.constant 0 : index
      %c0_13 = arith.constant 0 : index
      %13 = vector.load %arg5[%c0_12, %c0_13] : memref<1x256xf32, #tpu.memory_space<vmem>>, vector<1x256xf32>
      %14 = vector.broadcast %13 : vector<1x256xf32> to vector<16x256xf32>
      %15 = arith.addf %12, %14 : vector<16x256xf32>
      %cst_14 = arith.constant 5.000000e-01 : f32
      %16 = vector.broadcast %cst_14 : f32 to vector<16x256xf32>
      %17 = arith.mulf %16, %15 : vector<16x256xf32>
      %cst_15 = arith.constant 0.707106769 : f32
      %18 = vector.broadcast %cst_15 : f32 to vector<16x256xf32>
      %19 = arith.mulf %15, %18 : vector<16x256xf32>
      %20 = math.erf %19 : vector<16x256xf32>
      %cst_16 = arith.constant 1.000000e+00 : f32
      %21 = vector.broadcast %cst_16 : f32 to vector<16x256xf32>
      %22 = arith.addf %21, %20 : vector<16x256xf32>
      %23 = arith.mulf %17, %22 : vector<16x256xf32>
      %24 = arith.truncf %23 : vector<16x256xf32> to vector<16x256xbf16>
      %c0_17 = arith.constant 0 : index
      %c0_18 = arith.constant 0 : index
      %25 = vector.load %arg6[%c0_17, %c0_18] : memref<16x256xbf16, #tpu.memory_space<vmem>>, vector<16x256xbf16>
      tpu.vector_store %arg6[%c0_17, %c0_18], %24 {strides = array<i32>} : memref<16x256xbf16, #tpu.memory_space<vmem>>, vector<16x256xbf16>,
    } else {
    }
    return
  }
  func.func @transform_0(%arg0: i32, %arg1: i32, %arg2: i32) -> (i32, i32) {
    %c0_i32 = arith.constant 0 : i32
    return %arg0, %arg2 : i32, i32
  }
  func.func @transform_1(%arg0: i32, %arg1: i32, %arg2: i32) -> (i32, i32) {
    %c0_i32 = arith.constant 0 : i32
    return %arg2, %arg1 : i32, i32
  }
  func.func @transform_2(%arg0: i32, %arg1: i32, %arg2: i32) -> (i32, i32) {
    %c0_i32 = arith.constant 0 : i32
    %c0_i32_0 = arith.constant 0 : i32
    return %c0_i32, %arg1 : i32, i32
  }
  func.func @transform_3(%arg0: i32, %arg1: i32, %arg2: i32) -> (i32, i32) {
    %c0_i32 = arith.constant 0 : i32
    return %arg0, %arg1 : i32, i32
  }
}

module attributes {stable_mosaic.version = 11 : i64} {
  func.func @_linear_kernel(%arg0: i32, %arg1: i32, %arg2: i32, %arg3: memref<16x256xbf16, #tpu.memory_space<vmem>>, %arg4: memref<256x64xbf16, #tpu.memory_space<vmem>>, %arg5: memref<1x64xf32, #tpu.memory_space<vmem>>, %arg6: memref<16x64xf32, #tpu.memory_space<vmem>>, %arg7: memref<1x64xf32, #tpu.memory_space<vmem>>, %arg8: memref<1x64xf32, #tpu.memory_space<vmem>>, %arg9: memref<16x64xf32, #tpu.memory_space<vmem>>, %arg10: memref<16x64xbf16, #tpu.memory_space<vmem>>, %arg11: memref<16x64xf32, #tpu.memory_space<vmem>>) attributes {dimension_semantics = [#tpu.dimension_semantics<parallel>, #tpu.dimension_semantics<parallel>, #tpu.dimension_semantics<arbitrary>], iteration_bounds = array<i64: 1, 1, 1>, scalar_prefetch = 0 : i64, scratch_operands = 1 : i64, tpu.core_type = #tpu.core_type<tc>, window_params = [{transform_indices = @transform_0, window_bounds = array<i64: 16, 256>}, {transform_indices = @transform_1, window_bounds = array<i64: 256, 64>}, {transform_indices = @transform_2, window_bounds = array<i64: 1, 64>}, {transform_indices = @transform_3, window_bounds = array<i64: 16, 64>}, {transform_indices = @transform_4, window_bounds = array<i64: 1, 64>}, {transform_indices = @transform_5, window_bounds = array<i64: 1, 64>}, {transform_indices = @transform_6, window_bounds = array<i64: 16, 64>}, {transform_indices = @transform_7, window_bounds = array<i64: 16, 64>}]} {
    %c0_i32 = arith.constant 0 : i32
    %0 = arith.cmpi eq, %arg2, %c0_i32 : i32
    %1 = arith.extui %0 : i1 to i32
    %c0_i32_0 = arith.constant 0 : i32
    %2 = arith.cmpi ne, %1, %c0_i32_0 : i32
    scf.if %2 {
      %cst_10 = arith.constant 0.000000e+00 : f32
      %12 = vector.broadcast %cst_10 : f32 to vector<16x64xf32>
      %c0_11 = arith.constant 0 : index
      %c0_12 = arith.constant 0 : index
      %13 = vector.load %arg11[%c0_11, %c0_12] : memref<16x64xf32, #tpu.memory_space<vmem>>, vector<16x64xf32>
      tpu.vector_store %arg11[%c0_11, %c0_12], %12 {strides = array<i32>} : memref<16x64xf32, #tpu.memory_space<vmem>>, vector<16x64xf32>,
    } else {
    }
    %c0 = arith.constant 0 : index
    %c0_1 = arith.constant 0 : index
    %3 = vector.load %arg11[%c0, %c0_1] : memref<16x64xf32, #tpu.memory_space<vmem>>, vector<16x64xf32>
    %c0_2 = arith.constant 0 : index
    %c0_3 = arith.constant 0 : index
    %4 = vector.load %arg3[%c0_2, %c0_3] : memref<16x256xbf16, #tpu.memory_space<vmem>>, vector<16x256xbf16>
    %c0_4 = arith.constant 0 : index
    %c0_5 = arith.constant 0 : index
    %5 = vector.load %arg4[%c0_4, %c0_5] : memref<256x64xbf16, #tpu.memory_space<vmem>>, vector<256x64xbf16>
    %cst = arith.constant dense<0.000000e+00> : vector<16x64xf32>
    %6 = tpu.matmul %4, %5, %cst {dimension_numbers = #tpu.dot_dimension_numbers<[1], [0], [0], [1], [0, 0, 1, 1], [], []>} : vector<16x256xbf16>, vector<256x64xbf16>, vector<16x64xf32> -> vector<16x64xf32>
    %7 = arith.addf %3, %6 : vector<16x64xf32>
    %c0_6 = arith.constant 0 : index
    %c0_7 = arith.constant 0 : index
    %8 = vector.load %arg11[%c0_6, %c0_7] : memref<16x64xf32, #tpu.memory_space<vmem>>, vector<16x64xf32>
    tpu.vector_store %arg11[%c0_6, %c0_7], %7 {strides = array<i32>} : memref<16x64xf32, #tpu.memory_space<vmem>>, vector<16x64xf32>,
    %c0_i32_8 = arith.constant 0 : i32
    %9 = arith.cmpi eq, %arg2, %c0_i32_8 : i32
    %10 = arith.extui %9 : i1 to i32
    %c0_i32_9 = arith.constant 0 : i32
    %11 = arith.cmpi ne, %10, %c0_i32_9 : i32
    scf.if %11 {
      %c0_10 = arith.constant 0 : index
      %c0_11 = arith.constant 0 : index
      %12 = vector.load %arg11[%c0_10, %c0_11] : memref<16x64xf32, #tpu.memory_space<vmem>>, vector<16x64xf32>
      %c0_12 = arith.constant 0 : index
      %c0_13 = arith.constant 0 : index
      %13 = vector.load %arg5[%c0_12, %c0_13] : memref<1x64xf32, #tpu.memory_space<vmem>>, vector<1x64xf32>
      %14 = vector.broadcast %13 : vector<1x64xf32> to vector<16x64xf32>
      %15 = arith.addf %12, %14 : vector<16x64xf32>
      %c0_14 = arith.constant 0 : index
      %c0_15 = arith.constant 0 : index
      %16 = vector.load %arg6[%c0_14, %c0_15] : memref<16x64xf32, #tpu.memory_space<vmem>>, vector<16x64xf32>
      %17 = arith.addf %15, %16 : vector<16x64xf32>
      %c0_16 = arith.constant 0 : index
      %c0_17 = arith.constant 0 : index
      %18 = vector.load %arg9[%c0_16, %c0_17] : memref<16x64xf32, #tpu.memory_space<vmem>>, vector<16x64xf32>
      tpu.vector_store %arg9[%c0_16, %c0_17], %17 {strides = array<i32>} : memref<16x64xf32, #tpu.memory_space<vmem>>, vector<16x64xf32>,
      %cst_18 = arith.constant dense<0.000000e+00> : vector<16xf32>
      %19 = vector.multi_reduction <add>, %17, %cst_18 [1] : vector<16x64xf32> to vector<16xf32>
      %20 = vector.shape_cast %19 : vector<16xf32> to vector<16x1xf32>
      %cst_19 = arith.constant 6.400000e+01 : f32
      %21 = vector.broadcast %cst_19 : f32 to vector<16x1xf32>
      %22 = arith.divf %20, %21 : vector<16x1xf32>
      %23 = vector.broadcast %22 : vector<16x1xf32> to vector<16x64xf32>
      %24 = arith.subf %17, %23 : vector<16x64xf32>
      %25 = arith.mulf %24, %24 : vector<16x64xf32>
      %cst_20 = arith.constant dense<0.000000e+00> : vector<16xf32>
      %26 = vector.multi_reduction <add>, %25, %cst_20 [1] : vector<16x64xf32> to vector<16xf32>
      %27 = vector.shape_cast %26 : vector<16xf32> to vector<16x1xf32>
      %cst_21 = arith.constant 6.400000e+01 : f32
      %28 = vector.broadcast %cst_21 : f32 to vector<16x1xf32>
      %29 = arith.divf %27, %28 : vector<16x1xf32>
      %cst_22 = arith.constant 9.99999974E-6 : f32
      %30 = vector.broadcast %cst_22 : f32 to vector<16x1xf32>
      %31 = arith.addf %29, %30 : vector<16x1xf32>
      %32 = math.rsqrt %31 : vector<16x1xf32>
      %33 = vector.broadcast %32 : vector<16x1xf32> to vector<16x64xf32>
      %34 = arith.mulf %24, %33 : vector<16x64xf32>
      %c0_23 = arith.constant 0 : index
      %c0_24 = arith.constant 0 : index
      %35 = vector.load %arg7[%c0_23, %c0_24] : memref<1x64xf32, #tpu.memory_space<vmem>>, vector<1x64xf32>
      %36 = vector.broadcast %35 : vector<1x64xf32> to vector<16x64xf32>
      %37 = arith.mulf %34, %36 : vector<16x64xf32>
      %c0_25 = arith.constant 0 : index
      %c0_26 = arith.constant 0 : index
      %38 = vector.load %arg8[%c0_25, %c0_26] : memref<1x64xf32, #tpu.memory_space<vmem>>, vector<1x64xf32>
      %39 = vector.broadcast %38 : vector<1x64xf32> to vector<16x64xf32>
      %40 = arith.addf %37, %39 : vector<16x64xf32>
      %41 = arith.truncf %40 : vector<16x64xf32> to vector<16x64xbf16>
      %c0_27 = arith.constant 0 : index
      %c0_28 = arith.constant 0 : index
      %42 = vector.load %arg10[%c0_27, %c0_28] : memref<16x64xbf16, #tpu.memory_space<vmem>>, vector<16x64xbf16>
      tpu.vector_store %arg10[%c0_27, %c0_28], %41 {strides = array<i32>} : memref<16x64xbf16, #tpu.memory_space<vmem>>, vector<16x64xbf16>,
    } else {
    }
    return
  }
  func.func @transform_0(%arg0: i32, %arg1: i32, %arg2: i32) -> (i32, i32) {
    %c0_i32 = arith.constant 0 : i32
    return %arg0, %arg2 : i32, i32
  }
  func.func @transform_1(%arg0: i32, %arg1: i32, %arg2: i32) -> (i32, i32) {
    %c0_i32 = arith.constant 0 : i32
    return %arg2, %arg1 : i32, i32
  }
  func.func @transform_2(%arg0: i32, %arg1: i32, %arg2: i32) -> (i32, i32) {
    %c0_i32 = arith.constant 0 : i32
    %c0_i32_0 = arith.constant 0 : i32
    return %c0_i32, %arg1 : i32, i32
  }
  func.func @transform_3(%arg0: i32, %arg1: i32, %arg2: i32) -> (i32, i32) {
    %c0_i32 = arith.constant 0 : i32
    return %arg0, %arg1 : i32, i32
  }
  func.func @transform_4(%arg0: i32, %arg1: i32, %arg2: i32) -> (i32, i32) {
    %c0_i32 = arith.constant 0 : i32
    %c0_i32_0 = arith.constant 0 : i32
    return %c0_i32, %arg1 : i32, i32
  }
  func.func @transform_5(%arg0: i32, %arg1: i32, %arg2: i32) -> (i32, i32) {
    %c0_i32 = arith.constant 0 : i32
    %c0_i32_0 = arith.constant 0 : i32
    return %c0_i32, %arg1 : i32, i32
  }
  func.func @transform_6(%arg0: i32, %arg1: i32, %arg2: i32) -> (i32, i32) {
    %c0_i32 = arith.constant 0 : i32
    return %arg0, %arg1 : i32, i32
  }
  func.func @transform_7(%arg0: i32, %arg1: i32, %arg2: i32) -> (i32, i32) {
    %c0_i32 = arith.constant 0 : i32
    return %arg0, %arg1 : i32, i32
  }
}

module attributes {stable_mosaic.version = 11 : i64} {
  func.func @_linear_kernel(%arg0: i32, %arg1: i32, %arg2: i32, %arg3: memref<16x256xbf16, #tpu.memory_space<vmem>>, %arg4: memref<256x64xbf16, #tpu.memory_space<vmem>>, %arg5: memref<1x64xf32, #tpu.memory_space<vmem>>, %arg6: memref<16x64xf32, #tpu.memory_space<vmem>>, %arg7: memref<1x64xf32, #tpu.memory_space<vmem>>, %arg8: memref<1x64xf32, #tpu.memory_space<vmem>>, %arg9: memref<16x64xf32, #tpu.memory_space<vmem>>, %arg10: memref<16x64xbf16, #tpu.memory_space<vmem>>, %arg11: memref<16x64xf32, #tpu.memory_space<vmem>>) attributes {dimension_semantics = [#tpu.dimension_semantics<parallel>, #tpu.dimension_semantics<parallel>, #tpu.dimension_semantics<arbitrary>], iteration_bounds = array<i64: 1, 1, 1>, scalar_prefetch = 0 : i64, scratch_operands = 1 : i64, tpu.core_type = #tpu.core_type<tc>, window_params = [{transform_indices = @transform_0, window_bounds = array<i64: 16, 256>}, {transform_indices = @transform_1, window_bounds = array<i64: 256, 64>}, {transform_indices = @transform_2, window_bounds = array<i64: 1, 64>}, {transform_indices = @transform_3, window_bounds = array<i64: 16, 64>}, {transform_indices = @transform_4, window_bounds = array<i64: 1, 64>}, {transform_indices = @transform_5, window_bounds = array<i64: 1, 64>}, {transform_indices = @transform_6, window_bounds = array<i64: 16, 64>}, {transform_indices = @transform_7, window_bounds = array<i64: 16, 64>}]} {
    %c0_i32 = arith.constant 0 : i32
    %0 = arith.cmpi eq, %arg2, %c0_i32 : i32
    %1 = arith.extui %0 : i1 to i32
    %c0_i32_0 = arith.constant 0 : i32
    %2 = arith.cmpi ne, %1, %c0_i32_0 : i32
    scf.if %2 {
      %cst_10 = arith.constant 0.000000e+00 : f32
      %12 = vector.broadcast %cst_10 : f32 to vector<16x64xf32>
      %c0_11 = arith.constant 0 : index
      %c0_12 = arith.constant 0 : index
      %13 = vector.load %arg11[%c0_11, %c0_12] : memref<16x64xf32, #tpu.memory_space<vmem>>, vector<16x64xf32>
      tpu.vector_store %arg11[%c0_11, %c0_12], %12 {strides = array<i32>} : memref<16x64xf32, #tpu.memory_space<vmem>>, vector<16x64xf32>,
    } else {
    }
    %c0 = arith.constant 0 : index
    %c0_1 = arith.constant 0 : index
    %3 = vector.load %arg11[%c0, %c0_1] : memref<16x64xf32, #tpu.memory_space<vmem>>, vector<16x64xf32>
    %c0_2 = arith.constant 0 : index
    %c0_3 = arith.constant 0 : index
    %4 = vector.load %arg3[%c0_2, %c0_3] : memref<16x256xbf16, #tpu.memory_space<vmem>>, vector<16x256xbf16>
    %c0_4 = arith.constant 0 : index
    %c0_5 = arith.constant 0 : index
    %5 = vector.load %arg4[%c0_4, %c0_5] : memref<256x64xbf16, #tpu.memory_space<vmem>>, vector<256x64xbf16>
    %cst = arith.constant dense<0.000000e+00> : vector<16x64xf32>
    %6 = tpu.matmul %4, %5, %cst {dimension_numbers = #tpu.dot_dimension_numbers<[1], [0], [0], [1], [0, 0, 1, 1], [], []>} : vector<16x256xbf16>, vector<256x64xbf16>, vector<16x64xf32> -> vector<16x64xf32>
    %7 = arith.addf %3, %6 : vector<16x64xf32>
    %c0_6 = arith.constant 0 : index
    %c0_7 = arith.constant 0 : index
    %8 = vector.load %arg11[%c0_6, %c0_7] : memref<16x64xf32, #tpu.memory_space<vmem>>, vector<16x64xf32>
    tpu.vector_store %arg11[%c0_6, %c0_7], %7 {strides = array<i32>} : memref<16x64xf32, #tpu.memory_space<vmem>>, vector<16x64xf32>,
    %c0_i32_8 = arith.constant 0 : i32
    %9 = arith.cmpi eq, %arg2, %c0_i32_8 : i32
    %10 = arith.extui %9 : i1 to i32
    %c0_i32_9 = arith.constant 0 : i32
    %11 = arith.cmpi ne, %10, %c0_i32_9 : i32
    scf.if %11 {
      %c0_10 = arith.constant 0 : index
      %c0_11 = arith.constant 0 : index
      %12 = vector.load %arg11[%c0_10, %c0_11] : memref<16x64xf32, #tpu.memory_space<vmem>>, vector<16x64xf32>
      %c0_12 = arith.constant 0 : index
      %c0_13 = arith.constant 0 : index
      %13 = vector.load %arg5[%c0_12, %c0_13] : memref<1x64xf32, #tpu.memory_space<vmem>>, vector<1x64xf32>
      %14 = vector.broadcast %13 : vector<1x64xf32> to vector<16x64xf32>
      %15 = arith.addf %12, %14 : vector<16x64xf32>
      %c0_14 = arith.constant 0 : index
      %c0_15 = arith.constant 0 : index
      %16 = vector.load %arg6[%c0_14, %c0_15] : memref<16x64xf32, #tpu.memory_space<vmem>>, vector<16x64xf32>
      %17 = arith.addf %15, %16 : vector<16x64xf32>
      %c0_16 = arith.constant 0 : index
      %c0_17 = arith.constant 0 : index
      %18 = vector.load %arg9[%c0_16, %c0_17] : memref<16x64xf32, #tpu.memory_space<vmem>>, vector<16x64xf32>
      tpu.vector_store %arg9[%c0_16, %c0_17], %17 {strides = array<i32>} : memref<16x64xf32, #tpu.memory_space<vmem>>, vector<16x64xf32>,
      %cst_18 = arith.constant dense<0.000000e+00> : vector<16xf32>
      %19 = vector.multi_reduction <add>, %17, %cst_18 [1] : vector<16x64xf32> to vector<16xf32>
      %20 = vector.shape_cast %19 : vector<16xf32> to vector<16x1xf32>
      %cst_19 = arith.constant 6.400000e+01 : f32
      %21 = vector.broadcast %cst_19 : f32 to vector<16x1xf32>
      %22 = arith.divf %20, %21 : vector<16x1xf32>
      %23 = vector.broadcast %22 : vector<16x1xf32> to vector<16x64xf32>
      %24 = arith.subf %17, %23 : vector<16x64xf32>
      %25 = arith.mulf %24, %24 : vector<16x64xf32>
      %cst_20 = arith.constant dense<0.000000e+00> : vector<16xf32>
      %26 = vector.multi_reduction <add>, %25, %cst_20 [1] : vector<16x64xf32> to vector<16xf32>
      %27 = vector.shape_cast %26 : vector<16xf32> to vector<16x1xf32>
      %cst_21 = arith.constant 6.400000e+01 : f32
      %28 = vector.broadcast %cst_21 : f32 to vector<16x1xf32>
      %29 = arith.divf %27, %28 : vector<16x1xf32>
      %cst_22 = arith.constant 9.99999974E-6 : f32
      %30 = vector.broadcast %cst_22 : f32 to vector<16x1xf32>
      %31 = arith.addf %29, %30 : vector<16x1xf32>
      %32 = math.rsqrt %31 : vector<16x1xf32>
      %33 = vector.broadcast %32 : vector<16x1xf32> to vector<16x64xf32>
      %34 = arith.mulf %24, %33 : vector<16x64xf32>
      %c0_23 = arith.constant 0 : index
      %c0_24 = arith.constant 0 : index
      %35 = vector.load %arg7[%c0_23, %c0_24] : memref<1x64xf32, #tpu.memory_space<vmem>>, vector<1x64xf32>
      %36 = vector.broadcast %35 : vector<1x64xf32> to vector<16x64xf32>
      %37 = arith.mulf %34, %36 : vector<16x64xf32>
      %c0_25 = arith.constant 0 : index
      %c0_26 = arith.constant 0 : index
      %38 = vector.load %arg8[%c0_25, %c0_26] : memref<1x64xf32, #tpu.memory_space<vmem>>, vector<1x64xf32>
      %39 = vector.broadcast %38 : vector<1x64xf32> to vector<16x64xf32>
      %40 = arith.addf %37, %39 : vector<16x64xf32>
      %41 = arith.truncf %40 : vector<16x64xf32> to vector<16x64xbf16>
      %c0_27 = arith.constant 0 : index
      %c0_28 = arith.constant 0 : index
      %42 = vector.load %arg10[%c0_27, %c0_28] : memref<16x64xbf16, #tpu.memory_space<vmem>>, vector<16x64xbf16>
      tpu.vector_store %arg10[%c0_27, %c0_28], %41 {strides = array<i32>} : memref<16x64xbf16, #tpu.memory_space<vmem>>, vector<16x64xbf16>,
    } else {
    }
    return
  }
  func.func @transform_0(%arg0: i32, %arg1: i32, %arg2: i32) -> (i32, i32) {
    %c0_i32 = arith.constant 0 : i32
    return %arg0, %arg2 : i32, i32
  }
  func.func @transform_1(%arg0: i32, %arg1: i32, %arg2: i32) -> (i32, i32) {
    %c0_i32 = arith.constant 0 : i32
    return %arg2, %arg1 : i32, i32
  }
  func.func @transform_2(%arg0: i32, %arg1: i32, %arg2: i32) -> (i32, i32) {
    %c0_i32 = arith.constant 0 : i32
    %c0_i32_0 = arith.constant 0 : i32
    return %c0_i32, %arg1 : i32, i32
  }
  func.func @transform_3(%arg0: i32, %arg1: i32, %arg2: i32) -> (i32, i32) {
    %c0_i32 = arith.constant 0 : i32
    return %arg0, %arg1 : i32, i32
  }
  func.func @transform_4(%arg0: i32, %arg1: i32, %arg2: i32) -> (i32, i32) {
    %c0_i32 = arith.constant 0 : i32
    %c0_i32_0 = arith.constant 0 : i32
    return %c0_i32, %arg1 : i32, i32
  }
  func.func @transform_5(%arg0: i32, %arg1: i32, %arg2: i32) -> (i32, i32) {
    %c0_i32 = arith.constant 0 : i32
    %c0_i32_0 = arith.constant 0 : i32
    return %c0_i32, %arg1 : i32, i32
  }
  func.func @transform_6(%arg0: i32, %arg1: i32, %arg2: i32) -> (i32, i32) {
    %c0_i32 = arith.constant 0 : i32
    return %arg0, %arg1 : i32, i32
  }
  func.func @transform_7(%arg0: i32, %arg1: i32, %arg2: i32) -> (i32, i32) {
    %c0_i32 = arith.constant 0 : i32
    return %arg0, %arg1 : i32, i32
  }
}

module attributes {stable_mosaic.version = 11 : i64} {
  func.func @_linear_kernel(%arg0: i32, %arg1: i32, %arg2: i32, %arg3: memref<16x64xbf16, #tpu.memory_space<vmem>>, %arg4: memref<64x128xbf16, #tpu.memory_space<vmem>>, %arg5: memref<16x128xf32, #tpu.memory_space<vmem>>, %arg6: memref<16x128xf32, #tpu.memory_space<vmem>>) attributes {dimension_semantics = [#tpu.dimension_semantics<parallel>, #tpu.dimension_semantics<parallel>, #tpu.dimension_semantics<arbitrary>], iteration_bounds = array<i64: 1, 1, 1>, scalar_prefetch = 0 : i64, scratch_operands = 1 : i64, tpu.core_type = #tpu.core_type<tc>, window_params = [{transform_indices = @transform_0, window_bounds = array<i64: 16, 64>}, {transform_indices = @transform_1, window_bounds = array<i64: 64, 128>}, {transform_indices = @transform_2, window_bounds = array<i64: 16, 128>}]} {
    %c0_i32 = arith.constant 0 : i32
    %0 = arith.cmpi eq, %arg2, %c0_i32 : i32
    %1 = arith.extui %0 : i1 to i32
    %c0_i32_0 = arith.constant 0 : i32
    %2 = arith.cmpi ne, %1, %c0_i32_0 : i32
    scf.if %2 {
      %cst_10 = arith.constant 0.000000e+00 : f32
      %12 = vector.broadcast %cst_10 : f32 to vector<16x128xf32>
      %c0_11 = arith.constant 0 : index
      %c0_12 = arith.constant 0 : index
      %13 = vector.load %arg6[%c0_11, %c0_12] : memref<16x128xf32, #tpu.memory_space<vmem>>, vector<16x128xf32>
      tpu.vector_store %arg6[%c0_11, %c0_12], %12 {strides = array<i32>} : memref<16x128xf32, #tpu.memory_space<vmem>>, vector<16x128xf32>,
    } else {
    }
    %c0 = arith.constant 0 : index
    %c0_1 = arith.constant 0 : index
    %3 = vector.load %arg6[%c0, %c0_1] : memref<16x128xf32, #tpu.memory_space<vmem>>, vector<16x128xf32>
    %c0_2 = arith.constant 0 : index
    %c0_3 = arith.constant 0 : index
    %4 = vector.load %arg3[%c0_2, %c0_3] : memref<16x64xbf16, #tpu.memory_space<vmem>>, vector<16x64xbf16>
    %c0_4 = arith.constant 0 : index
    %c0_5 = arith.constant 0 : index
    %5 = vector.load %arg4[%c0_4, %c0_5] : memref<64x128xbf16, #tpu.memory_space<vmem>>, vector<64x128xbf16>
    %cst = arith.constant dense<0.000000e+00> : vector<16x128xf32>
    %6 = tpu.matmul %4, %5, %cst {dimension_numbers = #tpu.dot_dimension_numbers<[1], [0], [0], [1], [0, 0, 1, 1], [], []>} : vector<16x64xbf16>, vector<64x128xbf16>, vector<16x128xf32> -> vector<16x128xf32>
    %7 = arith.addf %3, %6 : vector<16x128xf32>
    %c0_6 = arith.constant 0 : index
    %c0_7 = arith.constant 0 : index
    %8 = vector.load %arg6[%c0_6, %c0_7] : memref<16x128xf32, #tpu.memory_space<vmem>>, vector<16x128xf32>
    tpu.vector_store %arg6[%c0_6, %c0_7], %7 {strides = array<i32>} : memref<16x128xf32, #tpu.memory_space<vmem>>, vector<16x128xf32>,
    %c0_i32_8 = arith.constant 0 : i32
    %9 = arith.cmpi eq, %arg2, %c0_i32_8 : i32
    %10 = arith.extui %9 : i1 to i32
    %c0_i32_9 = arith.constant 0 : i32
    %11 = arith.cmpi ne, %10, %c0_i32_9 : i32
    scf.if %11 {
      %c0_10 = arith.constant 0 : index
      %c0_11 = arith.constant 0 : index
      %12 = vector.load %arg6[%c0_10, %c0_11] : memref<16x128xf32, #tpu.memory_space<vmem>>, vector<16x128xf32>
      %c0_12 = arith.constant 0 : index
      %c0_13 = arith.constant 0 : index
      %13 = vector.load %arg5[%c0_12, %c0_13] : memref<16x128xf32, #tpu.memory_space<vmem>>, vector<16x128xf32>
      tpu.vector_store %arg5[%c0_12, %c0_13], %12 {strides = array<i32>} : memref<16x128xf32, #tpu.memory_space<vmem>>, vector<16x128xf32>,
    } else {
    }
    return
  }
  func.func @transform_0(%arg0: i32, %arg1: i32, %arg2: i32) -> (i32, i32) {
    %c0_i32 = arith.constant 0 : i32
    return %arg0, %arg2 : i32, i32
  }
  func.func @transform_1(%arg0: i32, %arg1: i32, %arg2: i32) -> (i32, i32) {
    %c0_i32 = arith.constant 0 : i32
    return %arg2, %arg1 : i32, i32
  }
  func.func @transform_2(%arg0: i32, %arg1: i32, %arg2: i32) -> (i32, i32) {
    %c0_i32 = arith.constant 0 : i32
    return %arg0, %arg1 : i32, i32
  }
}

</mosaic_0001>

<bundles_post_ra>
// kernel: gpt2_forward.17
= control target key start
LH: loop header
LB: loop body
LE: loop exit
PB: predicated region body
PF: predicated region fallthrough
CT: control target
= control target key end

     0   :  { %vm19_vm0 = vcmask 523264   ;;  %v133_v1 = vmov 0.0   ;;  %vm98_vm1 = vcmask 519168   ;;  %s183_s1 = inlined_call_operand.vmem [shape: bf16[64,64], index: 1, kind: input, shape index: {}]   ;;  %s184_s2 = inlined_call_operand.vmem [shape: f32[1,64], index: 2, kind: input, shape index: {}]   ;;  %s185_s0 = inlined_call_operand.vmem [shape: bf16[16,64], index: 0, kind: input, shape index: {}]   ;;  %s186_s3 = inlined_call_operand.vmem [shape: bf16[16,64], index: 3, kind: output, shape index: {}]  }
   0x1   :  { %v130_v0 = vld [vmem:[%s183_s1 + $0x18] sm:$0xff]  ;;  %20 = vst.msk [vmem:[#allocation2] sm:$0xff] %vm19_vm0, %v133_v1  ;;  %v129_v2 = vld [vmem:[%s183_s1 + $0x10] sm:$0xff]  ;;  %v128_v3 = vld [vmem:[%s183_s1 + $0x8] sm:$0xff] }
   0x2   :  { %21 = vst.msk [vmem:[#allocation2 + $0x8] sm:$0xff] %vm19_vm0, %v133_v1  ;;  %71 = vmatpush.bf16.msra.mxu0 %v130_v0  ;;  %v127_v4 = vld [vmem:[%s183_s1] sm:$0xff] }
   0x3   :  { %v126_v5 = vld [vmem:[%s185_s0] sm:$0xff] }
   0x4   :  { %v132_v10 = vld [vmem:[%s184_s2] ss:$0 sm:$0xff] }
   0x6   :  { %72 = vmatpush.bf16.msra.mxu0 %v129_v2 }
   0x8   :  { %v22_v6 = vld [vmem:[#allocation2] sm:$0xff] }
   0x9   :  { %v23_v9 = vld [vmem:[#allocation2 + $0x8] sm:$0xff] }
   0xa   :  { %73 = vmatpush.bf16.msra.mxu0 %v128_v3 }
   0xe   :  { %74 = vmatpush.bf16.msra.mxu0 %v127_v4 }
  0x11   :  { %125 = vmatmul.msk.bf16.vlgmr.msra.gmra.mxu0 %vm19_vm0, %v126_v5 }
  0x8e   :  { %v76_v7 = vpop.f32.mrf.mxu0 }
  0x8f   :  { %v81_v8 = vadd.f32 %v76_v7, %v22_v6 }
  0x91   :  { %83 = vst.msk [vmem:[#allocation2] sm:$0xff] %vm19_vm0, %v81_v8 }
  0x96   :  { %v78_v11 = vpop.f32.mrf.mxu0 }
  0x97   :  { %v82_v12 = vadd.f32 %v78_v11, %v23_v9 }
  0x98   :  { %v88_v13 = vld [vmem:[#allocation2] sm:$0xff] }
  0x99   :  { %v94_v14 = vadd.f32 %v132_v10, %v88_v13  ;;  %84 = vst.msk [vmem:[#allocation2 + $0x8] sm:$0xff] %vm19_vm0, %v82_v12 }
  0x9b   :  { %v96_v15 = vpack.c.bf16 %v94_v14, %v94_v14 }
  0x9d   :  { %99 = vst.msk [vmem:[%s186_s3] sm:$0xf] %vm98_vm1, %v96_v15 }
  0xa0   :  { %v89_v16 = vld [vmem:[#allocation2 + $0x8] sm:$0xff] }
  0xa1   :  { %v95_v17 = vadd.f32 %v132_v10, %v89_v16 }
  0xa3   :  { %v97_v18 = vpack.c.bf16 %v95_v17, %v95_v17 }
  0xa5   :  { %100 = vst.msk [vmem:[%s186_s3 + $0x4] sm:$0xf] %vm98_vm1, %v97_v18 }

// kernel: gpt2_forward.21
= control target key start
LH: loop header
LB: loop body
LE: loop exit
PB: predicated region body
PF: predicated region fallthrough
CT: control target
= control target key end

     0   :  { %vm30_vm0 = vcmask 523264   ;;  %v226_v1 = vmov 0.0   ;;  %v227_v23 = vmov 64.0   ;;  %vm178_vm6 = vcmask 519168   ;;  %s321_s1 = inlined_call_operand.vmem [shape: bf16[64,64], index: 1, kind: input, shape index: {}]   ;;  %s322_s0 = inlined_call_operand.vmem [shape: bf16[16,64], index: 0, kind: input, shape index: {}]   ;;  %s323_s2 = inlined_call_operand.vmem [shape: f32[1,64], index: 2, kind: input, shape index: {}]   ;;  %s324_s3 = inlined_call_operand.vmem [shape: f32[16,64], index: 3, kind: input, shape index: {}]   ;;  %s325_s6 = inlined_call_operand.vmem [shape: f32[16,64], index: 6, kind: output, shape index: {0}]   ;;  %s326_s4 = inlined_call_operand.vmem [shape: f32[1,64], index: 4, kind: input, shape index: {}]   ;;  %s327_s5 = inlined_call_operand.vmem [shape: f32[1,64], index: 5, kind: input, shape index: {}]   ;;  %s328_s7 = inlined_call_operand.vmem [shape: bf16[16,64], index: 7, kind: output, shape index: {1}]  }
   0x1   :  { %v214_v0 = vld [vmem:[%s321_s1 + $0x18] sm:$0xff]  ;;  %31 = vst.msk [vmem:[#allocation2] sm:$0xff] %vm30_vm0, %v226_v1  ;;  %v213_v2 = vld [vmem:[%s321_s1 + $0x10] sm:$0xff]  ;;  %v212_v3 = vld [vmem:[%s321_s1 + $0x8] sm:$0xff]  ;;  %220 = vrcp.f32 %v227_v23 }
   0x2   :  { %32 = vst.msk [vmem:[#allocation2 + $0x8] sm:$0xff] %vm30_vm0, %v226_v1  ;;  %82 = vmatpush.bf16.msra.mxu0 %v214_v0  ;;  %v211_v4 = vld [vmem:[%s321_s1] sm:$0xff]  ;;  %v108_v19 = vld [vmem:[%s324_s3 + $0x8] sm:$0xff] }
   0x3   :  { %v210_v5 = vld [vmem:[%s322_s0] sm:$0xff] }
   0x4   :  { %v217_v10 = vld [vmem:[%s323_s2] ss:$0 sm:$0xff] }
   0x5   :  { %v107_v14 = vld [vmem:[%s324_s3] sm:$0xff] }
   0x6   :  { %83 = vmatpush.bf16.msra.mxu0 %v213_v2  ;;  %v218_v54 = vld [vmem:[%s326_s4] ss:$0 sm:$0xff] }
   0x7   :  { %v221_v24 = vpop.eup %220  ;;  %v219_v57 = vld [vmem:[%s327_s5] ss:$0 sm:$0xff] }
   0x8   :  { %v33_v6 = vld [vmem:[#allocation2] sm:$0xff]  ;;  %v120_v25 = vmul.f32 64.0, %v221_v24  ;;  %vm124_vm1 = vweird.f32 %v221_v24 }
   0x9   :  { %v34_v9 = vld [vmem:[#allocation2 + $0x8] sm:$0xff] }
   0xa   :  { %84 = vmatpush.bf16.msra.mxu0 %v212_v3  ;;  %v121_v26 = vsub.f32 1.0, %v120_v25 }
   0xc   :  { %v122_v27 = vmul.f32 %v221_v24, %v121_v26 }
   0xe   :  { %85 = vmatpush.bf16.msra.mxu0 %v211_v4  ;;  %v123_v28 = vadd.f32 %v221_v24, %v122_v27 }
  0x10   :  { %v125_v29 = vsel %vm124_vm1, %v221_v24, %v123_v28 }
  0x11   :  { %209 = vmatmul.msk.bf16.vlgmr.msra.gmra.mxu0 %vm30_vm0, %v210_v5 }
  0x8e   :  { %v87_v7 = vpop.f32.mrf.mxu0 }
  0x8f   :  { %v92_v8 = vadd.f32 %v87_v7, %v33_v6 }
  0x91   :  { %94 = vst.msk [vmem:[#allocation2] sm:$0xff] %vm30_vm0, %v92_v8 }
  0x96   :  { %v89_v11 = vpop.f32.mrf.mxu0 }
  0x97   :  { %v93_v12 = vadd.f32 %v89_v11, %v34_v9 }
  0x98   :  { %v99_v13 = vld [vmem:[#allocation2] sm:$0xff] }
  0x99   :  { %95 = vst.msk [vmem:[#allocation2 + $0x8] sm:$0xff] %vm30_vm0, %v93_v12  ;;  %v105_v15 = vadd.f32 %v217_v10, %v99_v13 }
  0x9b   :  { %v109_v16 = vadd.f32 %v107_v14, %v105_v15 }
  0x9d   :  { %v113_v17 = vsel %vm30_vm0, %v109_v16, 0.0  ;;  %111 = vst.msk [vmem:[%s325_s6] sm:$0xff] %vm30_vm0, %v109_v16 }
  0x9e   :  { %114 = vadd.xlane.f32.xlu0 %v113_v17 }
  0xa0   :  { %v100_v18 = vld [vmem:[#allocation2 + $0x8] sm:$0xff] }
  0xa1   :  { %v106_v20 = vadd.f32 %v217_v10, %v100_v18 }
  0xa3   :  { %v110_v21 = vadd.f32 %v108_v19, %v106_v20 }
  0xa5   :  { %v116_v22 = vsel %vm30_vm0, %v110_v21, 0.0  ;;  %112 = vst.msk [vmem:[%s325_s6 + $0x8] sm:$0xff] %vm30_vm0, %v110_v21 }
  0xa6   :  { %117 = vadd.xlane.f32.xlu0 %v116_v22 }
 0x111   :  { %v115_v30 = vpop.xlane.xlu0 %114 }
 0x112   :  { %v126_v31 = vmul.f32 %v125_v29, %v115_v30 }
 0x114   :  { %v128_v32 = vsub.f32 %v109_v16, %v126_v31 }
 0x116   :  { %v130_v33 = vmul.f32 %v128_v32, %v128_v32 }
 0x118   :  { %v132_v34 = vsel %vm30_vm0, %v130_v33, 0.0 }
 0x119   :  { %133 = vadd.xlane.f32.xlu1 %v132_v34  ;;  %v118_v35 = vpop.xlane.xlu0 %117 }
 0x11a   :  { %v127_v36 = vmul.f32 %v125_v29, %v118_v35 }
 0x11c   :  { %v129_v37 = vsub.f32 %v110_v21, %v127_v36 }
 0x11e   :  { %v131_v38 = vmul.f32 %v129_v37, %v129_v37 }
 0x120   :  { %v135_v39 = vsel %vm30_vm0, %v131_v38, 0.0 }
 0x121   :  { %136 = vadd.xlane.f32.xlu1 %v135_v39 }
 0x18c   :  { %v134_v40 = vpop.xlane.xlu1 %133 }
 0x18d   :  { %v138_v41 = vmul.f32 %v134_v40, %v125_v29 }
 0x18f   :  { %v140_v42 = vadd.f32 1e-05, %v138_v41 }
 0x191   :  { %222 = vrsqrt.f32 %v140_v42  ;;  %vm148_vm3 = vweird.f32 %v140_v42 }
 0x194   :  { %v137_v43 = vpop.xlane.xlu1 %136 }
 0x195   :  { %v139_v44 = vmul.f32 %v137_v43, %v125_v29 }
 0x197   :  { %v223_v45 = vpop.eup %222  ;;  %v141_v46 = vadd.f32 1e-05, %v139_v44 }
 0x198   :  { %v143_v47 = vmul.f32 %v223_v45, %v140_v42  ;;  %vm149_vm2 = vweird.f32 %v223_v45 }
 0x199   :  { %224 = vrsqrt.f32 %v141_v46  ;;  %vm150_vm4 = vmor %vm148_vm3, %vm149_vm2  ;;  %vm158_vm7 = vweird.f32 %v141_v46 }
 0x19a   :  { %v144_v48 = vmul.f32 %v223_v45, %v143_v47 }
 0x19c   :  { %v145_v49 = vmul.f32 0.5, %v144_v48 }
 0x19e   :  { %v146_v50 = vsub.f32 1.5, %v145_v49 }
 0x19f   :  { %v225_v51 = vpop.eup %224 }
 0x1a0   :  { %v147_v52 = vmul.f32 %v223_v45, %v146_v50  ;;  %v153_v53 = vmul.f32 %v225_v51, %v141_v46  ;;  %vm159_vm5 = vweird.f32 %v225_v51 }
 0x1a1   :  { %vm160_vm8 = vmor %vm158_vm7, %vm159_vm5 }
 0x1a2   :  { %v151_v55 = vsel %vm150_vm4, %v223_v45, %v147_v52  ;;  %v154_v56 = vmul.f32 %v225_v51, %v153_v53 }
 0x1a3   :  { %v162_v58 = vmul.f32 %v151_v55, %v128_v32 }
 0x1a4   :  { %v155_v59 = vmul.f32 0.5, %v154_v56 }
 0x1a5   :  { %v168_v60 = vmul.f32 %v218_v54, %v162_v58 }
 0x1a6   :  { %v156_v61 = vsub.f32 1.5, %v155_v59 }
 0x1a7   :  { %v174_v62 = vadd.f32 %v219_v57, %v168_v60 }
 0x1a8   :  { %v157_v63 = vmul.f32 %v225_v51, %v156_v61 }
 0x1a9   :  { %v176_v0 = vpack.c.bf16 %v174_v62, %v174_v62 }
 0x1aa   :  { %v161_v1 = vsel %vm160_vm8, %v225_v51, %v157_v63 }
 0x1ab   :  { %179 = vst.msk [vmem:[%s328_s7] sm:$0xf] %vm178_vm6, %v176_v0  ;;  %v163_v2 = vmul.f32 %v161_v1, %v129_v37 }
 0x1ad   :  { %v169_v3 = vmul.f32 %v218_v54, %v163_v2 }
 0x1af   :  { %v175_v4 = vadd.f32 %v219_v57, %v169_v3 }
 0x1b1   :  { %v177_v5 = vpack.c.bf16 %v175_v4, %v175_v4 }
 0x1b3   :  { %180 = vst.msk [vmem:[%s328_s7 + $0x4] sm:$0xf] %vm178_vm6, %v177_v5 }

// kernel: gpt2_forward.16
= control target key start
LH: loop header
LB: loop body
LE: loop exit
PB: predicated region body
PF: predicated region fallthrough
CT: control target
= control target key end

     0   :  { %vm16_vm0 = vcmask 523264   ;;  %v98_v4 = vmov 64.0   ;;  %vm82_vm6 = vcmask 519168   ;;  %s141_s0 = inlined_call_operand.vmem [shape: f32[16,64], index: 0, kind: input, shape index: {}]   ;;  %s142_s1 = inlined_call_operand.vmem [shape: f32[1,64], index: 1, kind: input, shape index: {}]   ;;  %s143_s2 = inlined_call_operand.vmem [shape: f32[1,64], index: 2, kind: input, shape index: {}]   ;;  %s144_s3 = inlined_call_operand.vmem [shape: bf16[16,64], index: 3, kind: output, shape index: {}]  }
   0x1   :  { %v14_v0 = vld [vmem:[%s141_s0] sm:$0xff]  ;;  %v15_v2 = vld [vmem:[%s141_s0 + $0x8] sm:$0xff]  ;;  %92 = vrcp.f32 %v98_v4 }
   0x2   :  { %v17_v1 = vsel %vm16_vm0, %v14_v0, 0.0  ;;  %v20_v3 = vsel %vm16_vm0, %v15_v2, 0.0  ;;  %v90_v35 = vld [vmem:[%s142_s1] ss:$0 sm:$0xff] }
   0x3   :  { %18 = vadd.xlane.f32.xlu0 %v17_v1  ;;  %v91_v38 = vld [vmem:[%s143_s2] ss:$0 sm:$0xff] }
   0x7   :  { %v93_v5 = vpop.eup %92 }
   0x8   :  { %v24_v6 = vmul.f32 64.0, %v93_v5  ;;  %vm28_vm1 = vweird.f32 %v93_v5 }
   0xa   :  { %v25_v7 = vsub.f32 1.0, %v24_v6 }
   0xb   :  { %21 = vadd.xlane.f32.xlu0 %v20_v3 }
   0xc   :  { %v26_v8 = vmul.f32 %v93_v5, %v25_v7 }
   0xe   :  { %v27_v9 = vadd.f32 %v93_v5, %v26_v8 }
  0x10   :  { %v29_v10 = vsel %vm28_vm1, %v93_v5, %v27_v9 }
  0x76   :  { %v19_v11 = vpop.xlane.xlu0 %18 }
  0x77   :  { %v30_v12 = vmul.f32 %v29_v10, %v19_v11 }
  0x79   :  { %v32_v13 = vsub.f32 %v14_v0, %v30_v12 }
  0x7b   :  { %v34_v14 = vmul.f32 %v32_v13, %v32_v13 }
  0x7d   :  { %v36_v15 = vsel %vm16_vm0, %v34_v14, 0.0 }
  0x7e   :  { %37 = vadd.xlane.f32.xlu1 %v36_v15  ;;  %v22_v16 = vpop.xlane.xlu0 %21 }
  0x7f   :  { %v31_v17 = vmul.f32 %v29_v10, %v22_v16 }
  0x81   :  { %v33_v18 = vsub.f32 %v15_v2, %v31_v17 }
  0x83   :  { %v35_v19 = vmul.f32 %v33_v18, %v33_v18 }
  0x85   :  { %v39_v20 = vsel %vm16_vm0, %v35_v19, 0.0 }
  0x86   :  { %40 = vadd.xlane.f32.xlu1 %v39_v20 }
  0xf1   :  { %v38_v21 = vpop.xlane.xlu1 %37 }
  0xf2   :  { %v42_v22 = vmul.f32 %v38_v21, %v29_v10 }
  0xf4   :  { %v44_v23 = vadd.f32 1e-05, %v42_v22 }
  0xf6   :  { %94 = vrsqrt.f32 %v44_v23  ;;  %vm52_vm3 = vweird.f32 %v44_v23 }
  0xf9   :  { %v41_v24 = vpop.xlane.xlu1 %40 }
  0xfa   :  { %v43_v25 = vmul.f32 %v41_v24, %v29_v10 }
  0xfc   :  { %v95_v26 = vpop.eup %94  ;;  %v45_v27 = vadd.f32 1e-05, %v43_v25 }
  0xfd   :  { %v47_v28 = vmul.f32 %v95_v26, %v44_v23  ;;  %vm53_vm2 = vweird.f32 %v95_v26 }
  0xfe   :  { %96 = vrsqrt.f32 %v45_v27  ;;  %vm54_vm4 = vmor %vm52_vm3, %vm53_vm2  ;;  %vm62_vm7 = vweird.f32 %v45_v27 }
  0xff   :  { %v48_v29 = vmul.f32 %v95_v26, %v47_v28 }
 0x101   :  { %v49_v30 = vmul.f32 0.5, %v48_v29 }
 0x103   :  { %v50_v31 = vsub.f32 1.5, %v49_v30 }
 0x104   :  { %v97_v32 = vpop.eup %96 }
 0x105   :  { %v51_v33 = vmul.f32 %v95_v26, %v50_v31  ;;  %v57_v34 = vmul.f32 %v97_v32, %v45_v27  ;;  %vm63_vm5 = vweird.f32 %v97_v32 }
 0x106   :  { %vm64_vm8 = vmor %vm62_vm7, %vm63_vm5 }
 0x107   :  { %v55_v36 = vsel %vm54_vm4, %v95_v26, %v51_v33  ;;  %v58_v37 = vmul.f32 %v97_v32, %v57_v34 }
 0x108   :  { %v66_v39 = vmul.f32 %v55_v36, %v32_v13 }
 0x109   :  { %v59_v40 = vmul.f32 0.5, %v58_v37 }
 0x10a   :  { %v72_v41 = vmul.f32 %v90_v35, %v66_v39 }
 0x10b   :  { %v60_v42 = vsub.f32 1.5, %v59_v40 }
 0x10c   :  { %v78_v43 = vadd.f32 %v91_v38, %v72_v41 }
 0x10d   :  { %v61_v44 = vmul.f32 %v97_v32, %v60_v42 }
 0x10e   :  { %v80_v45 = vpack.c.bf16 %v78_v43, %v78_v43 }
 0x10f   :  { %v65_v46 = vsel %vm64_vm8, %v97_v32, %v61_v44 }
 0x110   :  { %83 = vst.msk [vmem:[%s144_s3] sm:$0xf] %vm82_vm6, %v80_v45  ;;  %v67_v47 = vmul.f32 %v65_v46, %v33_v18 }
 0x112   :  { %v73_v48 = vmul.f32 %v90_v35, %v67_v47 }
 0x114   :  { %v79_v49 = vadd.f32 %v91_v38, %v73_v48 }
 0x116   :  { %v81_v50 = vpack.c.bf16 %v79_v49, %v79_v49 }
 0x118   :  { %84 = vst.msk [vmem:[%s144_s3 + $0x4] sm:$0xf] %vm82_vm6, %v81_v50 }

// kernel: gpt2_forward.20
= control target key start
LH: loop header
LB: loop body
LE: loop exit
PB: predicated region body
PF: predicated region fallthrough
CT: control target
= control target key end

     0   :  { %s1993_s12 = smov 0   ;;  %s1995_s13 = smov 0   ;;  %s2366_s0 = inlined_call_operand.vmem [shape: bf16[2,8,64], index: 0, kind: input, shape index: {}]   ;;  %s2367_s1 = inlined_call_operand.vmem [shape: bf16[2,8,64], index: 1, kind: input, shape index: {}]   ;;  %s2368_s2 = inlined_call_operand.vmem [shape: bf16[2,8,64], index: 2, kind: input, shape index: {}]   ;;  %s2369_s3 = inlined_call_operand.vmem [shape: bf16[2,8,64], index: 3, kind: output, shape index: {}]  }
   0x1   :  { %s1997_s14 = smov 0  }
   0x2 LB: > { %s32_s15 = sadd.s32 1, %s1956_s13  ;;  %p1825_p0 = scmp.ge.s32.totalorder %s1960_s14, 1  ;;  %s1960_s14 = sphi %s1997_s14, %s13_s14   ;;  %s1956_s13 = sphi %s1995_s13, %s2371_s13   ;;  %s1952_s12 = sphi %s1993_s12, %s2370_s12  }
   0x3   : > { %p34_p1 = scmp.ge.s32.totalorder %s32_s15, 2  ;;  %p190_p2 = scmp.lt.s32.totalorder %s1960_s14, 3 }
   0x5   : > { %s2373_s15 = smov (%p34_p1, %s32_s15), 0  ;;  %p191_p3 = pnand %p1825_p0, %p190_p2 }
   0x6   : > { %p232_p4 = scmp.lt.s32.totalorder (!%p191_p3), %s1952_s12, 1  ;;  %s1962_s23 = smov (!%p191_p3), 112  }
   0x7   : > { %194 = sbr.rel (%p191_p3) target bundleno = 1374 (0x55e), region = 32  ;;  %s1963_s24 = smov (!%p191_p3), 80  }
   0x8   : > { %s1964_s25 = smov (!%p191_p3), 96   ;;  %s1970_s29 = smov (!%p191_p3), 48  }
   0x9   : > { %s1971_s30 = smov (!%p191_p3), 32   ;;  %s1972_s4 = smov (!%p191_p3), 16  }
   0xc   : > { %s2375_s12 = smov (!%p232_p4, %s1952_s12), 1  ;;  %v1965_v2 = vmov 1983009808   ;;  %v1966_v13 = vmov 1934713408   ;;  %vm296_vm0 = vcmask 1047556  }
   0xd   : > { %s2011_s16 = sshll.u32 %s2375_s12, 2  ;;  %v287_v3 = vunpack.c.l.s4 %v1965_v2  ;;  %v301_v14 = vunpack.c.l.s4 %v1966_v13  ;;  %vm338_vm1 = vcmask 123904   ;;  %vm356_vm2 = vcmask 130048  }
   0xe   : > { %s245_s19 = scalar_lea.vmem %s2367_s1, %s2011_s16  ;;  %s238_s22 = scalar_lea.vmem %s2366_s0, %s2011_s16  ;;  %vm1283_vm3 = vcmask 64512   ;;  %vm347_vm4 = vcmask 7168   ;;  %vm1430_vm5 = vcmask 1043456   ;;  %vm1707_vm6 = vcmask 261120  }
   0xf   : > { %v361_v0 = vld [vmem:[%s245_s19] sm:$0xf]  ;;  %v2027_v8 = vunpack.c.0.s8 %v287_v3  ;;  %v2031_v26 = vunpack.c.0.s8 %v301_v14  ;;  %s252_s28 = scalar_lea.vmem %s2368_s2, %s2011_s16  ;;  %vm1709_vm7 = vcmask 392192   ;;  %s259_s7 = scalar_lea.vmem %s2369_s3, %s2011_s16  ;;  %vm1712_vm8 = vcmask 519168  }
  0x10   : > { %363 = vrot.lane.b32.xlu0 %v361_v0, %s1962_s23  ;;  %367 = vrot.lane.b32.xlu1 %v361_v0, %s1963_s24  ;;  %v265_v1 = vld [vmem:[%s238_s22] sm:$0xf]  ;;  %v372_v5 = vshrl.u32 %v361_v0, 16 }
  0x11   : > { %269 = vrot.lane.b32.xlu2 %v265_v1, %s1964_s25  ;;  %v276_v20 = vshrl.u32 %v265_v1, 16 }
  0x18   : > { %365 = vrot.lane.b32.xlu0 %v361_v0, %s1964_s25  ;;  %267 = vrot.lane.b32.xlu1 %v265_v1, %s1962_s23 }
  0x19   : > { %271 = vrot.lane.b32.xlu2 %v265_v1, %s1963_s24 }
  0x6b   : > { %v270_v10 = vpop.permute.xlu2 %269 }
  0x6c   : > { %v282_v18 = vshrl.u32 %v270_v10, 16 }
  0x73   : > { %v272_v27 = vpop.permute.xlu2 %271 }
  0x74   : > { %v281_v30 = vpack.i.b16 %v272_v27, %v270_v10  ;;  %v283_v31 = vshrl.u32 %v272_v27, 16 }
  0x76   : > { %v284_v38 = vpack.i.b16 %v283_v31, %v282_v18  ;;  %v294_v40 = vperm.slane %v281_v30, %v2027_v8 }
  0x78   : > { %v321_v46 = vperm.slane %v284_v38, %v2027_v8  ;;  %v295_v49 = vrot.slane %v294_v40, 4 }
  0x7a   : > { %v322_v51 = vrot.slane %v321_v46, 4 }
  0x82   : > { %v364_v4 = vpop.permute.xlu0 %363  ;;  %v368_v6 = vpop.permute.xlu1 %367 }
  0x83   : > { %v373_v7 = vshrl.u32 %v364_v4, 16  ;;  %v371_v9 = vpack.i.b16 %v364_v4, %v361_v0  ;;  %v379_v15 = vshrl.u32 %v368_v6, 16 }
  0x85   : > { %v374_v11 = vpack.i.b16 %v373_v7, %v372_v5  ;;  %v385_v12 = vperm.slane %v371_v9, %v2027_v8 }
  0x87   : > { %v412_v16 = vperm.slane %v374_v11, %v2027_v8  ;;  %v394_v25 = vrot.slane %v385_v12, 4 }
  0x89   : > { %v420_v32 = vrot.slane %v412_v16, 4 }
  0x8a   : > { %v366_v17 = vpop.permute.xlu0 %365  ;;  %v268_v19 = vpop.permute.xlu1 %267 }
  0x8b   : > { %v377_v21 = vpack.i.b16 %v368_v6, %v366_v17  ;;  %v378_v22 = vshrl.u32 %v366_v17, 16  ;;  %v275_v23 = vpack.i.b16 %v268_v19, %v265_v1  ;;  %v277_v24 = vshrl.u32 %v268_v19, 16 }
  0x8d   : > { %v380_v28 = vpack.i.b16 %v379_v15, %v378_v22  ;;  %v390_v29 = vperm.slane %v377_v21, %v2027_v8  ;;  %v278_v33 = vpack.i.b16 %v277_v24, %v276_v20  ;;  %v289_v34 = vperm.slane %v275_v23, %v2027_v8 }
  0x8f   : > { %v391_v35 = vrot.slane %v390_v29, 4  ;;  %v417_v36 = vperm.slane %v380_v28, %v2027_v8  ;;  %v395_v37 = vsel %vm296_vm0, %v390_v29, %v394_v25  ;;  %v298_v41 = vrot.slane %v289_v34, 4 }
  0x90   : > { %v403_v39 = vperm.slane %v395_v37, %v2031_v26  ;;  %v316_v42 = vperm.slane %v278_v33, %v2027_v8  ;;  %v297_v57 = vsel %vm296_vm0, %v295_v49, %v289_v34 }
  0x91   : > { %v418_v43 = vrot.slane %v417_v36, 4  ;;  %v421_v44 = vsel %vm296_vm0, %v417_v36, %v420_v32  ;;  %v393_v45 = vsel %vm296_vm0, %v391_v35, %v385_v12  ;;  %v299_v52 = vsel %vm296_vm0, %v294_v40, %v298_v41 }
  0x92   : > { %v429_v47 = vperm.slane %v421_v44, %v2031_v26  ;;  %v406_v48 = vrot.slane %v403_v39, 4  ;;  %v324_v53 = vrot.slane %v316_v42, 4  ;;  %v399_v54 = vperm.slane %v393_v45, %v2031_v26 }
  0x93   : > { %v419_v50 = vsel %vm296_vm0, %v418_v43, %v412_v16  ;;  %v307_v58 = vperm.slane %v299_v52, %v2031_v26  ;;  %v323_v59 = vsel %vm296_vm0, %v322_v51, %v316_v42  ;;  %v303_v63 = vperm.slane %v297_v57, %v2031_v26 }
  0x94   : > { %1875 = vxpose.binary.xlu0.c.b16.start.end [1/2] (short) (narrow) %v429_v47, %v403_v39, 16  ;;  %v425_v55 = vperm.slane %v419_v50, %v2031_v26  ;;  %v432_v56 = vrot.slane %v429_v47, 4  ;;  %v325_v60 = vsel %vm296_vm0, %v321_v46, %v324_v53  ;;  %v407_v61 = vsel %vm296_vm0, 0, %v406_v48 }
  0x95   : > { %v310_v0 = vrot.slane %v307_v58, 4  ;;  %v329_v1 = vperm.slane %v323_v59, %v2031_v26  ;;  %v333_v2 = vperm.slane %v325_v60, %v2031_v26  ;;  %343 = vst.msk [vmem:[#allocation2 + $0x8] sm:$0x3] %vm338_vm1, %v307_v58  ;;  %v308_v3 = vrot.slane %v303_v63, 4 }
  0x96   : > { %1878 = vxpose.binary.xlu1.c.b16.start.end [1/2] (short) (narrow) %v425_v55, %v399_v54, 16  ;;  %v433_v62 = vsel %vm296_vm0, 0, %v432_v56  ;;  %339 = vst.msk [vmem:[#allocation2] sm:$0x3] %vm338_vm1, %v303_v63  ;;  %v404_v11 = vrot.slane %v399_v54, 4  ;;  %v430_v12 = vrot.slane %v425_v55, 4 }
  0x97   : > { %1881 = vxpose.binary.xlu2.c.b16.start.end [1/2] (short) (narrow) %v433_v62, %v407_v61, 16  ;;  %v334_v4 = vrot.slane %v329_v1, 4  ;;  %v336_v5 = vrot.slane %v333_v2, 4  ;;  %340 = vst.msk [vmem:[#allocation2 + $0x2] sm:$0x3] %vm338_vm1, %v329_v1  ;;  %v309_v6 = vsel %vm296_vm0, 0, %v308_v3 }
  0x98   : > { %v311_v7 = vsel %vm296_vm0, 0, %v310_v0  ;;  %344 = vst.msk [vmem:[#allocation2 + $0xa] sm:$0x3] %vm338_vm1, %v333_v2  ;;  %v405_v13 = vsel %vm296_vm0, 0, %v404_v11  ;;  %v431_v14 = vsel %vm296_vm0, 0, %v430_v12 }
  0x99   : > { %v335_v9 = vsel %vm296_vm0, 0, %v334_v4  ;;  %v337_v10 = vsel %vm296_vm0, 0, %v336_v5  ;;  %341 = vst.msk [vmem:[#allocation2 + $0x4] sm:$0x3] %vm338_vm1, %v309_v6 }
  0x9a   : > { %342 = vst.msk [vmem:[#allocation2 + $0x6] sm:$0x3] %vm338_vm1, %v335_v9 }
  0x9b   : > { %345 = vst.msk [vmem:[#allocation2 + $0xc] sm:$0x3] %vm338_vm1, %v311_v7 }
  0x9c   : > { %346 = vst.msk [vmem:[#allocation2 + $0xe] sm:$0x3] %vm338_vm1, %v337_v10  ;;  %v510_v24 = vld [vmem:[#allocation2 + $0x8] sm:$0x3] }
  0x9d   : > { %v506_v22 = vld [vmem:[#allocation2] sm:$0x3] }
  0x9e   : > { %v507_v23 = vld [vmem:[#allocation2 + $0x2] sm:$0x3] }
  0x9f   : > { %v511_v25 = vld [vmem:[#allocation2 + $0xa] sm:$0x3] }
  0xa0   : > { %v508_v15 = vld [vmem:[#allocation2 + $0x4] sm:$0x3] }
  0xa1   : > { %v509_v16 = vld [vmem:[#allocation2 + $0x6] sm:$0x3]  ;;  %v514_v19 = vrot.slane %v508_v15, 4 }
  0xa2   : > { %v512_v17 = vld [vmem:[#allocation2 + $0xc] sm:$0x3]  ;;  %v522_v20 = vrot.slane %v509_v16, 4 }
  0xa3   : > { %v513_v18 = vld [vmem:[#allocation2 + $0xe] sm:$0x3]  ;;  %v530_v21 = vrot.slane %v512_v17, 4  ;;  %v515_v27 = vsel %vm296_vm0, %v514_v19, %v506_v22 }
  0xa4   : > { %1884 = vxpose.binary.xlu0.c.b16.start.end [1/2] (short) (narrow) %v431_v14, %v405_v13, 16  ;;  %v523_v28 = vsel %vm296_vm0, %v522_v20, %v507_v23  ;;  %v538_v30 = vrot.slane %v513_v18, 4  ;;  %v519_v31 = vperm.slane %v515_v27, %v2031_v26 }
  0xa5   : > { %v531_v29 = vsel %vm296_vm0, %v530_v21, %v510_v24  ;;  %v527_v32 = vperm.slane %v523_v28, %v2031_v26 }
  0xa6   : > { %v535_v33 = vperm.slane %v531_v29, %v2031_v26  ;;  %v539_v34 = vsel %vm296_vm0, %v538_v30, %v511_v25  ;;  %v549_v38 = vshrl.u32 %v519_v31, 16  ;;  %v520_v45 = vrot.slane %v519_v31, 4 }
  0xa7   : > { %v543_v35 = vperm.slane %v539_v34, %v2031_v26  ;;  %v548_v36 = vpack.i.b16 %v527_v32, %v519_v31  ;;  %v550_v39 = vshrl.u32 %v527_v32, 16  ;;  %v528_v46 = vrot.slane %v527_v32, 4 }
  0xa8   : > { %v561_v40 = vshrl.u32 %v535_v33, 16  ;;  %v536_v47 = vrot.slane %v535_v33, 4  ;;  %v521_v49 = vsel %vm296_vm0, 0, %v520_v45 }
  0xa9   : > { %v560_v37 = vpack.i.b16 %v543_v35, %v535_v33  ;;  %1195 = vst [vmem:[#allocation1] ss:$4 sm:$0xff] %v548_v36  ;;  %v562_v41 = vshrl.u32 %v543_v35, 16  ;;  %v551_v42 = vpack.i.b16 %v550_v39, %v549_v38  ;;  %v544_v48 = vrot.slane %v543_v35, 4 }
  0xaa   : > { %v529_v50 = vsel %vm296_vm0, 0, %v528_v46  ;;  %v537_v51 = vsel %vm296_vm0, 0, %v536_v47  ;;  %v555_v56 = vshrl.u32 %v521_v49, 16 }
  0xab   : > { %1198 = vst [vmem:[#allocation1 + $0x1] ss:$4 sm:$0xff] %v560_v37  ;;  %v563_v43 = vpack.i.b16 %v562_v41, %v561_v40  ;;  %v545_v52 = vsel %vm296_vm0, 0, %v544_v48  ;;  %v554_v53 = vpack.i.b16 %v529_v50, %v521_v49  ;;  %v556_v57 = vshrl.u32 %v529_v50, 16 }
  0xac   : > { %v566_v54 = vpack.i.b16 %v545_v52, %v537_v51  ;;  %v567_v58 = vshrl.u32 %v537_v51, 16  ;;  %v568_v59 = vshrl.u32 %v545_v52, 16 }
  0xad   : > { %v557_v60 = vpack.i.b16 %v556_v57, %v555_v56 }
  0xae   : > { %v569_v61 = vpack.i.b16 %v568_v59, %v567_v58 }
  0xb2   : > { %v2079_v44 = vld.sshfl [vmem:[#allocation1] sm:$0xff pattern:$0x73625140] }
  0xb3   : > { %1217 = vst [vmem:[#allocation1] ss:$4 sm:$0xff] %v551_v42 }
  0xb4   : > { %1220 = vst [vmem:[#allocation1 + $0x1] ss:$4 sm:$0xff] %v563_v43 }
  0xbb   : > { %v2085_v55 = vld.sshfl [vmem:[#allocation1] sm:$0xff pattern:$0x73625140] }
  0xbc   : > { %1238 = vst [vmem:[#allocation1] ss:$4 sm:$0xff] %v554_v53 }
  0xbd   : > { %1241 = vst [vmem:[#allocation1 + $0x1] ss:$4 sm:$0xff] %v566_v54 }
  0xc4   : > { %v2087_v62 = vld.sshfl [vmem:[#allocation1] sm:$0xff pattern:$0x73625140] }
  0xc5   : > { %1259 = vst [vmem:[#allocation1] ss:$4 sm:$0xff] %v557_v60 }
  0xc6   : > { %1262 = vst [vmem:[#allocation1 + $0x1] ss:$4 sm:$0xff] %v569_v61 }
 0x138   : > { %v1882_v1 = vpop.trf.xlu2 }
 0x139   : > { %v726_v15 = vshrl.u32 %v1882_v1, 16 }
 0x140   : > { %v1876_v63 = vpop.trf.xlu0  ;;  %v1883_v11 = vpop.trf.xlu2 }
 0x141   : > { %v718_v5 = vshrl.u32 %v1876_v63, 16  ;;  %v727_v18 = vshrl.u32 %v1883_v11, 16  ;;  %v724_v20 = vpack.i.b16 %v1883_v11, %v1882_v1 }
 0x142   : > { %v1879_v0 = vpop.trf.xlu1 }
 0x143   : > { %v702_v7 = vshrl.u32 %v1879_v0, 16  ;;  %v728_v22 = vpack.i.b16 %v727_v18, %v726_v15  ;;  %v742_v25 = vrot.slane %v724_v20, 4 }
 0x145   : > { %v798_v31 = vrot.slane %v728_v22, 4 }
 0x148   : > { %v1877_v2 = vpop.trf.xlu0 }
 0x149   : > { %v719_v3 = vshrl.u32 %v1877_v2, 16  ;;  %v716_v6 = vpack.i.b16 %v1877_v2, %v1876_v63 }
 0x14a   : > { %v1880_v4 = vpop.trf.xlu1 }
 0x14b   : > { %v720_v9 = vpack.i.b16 %v719_v3, %v718_v5  ;;  %v703_v10 = vshrl.u32 %v1880_v4, 16  ;;  %v730_v13 = vrot.slane %v716_v6, 4  ;;  %v700_v14 = vpack.i.b16 %v1880_v4, %v1879_v0 }
 0x14d   : > { %v786_v16 = vrot.slane %v720_v9, 4  ;;  %v704_v17 = vpack.i.b16 %v703_v10, %v702_v7  ;;  %v731_v19 = vsel %vm296_vm0, %v730_v13, %v700_v14  ;;  %v732_v35 = vrot.slane %v700_v14, 4 }
 0x14e   : > { %v737_v23 = vperm.slane %v731_v19, %v2027_v8 }
 0x14f   : > { %v787_v21 = vsel %vm296_vm0, %v786_v16, %v704_v17  ;;  %v788_v38 = vrot.slane %v704_v17, 4  ;;  %v733_v54 = vsel %vm296_vm0, %v716_v6, %v732_v35 }
 0x150   : > { %v1885_v12 = vpop.trf.xlu0  ;;  %v793_v30 = vperm.slane %v787_v21, %v2027_v8  ;;  %v756_v36 = vrot.slane %v737_v23, 4  ;;  %v741_v2 = vperm.slane %v733_v54, %v2027_v8 }
 0x151   : > { %v710_v27 = vshrl.u32 %v1885_v12, 16  ;;  %v789_v56 = vsel %vm296_vm0, %v720_v9, %v788_v38 }
 0x152   : > { %v812_v46 = vrot.slane %v793_v30, 4  ;;  %v797_v3 = vperm.slane %v789_v56, %v2027_v8  ;;  %v768_v9 = vrot.slane %v741_v2, 4 }
 0x154   : > { %v824_v10 = vrot.slane %v797_v3, 4 }
 0x158   : > { %v1886_v24 = vpop.trf.xlu0 }
 0x159   : > { %v708_v28 = vpack.i.b16 %v1886_v24, %v1885_v12  ;;  %v711_v29 = vshrl.u32 %v1886_v24, 16 }
 0x15b   : > { %v712_v32 = vpack.i.b16 %v711_v29, %v710_v27  ;;  %v743_v33 = vsel %vm296_vm0, %v742_v25, %v708_v28  ;;  %v744_v34 = vrot.slane %v708_v28, 4 }
 0x15c   : > { %v749_v37 = vperm.slane %v743_v33, %v2027_v8 }
 0x15d   : > { %v745_v39 = vsel %vm296_vm0, %v724_v20, %v744_v34  ;;  %v799_v40 = vsel %vm296_vm0, %v798_v31, %v712_v32  ;;  %v800_v41 = vrot.slane %v712_v32, 4 }
 0x15e   : > { %v754_v42 = vrot.slane %v749_v37, 4  ;;  %v805_v43 = vperm.slane %v799_v40, %v2027_v8  ;;  %v757_v45 = vsel %vm296_vm0, %v749_v37, %v756_v36  ;;  %v753_v47 = vperm.slane %v745_v39, %v2027_v8 }
 0x15f   : > { %v801_v48 = vsel %vm296_vm0, %v728_v22, %v800_v41  ;;  %v765_v49 = vperm.slane %v757_v45, %v2031_v26 }
 0x160   : > { %v809_v50 = vperm.slane %v801_v48, %v2027_v8  ;;  %v813_v51 = vsel %vm296_vm0, %v805_v43, %v812_v46  ;;  %v755_v52 = vsel %vm296_vm0, %v754_v42, %v737_v23  ;;  %v810_v53 = vrot.slane %v805_v43, 4 }
 0x161   : > { %v821_v57 = vperm.slane %v813_v51, %v2031_v26  ;;  %v780_v58 = vrot.slane %v765_v49, 4  ;;  %v761_v59 = vperm.slane %v755_v52, %v2031_v26  ;;  %v766_v0 = vrot.slane %v753_v47, 4 }
 0x162   : > { %v811_v60 = vsel %vm296_vm0, %v810_v53, %v793_v30  ;;  %v822_v1 = vrot.slane %v809_v50, 4  ;;  %v769_v13 = vsel %vm296_vm0, %v753_v47, %v768_v9  ;;  %v825_v14 = vsel %vm296_vm0, %v809_v50, %v824_v10  ;;  %v2134_v47 = vld [vmem:[%s252_s28] sm:$0xf] }
 0x163   : > { %1887 = vxpose.binary.xlu1.c.b16.start.end [1/2] (short) (narrow) %v821_v57, %v765_v49, 16  ;;  %v817_v61 = vperm.slane %v811_v60, %v2031_v26  ;;  %v836_v63 = vrot.slane %v821_v57, 4  ;;  %v781_v4 = vsel %vm296_vm0, 0, %v780_v58  ;;  %v767_v6 = vsel %vm296_vm0, %v766_v0, %v741_v2 }
 0x164   : > { %v823_v7 = vsel %vm296_vm0, %v822_v1, %v797_v3  ;;  %v773_v11 = vperm.slane %v767_v6, %v2031_v26  ;;  %v777_v15 = vperm.slane %v769_v13, %v2031_v26  ;;  %v833_v16 = vperm.slane %v825_v14, %v2031_v26 }
 0x165   : > { %1890 = vxpose.binary.xlu0.c.b16.start.end [1/2] (short) (narrow) %v817_v61, %v761_v59, 16  ;;  %v837_v5 = vsel %vm296_vm0, 0, %v836_v63  ;;  %v829_v12 = vperm.slane %v823_v7, %v2031_v26  ;;  %v778_v19 = vrot.slane %v761_v59, 4  ;;  %v834_v20 = vrot.slane %v817_v61, 4 }
 0x166   : > { %1893 = vxpose.binary.xlu2.c.b16.start.end [1/2] (short) (narrow) %v837_v5, %v781_v4, 16  ;;  %v782_v17 = vrot.slane %v773_v11, 4  ;;  %v784_v21 = vrot.slane %v777_v15, 4  ;;  %v840_v22 = vrot.slane %v833_v16, 4 }
 0x167   : > { %v838_v18 = vrot.slane %v829_v12, 4  ;;  %v779_v25 = vsel %vm296_vm0, 0, %v778_v19  ;;  %v835_v27 = vsel %vm296_vm0, 0, %v834_v20 }
 0x168   : > { %v783_v23 = vsel %vm296_vm0, 0, %v782_v17  ;;  %v785_v28 = vsel %vm296_vm0, 0, %v784_v21  ;;  %v841_v29 = vsel %vm296_vm0, 0, %v840_v22 }
 0x169   : > { %v839_v24 = vsel %vm296_vm0, 0, %v838_v18 }
 0x173   : > { %1902 = vxpose.binary.xlu1.c.b16.start.end [1/2] (short) (narrow) %v839_v24, %v783_v23, 16 }
 0x175   : > { %1899 = vxpose.binary.xlu0.c.b16.start.end [1/2] (short) (narrow) %v835_v27, %v779_v25, 16 }
 0x176   : > { %1896 = vxpose.binary.xlu2.c.b16.start.end [1/2] (short) (narrow) %v841_v29, %v785_v28, 16 }
 0x185   : > { %1908 = vxpose.binary.xlu0.c.b16.start.end [1/2] (short) (narrow) %v829_v12, %v773_v11, 16 }
 0x186   : > { %1905 = vxpose.binary.xlu2.c.b16.start.end [1/2] (short) (narrow) %v833_v16, %v777_v15, 16 }
 0x1cd   : > { %436 = vrot.lane.b32.xlu1 %v2134_v47, %s1962_s23 }
 0x207   : > { %v1894_v30 = vpop.trf.xlu2 }
 0x208   : > { %v1104_v40 = vrot.slane %v1894_v30, 4 }
 0x20f   : > { %v1895_v31 = vpop.trf.xlu2  ;;  %v1888_v33 = vpop.trf.xlu1 }
 0x210   : > { %v1144_v45 = vrot.slane %v1895_v31, 4  ;;  %v1098_v48 = vrot.slane %v1888_v33, 4 }
 0x211   : > { %v1891_v32 = vpop.trf.xlu0 }
 0x212   : > { %v1099_v57 = vsel %vm296_vm0, %v1098_v48, %v1891_v32 }
 0x213   : > { %v1103_v1 = vperm.slane %v1099_v57, %v2027_v8 }
 0x217   : > { %v1897_v34 = vpop.trf.xlu2  ;;  %v1889_v36 = vpop.trf.xlu1 }
 0x218   : > { %v1116_v41 = vrot.slane %v1897_v34, 4  ;;  %v1138_v52 = vrot.slane %v1889_v36, 4 }
 0x219   : > { %v1892_v35 = vpop.trf.xlu0 }
 0x21a   : > { %v1139_v63 = vsel %vm296_vm0, %v1138_v52, %v1892_v35 }
 0x21b   : > { %v1143_v7 = vperm.slane %v1139_v63, %v2027_v8 }
 0x21f   : > { %v1898_v37 = vpop.trf.xlu2  ;;  %v1903_v39 = vpop.trf.xlu1 }
 0x220   : > { %v1117_v49 = vsel %vm296_vm0, %v1116_v41, %v1903_v39  ;;  %v1156_v58 = vrot.slane %v1898_v37, 4 }
 0x221   : > { %v1900_v38 = vpop.trf.xlu0  ;;  %v1121_v54 = vperm.slane %v1117_v49, %v2027_v8 }
 0x222   : > { %v1105_v46 = vsel %vm296_vm0, %v1104_v40, %v1900_v38  ;;  %v1263_v40 = vld.sshfl [vmem:[#allocation1] sm:$0xff pattern:$0x73625140] }
 0x223   : > { %v1109_v51 = vperm.slane %v1105_v46, %v2027_v8  ;;  %v1128_v2 = vrot.slane %v1121_v54, 4  ;;  %v1969_v54 = vmov 0.0  }
 0x224   : > { %352 = vst.msk [vmem:[#allocation4] sm:$0xff] %vm347_vm4, %v1969_v54 }
 0x225   : > { %v1122_v59 = vrot.slane %v1109_v51, 4  ;;  %353 = vst.msk [vmem:[#allocation4 + $0x8] sm:$0xff] %vm347_vm4, %v1969_v54 }
 0x226   : > { %354 = vst.msk [vmem:[#allocation4 + $0x10] sm:$0xff] %vm347_vm4, %v1969_v54 }
 0x227   : > { %v1906_v43 = vpop.trf.xlu2  ;;  %v1904_v60 = vpop.trf.xlu1  ;;  %v1123_v9 = vsel %vm296_vm0, %v1122_v59, %v1103_v1  ;;  %355 = vst.msk [vmem:[#allocation4 + $0x18] sm:$0xff] %vm347_vm4, %v1969_v54 }
 0x228   : > { %v1110_v53 = vrot.slane %v1906_v43, 4  ;;  %v1157_v6 = vsel %vm296_vm0, %v1156_v58, %v1904_v60  ;;  %v1127_v14 = vperm.slane %v1123_v9, %v2031_v26  ;;  %v1967_v43 = vmov -inf   ;;  %357 = vst.msk [vmem:[#allocation5] sm:$0xff] %vm356_vm2, %v1969_v54 }
 0x229   : > { %v1901_v42 = vpop.trf.xlu0  ;;  %v1161_v12 = vperm.slane %v1157_v6, %v2027_v8  ;;  %348 = vst.msk [vmem:[#allocation3] sm:$0xff] %vm347_vm4, %v1967_v43 }
 0x22a   : > { %v1145_v50 = vsel %vm296_vm0, %v1144_v45, %v1901_v42  ;;  %v1136_v21 = vrot.slane %v1127_v14, 4  ;;  %349 = vst.msk [vmem:[#allocation3 + $0x8] sm:$0xff] %vm347_vm4, %v1967_v43 }
 0x22b   : > { %v1149_v56 = vperm.slane %v1145_v50, %v2027_v8  ;;  %v1168_v19 = vrot.slane %v1161_v12, 4  ;;  %350 = vst.msk [vmem:[#allocation3 + $0x10] sm:$0xff] %vm347_vm4, %v1967_v43 }
 0x22c   : > { %351 = vst.msk [vmem:[#allocation3 + $0x18] sm:$0xff] %vm347_vm4, %v1967_v43 }
 0x22d   : > { %v1162_v3 = vrot.slane %v1149_v56, 4  ;;  %358 = vst.msk [vmem:[#allocation5 + $0x8] sm:$0xff] %vm356_vm2, %v1969_v54 }
 0x22e   : > { %359 = vst.msk [vmem:[#allocation5 + $0x10] sm:$0xff] %vm356_vm2, %v1969_v54 }
 0x22f   : > { %v1907_v5 = vpop.trf.xlu2  ;;  %v1163_v13 = vsel %vm296_vm0, %v1162_v3, %v1143_v7  ;;  %360 = vst.msk [vmem:[#allocation5 + $0x18] sm:$0xff] %vm356_vm2, %v1969_v54 }
 0x230   : > { %v1150_v11 = vrot.slane %v1907_v5, 4  ;;  %v1167_v18 = vperm.slane %v1163_v13, %v2031_v26  ;;  %v2204_v57 = vld [vmem:[#allocation3] sm:$0xff] }
 0x231   : > { %v1909_v61 = vpop.trf.xlu0  ;;  %v2206_v59 = vld [vmem:[#allocation3 + $0x8] sm:$0xff] }
 0x232   : > { %v1111_v0 = vsel %vm296_vm0, %v1110_v53, %v1909_v61  ;;  %v1176_v27 = vrot.slane %v1167_v18, 4  ;;  %v1968_v53 = vmov 0   ;;  %v2228_v5 = vld [vmem:[#allocation3 + $0x10] sm:$0xff] }
 0x233   : > { %v1115_v4 = vperm.slane %v1111_v0, %v2027_v8  ;;  %1911 = vset.pattern.permute.xlu2 %v1968_v53  ;;  %1912 = vset.pattern.permute.xlu1 %v1968_v53  ;;  %v2219_v1 = vld [vmem:[#allocation3 + $0x18] sm:$0xff] }
 0x234   : > { %1913 = vset.pattern.permute.xlu0 %v1968_v53 }
 0x235   : > { %v1129_v10 = vsel %vm296_vm0, %v1128_v2, %v1115_v4 }
 0x236   : > { %v1133_v15 = vperm.slane %v1129_v10, %v2031_v26  ;;  %v445_v10 = vshrl.u32 %v2134_v47, 16 }
 0x238   : > { %v1134_v22 = vrot.slane %v1133_v15, 4  ;;  %v1137_v24 = vsel %vm296_vm0, %v1133_v15, %v1136_v21 }
 0x239   : > { %v1910_v16 = vpop.trf.xlu0  ;;  %v1190_v32 = vshrl.u32 %v1137_v24, 16 }
 0x23a   : > { %v1151_v17 = vsel %vm296_vm0, %v1150_v11, %v1910_v16  ;;  %v1135_v29 = vsel %vm296_vm0, %v1134_v22, %v1127_v14 }
 0x23b   : > { %v1155_v20 = vperm.slane %v1151_v17, %v2027_v8  ;;  %v1182_v37 = vshrl.u32 %v1135_v29, 16 }
 0x23d   : > { %v1169_v23 = vsel %vm296_vm0, %v1168_v19, %v1155_v20 }
 0x23e   : > { %v1173_v25 = vperm.slane %v1169_v23, %v2031_v26 }
 0x23f   : > { %v437_v56 = vpop.permute.xlu1 %436 }
 0x240   : > { %v1177_v28 = vsel %vm296_vm0, %v1173_v25, %v1176_v27  ;;  %v1174_v30 = vrot.slane %v1173_v25, 4  ;;  %v446_v11 = vshrl.u32 %v437_v56, 16  ;;  %v444_v13 = vpack.i.b16 %v437_v56, %v2134_v47 }
 0x241   : > { %v1188_v31 = vpack.i.b16 %v1177_v28, %v1137_v24  ;;  %v1191_v33 = vshrl.u32 %v1177_v28, 16 }
 0x242   : > { %v1175_v34 = vsel %vm296_vm0, %v1174_v30, %v1167_v18  ;;  %v447_v15 = vpack.i.b16 %v446_v11, %v445_v10  ;;  %v458_v16 = vperm.slane %v444_v13, %v2027_v8 }
 0x243   : > { %1252 = vmatpush.bf16.msra.mxu2 %v1188_v31  ;;  %v1180_v35 = vpack.i.b16 %v1175_v34, %v1135_v29  ;;  %v1192_v36 = vpack.i.b16 %v1191_v33, %v1190_v32  ;;  %v1183_v38 = vshrl.u32 %v1175_v34, 16 }
 0x244   : > { %v484_v19 = vperm.slane %v447_v15, %v2027_v8  ;;  %v466_v22 = vrot.slane %v458_v16, 4 }
 0x245   : > { %1210 = vmatpush.bf16.msra.mxu0 %v1180_v35  ;;  %1273 = vmatpush.bf16.msra.mxu3 %v1192_v36  ;;  %v1184_v39 = vpack.i.b16 %v1183_v38, %v1182_v37 }
 0x246   : > { %1832 = vmatmul.msk.bf16.vlgmr.msra.gmra.mxu2 %vm356_vm2, %v2087_v62  ;;  %v492_v25 = vrot.slane %v484_v19, 4 }
 0x247   : > { %1231 = vmatpush.bf16.msra.mxu1 %v1184_v39 }
 0x248   : > { %1830 = vmatmul.msk.bf16.vlgmr.msra.gmra.mxu0 %vm356_vm2, %v2079_v44  ;;  %1833 = vmatmul.msk.bf16.vlgmr.msra.gmra.mxu3 %vm356_vm2, %v1263_v40 }
 0x24a   : > { %1831 = vmatmul.msk.bf16.vlgmr.msra.gmra.mxu1 %vm356_vm2, %v2085_v55 }
 0x2c5   : > { %v2172_v41 = vpop.f32.mrf.mxu0 }
 0x2c6   : > { %v1284_v42 = vsel %vm1283_vm3, %v2172_v41, -inf }
 0x2c7   : > { %v2177_v62 = vpop.f32.mrf.mxu1  ;;  %1285 = vmax.xlane.f32.xlu0 %v1284_v42 }
 0x2c8   : > { %v1287_v44 = vsel %vm1283_vm3, %v2177_v62, -inf }
 0x2c9   : > { %1288 = vmax.xlane.f32.xlu1 %v1287_v44  ;;  %v2183_v55 = vpop.f32.mrf.mxu2 }
 0x2ca   : > { %v1290_v50 = vsel %vm1283_vm3, %v2183_v55, -inf }
 0x2cb   : > { %v2186_v45 = vpop.f32.mrf.mxu3 }
 0x2cc   : > { %v1293_v46 = vsel %vm1283_vm3, %v2186_v45, -inf }
 0x2cd   : > { %v1214_v48 = vpop.f32.mrf.mxu0  ;;  %1294 = vmax.xlane.f32.xlu2 %v1293_v46 }
 0x2cf   : > { %v1235_v49 = vpop.f32.mrf.mxu1 }
 0x2d1   : > { %1291 = vmax.xlane.f32.xlu1 %v1290_v50  ;;  %v1256_v51 = vpop.f32.mrf.mxu2 }
 0x2d3   : > { %v1277_v52 = vpop.f32.mrf.mxu3 }
 0x2db   : > { %440 = vrot.lane.b32.xlu0 %v2134_v47, %s1963_s24 }
 0x2e5   : > { %438 = vrot.lane.b32.xlu2 %v2134_v47, %s1964_s25 }
 0x33a   : > { %v1286_v58 = vpop.xlane.xlu0 %1285 }
 0x33b   : > { %v2209_v60 = vmax.f32 %v2204_v57, %v1286_v58 }
 0x33c   : > { %v1289_v61 = vpop.xlane.xlu1 %1288 }
 0x33d   : > { %v1300_v63 = vsub.f32 %v2204_v57, %v2209_v60  ;;  %1540 = vst.msk [vmem:[#allocation3] sm:$0xff] %vm347_vm4, %v2209_v60  ;;  %v2216_v0 = vmax.f32 %v2206_v59, %v1289_v61  ;;  %1314 = vperm.xlu2 %1911, %v2209_v60  }
 0x33f   : > { %v1301_v2 = vsub.f32 %v2206_v59, %v2216_v0  ;;  %1541 = vst.msk [vmem:[#allocation3 + $0x8] sm:$0xff] %vm347_vm4, %v2216_v0 }
 0x340   : > { %v1295_v3 = vpop.xlane.xlu2 %1294 }
 0x341   : > { %v2226_v4 = vmax.f32 %v2219_v1, %v1295_v3 }
 0x343   : > { %v1303_v6 = vsub.f32 %v2219_v1, %v2226_v4  ;;  %1543 = vst.msk [vmem:[#allocation3 + $0x18] sm:$0xff] %vm347_vm4, %v2226_v4 }
 0x344   : > { %v1292_v7 = vpop.xlane.xlu1 %1291 }
 0x345   : > { %v2235_v9 = vmax.f32 %v2228_v5, %v1292_v7 }
 0x347   : > { %v1302_v12 = vsub.f32 %v2228_v5, %v2235_v9  ;;  %1542 = vst.msk [vmem:[#allocation3 + $0x10] sm:$0xff] %vm347_vm4, %v2235_v9  ;;  %1324 = vperm.xlu1 %1912, %v2235_v9   ;;  %v1310_v5 = vmul.f32 1.442695, %v1303_v6 }
 0x348   : > { %v439_v14 = vpop.permute.xlu2 %438 }
 0x349   : > { %v451_v17 = vshrl.u32 %v439_v14, 16 }
 0x34d   : > { %v441_v18 = vpop.permute.xlu0 %440 }
 0x34e   : > { %v452_v20 = vshrl.u32 %v441_v18, 16  ;;  %v450_v21 = vpack.i.b16 %v441_v18, %v439_v14 }
 0x34f   : > { %1329 = vperm.xlu1 %1912, %v2226_v4  }
 0x350   : > { %v453_v23 = vpack.i.b16 %v452_v20, %v451_v17  ;;  %v463_v24 = vperm.slane %v450_v21, %v2027_v8 }
 0x352   : > { %v464_v27 = vrot.slane %v463_v24, 4  ;;  %v467_v47 = vsel %vm296_vm0, %v463_v24, %v466_v22  ;;  %v489_v28 = vperm.slane %v453_v23, %v2027_v8 }
 0x353   : > { %v475_v29 = vperm.slane %v467_v47, %v2031_v26 }
 0x354   : > { %v465_v30 = vsel %vm296_vm0, %v464_v27, %v458_v16  ;;  %v490_v31 = vrot.slane %v489_v28, 4  ;;  %v493_v32 = vsel %vm296_vm0, %v489_v28, %v492_v25 }
 0x355   : > { %v471_v33 = vperm.slane %v465_v30, %v2031_v26  ;;  %v478_v34 = vrot.slane %v475_v29, 4  ;;  %v501_v35 = vperm.slane %v493_v32, %v2031_v26 }
 0x356   : > { %v491_v36 = vsel %vm296_vm0, %v490_v31, %v484_v19 }
 0x357   : > { %v476_v37 = vrot.slane %v471_v33, 4  ;;  %v479_v38 = vsel %vm296_vm0, 0, %v478_v34  ;;  %v497_v39 = vperm.slane %v491_v36, %v2031_v26  ;;  %v504_v40 = vrot.slane %v501_v35, 4  ;;  %1319 = vperm.xlu1 %1912, %v2216_v0  }
 0x358   : > { %v1382_v42 = vrot.slane %v479_v38, 4  ;;  %v1377_v49 = vsel %vm296_vm0, %v478_v34, %v471_v33 }
 0x359   : > { %v477_v43 = vsel %vm296_vm0, 0, %v476_v37  ;;  %v502_v44 = vrot.slane %v497_v39, 4  ;;  %v505_v46 = vsel %vm296_vm0, 0, %v504_v40  ;;  %v1396_v53 = vsel %vm296_vm0, %v504_v40, %v497_v39 }
 0x35a   : > { %v1401_v48 = vrot.slane %v505_v46, 4  ;;  %v1383_v50 = vsel %vm296_vm0, %v1382_v42, %v477_v43  ;;  %v1381_v56 = vperm.slane %v1377_v49, %v2027_v8  ;;  %v1400_v7 = vperm.slane %v1396_v53, %v2027_v8 }
 0x35b   : > { %v503_v51 = vsel %vm296_vm0, 0, %v502_v44  ;;  %v1387_v52 = vperm.slane %v1383_v50, %v2027_v8 }
 0x35c   : > { %v1402_v54 = vsel %vm296_vm0, %v1401_v48, %v503_v51 }
 0x35d   : > { %v1388_v58 = vrot.slane %v1387_v52, 4  ;;  %v1406_v61 = vperm.slane %v1402_v54, %v2027_v8 }
 0x35f   : > { %v1389_v3 = vsel %vm296_vm0, %v1388_v58, %v1381_v56  ;;  %v1407_v10 = vrot.slane %v1406_v61, 4  ;;  %v1304_v58 = vmul.f32 1.442695, %v1300_v63 }
 0x360   : > { %v1393_v11 = vperm.slane %v1389_v3, %v2031_v26 }
 0x361   : > { %v1408_v13 = vsel %vm296_vm0, %v1407_v10, %v1400_v7  ;;  %v1344_v7 = vld [vmem:[#allocation4] sm:$0xff] }
 0x362   : > { %v1412_v14 = vperm.slane %v1408_v13, %v2031_v26  ;;  %v1394_v15 = vrot.slane %v1393_v11, 4  ;;  %v1418_v16 = vshrl.u32 %v1393_v11, 16  ;;  %v1347_v13 = vld [vmem:[#allocation4 + $0x18] sm:$0xff] }
 0x364   : > { %v1417_v17 = vpack.i.b16 %v1412_v14, %v1393_v11  ;;  %v1419_v18 = vshrl.u32 %v1412_v14, 16  ;;  %v1395_v19 = vsel %vm296_vm0, 0, %v1394_v15  ;;  %v1413_v20 = vrot.slane %v1412_v14, 4  ;;  %v1346_v11 = vld [vmem:[#allocation4 + $0x10] sm:$0xff] }
 0x365   : > { %v1424_v25 = vshrl.u32 %v1395_v19, 16 }
 0x366   : > { %v1432_v21 = vsel %vm1430_vm5, %v1417_v17, 0  ;;  %v1420_v22 = vpack.i.b16 %v1419_v18, %v1418_v16  ;;  %v1414_v23 = vsel %vm296_vm0, 0, %v1413_v20  ;;  %v1345_v18 = vld [vmem:[#allocation4 + $0x8] sm:$0xff] }
 0x367   : > { %1441 = vmatpush.bf16.msrb.mxu0 %v1432_v21  ;;  %v1423_v24 = vpack.i.b16 %v1414_v23, %v1395_v19  ;;  %v1425_v27 = vshrl.u32 %v1414_v23, 16 }
 0x368   : > { %v1451_v47 = vsel %vm1430_vm5, %v1420_v22, 0 }
 0x369   : > { %1460 = vmatpush.bf16.msrb.mxu1 %v1451_v47  ;;  %v1470_v28 = vsel %vm1430_vm5, %v1423_v24, 0  ;;  %v1426_v29 = vpack.i.b16 %v1425_v27, %v1424_v25  ;;  %v1506_v24 = vld [vmem:[#allocation5 + $0x10] sm:$0xff] }
 0x36a   : > { %1479 = vmatpush.bf16.msrb.mxu2 %v1470_v28 }
 0x36b   : > { %v1489_v30 = vsel %vm1430_vm5, %v1426_v29, 0  ;;  %v1507_v29 = vld [vmem:[#allocation5 + $0x18] sm:$0xff] }
 0x36c   : > { %1498 = vmatpush.bf16.msrb.mxu3 %v1489_v30 }
 0x397   : > { %v1315_v31 = vpop.permute.xlu2 %1314 }
 0x398   : > { %v1332_v32 = vsub.f32 %v2172_v41, %v1315_v31 }
 0x39a   : > { %v1336_v33 = vmul.f32 1.442695, %v1332_v32 }
 0x39c   : > { %1914 = vpow2.f32 %v1336_v33 }
 0x3a2   : > { %v1915_v34 = vpop.eup %1914 }
 0x3a3   : > { %v1352_v35 = vsel %vm1283_vm3, %v1915_v34, 0.0  ;;  %v1373_v36 = vpack.c.bf16 %v1915_v34, %v1915_v34 }
 0x3a4   : > { %1353 = vadd.xlane.f32.xlu2 %v1352_v35 }
 0x3a5   : > { %1834 = vmatmul.msk.bf16.vlgmr.msrb.gmra.mxu0 %vm1283_vm3, %v1373_v36 }
 0x3b9   : > { %v1325_v37 = vpop.permute.xlu1 %1324 }
 0x3ba   : > { %v1334_v38 = vsub.f32 %v2183_v55, %v1325_v37 }
 0x3bc   : > { %v1340_v39 = vmul.f32 1.442695, %v1334_v38  ;;  %v1505_v38 = vld [vmem:[#allocation5 + $0x8] sm:$0xff] }
 0x3be   : > { %1916 = vpow2.f32 %v1340_v39  ;;  %v1504_v39 = vld [vmem:[#allocation5] sm:$0xff] }
 0x3c1   : > { %v1330_v40 = vpop.permute.xlu1 %1329 }
 0x3c2   : > { %v1335_v42 = vsub.f32 %v2186_v45, %v1330_v40  ;;  %v1308_v45 = vmul.f32 1.442695, %v1302_v12  ;;  %v1306_v12 = vmul.f32 1.442695, %v1301_v2 }
 0x3c4   : > { %v1917_v43 = vpop.eup %1916  ;;  %v1342_v44 = vmul.f32 1.442695, %v1335_v42 }
 0x3c5   : > { %v1358_v41 = vsel %vm1283_vm3, %v1917_v43, 0.0  ;;  %v1375_v46 = vpack.c.bf16 %v1917_v43, %v1917_v43 }
 0x3c6   : > { %1918 = vpow2.f32 %v1342_v44  ;;  %1359 = vadd.xlane.f32.xlu0 %v1358_v41 }
 0x3c7   : > { %1836 = vmatmul.msk.bf16.vlgmr.msrb.gmra.mxu2 %vm1283_vm3, %v1375_v46 }
 0x3c9   : > { %v1320_v48 = vpop.permute.xlu1 %1319 }
 0x3ca   : > { %v1333_v49 = vsub.f32 %v2177_v62, %v1320_v48 }
 0x3cc   : > { %v1919_v50 = vpop.eup %1918  ;;  %v1338_v51 = vmul.f32 1.442695, %v1333_v49 }
 0x3cd   : > { %v1361_v55 = vsel %vm1283_vm3, %v1919_v50, 0.0  ;;  %v1376_v52 = vpack.c.bf16 %v1919_v50, %v1919_v50 }
 0x3ce   : > { %1920 = vpow2.f32 %v1338_v51  ;;  %1362 = vadd.xlane.f32.xlu1 %v1361_v55 }
 0x3cf   : > { %1837 = vmatmul.msk.bf16.vlgmr.msrb.gmra.mxu3 %vm1283_vm3, %v1376_v52  ;;  %1922 = vpow2.f32 %v1308_v45 }
 0x3d0   : > { %1924 = vpow2.f32 %v1304_v58 }
 0x3d1   : > { %1926 = vpow2.f32 %v1310_v5 }
 0x3d2   : > { %1928 = vpow2.f32 %v1306_v12 }
 0x3d4   : > { %v1921_v53 = vpop.eup %1920 }
 0x3d5   : > { %v1355_v54 = vsel %vm1283_vm3, %v1921_v53, 0.0  ;;  %v1374_v56 = vpack.c.bf16 %v1921_v53, %v1921_v53  ;;  %v1923_v62 = vpop.eup %1922 }
 0x3d6   : > { %1356 = vadd.xlane.f32.xlu2 %v1355_v54  ;;  %v1925_v9 = vpop.eup %1924  ;;  %v1350_v59 = vmul.f32 %v1923_v62, %v1346_v11 }
 0x3d7   : > { %1835 = vmatmul.msk.bf16.vlgmr.msrb.gmra.mxu1 %vm1283_vm3, %v1374_v56  ;;  %v1927_v61 = vpop.eup %1926  ;;  %v1348_v57 = vmul.f32 %v1925_v9, %v1344_v7 }
 0x3d8   : > { %v1929_v3 = vpop.eup %1928  ;;  %v1351_v14 = vmul.f32 %v1927_v61, %v1347_v13 }
 0x3d9   : > { %v1349_v19 = vmul.f32 %v1929_v3, %v1345_v18 }
 0x3da   : > { %1520 = vperm.xlu0 %1913, %v1923_v62  }
 0x3e7   : > { %1510 = vperm.xlu1 %1912, %v1925_v9  }
 0x3ee   : > { %1525 = vperm.xlu2 %1911, %v1927_v61  }
 0x3f6   : > { %1515 = vperm.xlu2 %1911, %v1929_v3  }
 0x417   : > { %v1354_v60 = vpop.xlane.xlu2 %1353 }
 0x418   : > { %v1364_v63 = vadd.f32 %v1354_v60, %v1348_v57 }
 0x41a   : > { %1369 = vst.msk [vmem:[#allocation4] sm:$0xff] %vm347_vm4, %v1364_v63 }
 0x421   : > { %v1547_v1 = vld [vmem:[#allocation4] sm:$0xff] }
 0x422   : > { %v1443_v4 = vpop.f32.mrf.mxu0  ;;  %1930 = vrcp.f32 %v1547_v1 }
 0x428   : > { %v1931_v6 = vpop.eup %1930 }
 0x429   : > { %1561 = vperm.xlu2 %1911, %v1931_v6  }
 0x42a   : > { %v1445_v10 = vpop.f32.mrf.mxu0 }
 0x439   : > { %v1360_v0 = vpop.xlane.xlu0 %1359 }
 0x43a   : > { %v1366_v2 = vadd.f32 %v1360_v0, %v1350_v59 }
 0x43c   : > { %1371 = vst.msk [vmem:[#allocation4 + $0x10] sm:$0xff] %vm347_vm4, %v1366_v2 }
 0x441   : > { %v1363_v15 = vpop.xlane.xlu1 %1362 }
 0x442   : > { %v1367_v16 = vadd.f32 %v1363_v15, %v1351_v14 }
 0x443   : > { %v1549_v17 = vld [vmem:[#allocation4 + $0x10] sm:$0xff] }
 0x444   : > { %1372 = vst.msk [vmem:[#allocation4 + $0x18] sm:$0xff] %vm347_vm4, %v1367_v16  ;;  %1932 = vrcp.f32 %v1549_v17 }
 0x449   : > { %v1357_v20 = vpop.xlane.xlu2 %1356 }
 0x44a   : > { %v1933_v21 = vpop.eup %1932  ;;  %v1365_v22 = vadd.f32 %v1357_v20, %v1349_v19  ;;  %v1481_v23 = vpop.f32.mrf.mxu2 }
 0x44b   : > { %1571 = vperm.xlu1 %1912, %v1933_v21   ;;  %v1550_v25 = vld [vmem:[#allocation4 + $0x18] sm:$0xff] }
 0x44c   : > { %1370 = vst.msk [vmem:[#allocation4 + $0x8] sm:$0xff] %vm347_vm4, %v1365_v22  ;;  %v1521_v27 = vpop.permute.xlu0 %1520  ;;  %1934 = vrcp.f32 %v1550_v25 }
 0x44d   : > { %v1530_v47 = vmul.f32 %v1521_v27, %v1506_v24 }
 0x44f   : > { %v1534_v28 = vadd.f32 %v1530_v47, %v1481_v23 }
 0x451   : > { %1538 = vst.msk [vmem:[#allocation5 + $0x10] sm:$0xff] %vm356_vm2, %v1534_v28  ;;  %v1526_v30 = vpop.permute.xlu2 %1525 }
 0x452   : > { %v1935_v31 = vpop.eup %1934  ;;  %v1531_v32 = vmul.f32 %v1526_v30, %v1507_v29  ;;  %v1483_v33 = vpop.f32.mrf.mxu2 }
 0x453   : > { %v1500_v34 = vpop.f32.mrf.mxu3  ;;  %1576 = vperm.xlu0 %1913, %v1935_v31   ;;  %v1548_v35 = vld [vmem:[#allocation4 + $0x8] sm:$0xff] }
 0x454   : > { %v1535_v36 = vadd.f32 %v1531_v32, %v1500_v34  ;;  %v1462_v37 = vpop.f32.mrf.mxu1  ;;  %1936 = vrcp.f32 %v1548_v35 }
 0x456   : > { %1539 = vst.msk [vmem:[#allocation5 + $0x18] sm:$0xff] %vm356_vm2, %v1535_v36 }
 0x458   : > { %v1557_v55 = vld [vmem:[#allocation5 + $0x10] sm:$0xff] }
 0x459   : > { %v1516_v40 = vpop.permute.xlu2 %1515  ;;  %v1511_v42 = vpop.permute.xlu1 %1510 }
 0x45a   : > { %v1937_v43 = vpop.eup %1936  ;;  %v1529_v44 = vmul.f32 %v1516_v40, %v1505_v38  ;;  %v1528_v41 = vmul.f32 %v1511_v42, %v1504_v39 }
 0x45b   : > { %v1502_v46 = vpop.f32.mrf.mxu3  ;;  %1566 = vperm.xlu1 %1912, %v1937_v43  }
 0x45c   : > { %v1533_v48 = vadd.f32 %v1529_v44, %v1462_v37  ;;  %v1532_v49 = vadd.f32 %v1528_v41, %v1443_v4  ;;  %v1464_v50 = vpop.f32.mrf.mxu1 }
 0x45d   : > { %v1558_v58 = vld [vmem:[#allocation5 + $0x18] sm:$0xff] }
 0x45e   : > { %1537 = vst.msk [vmem:[#allocation5 + $0x8] sm:$0xff] %vm356_vm2, %v1533_v48 }
 0x45f   : > { %1536 = vst.msk [vmem:[#allocation5] sm:$0xff] %vm356_vm2, %v1532_v49 }
 0x465   : > { %v1556_v7 = vld [vmem:[#allocation5 + $0x8] sm:$0xff] }
 0x466   : > { %v1555_v53 = vld [vmem:[#allocation5] sm:$0xff] }
 0x483   : > { %v1562_v45 = vpop.permute.xlu2 %1561 }
 0x484   : > { %v1579_v54 = vmul.f32 %v1562_v45, %v1555_v53 }
 0x486   : > { %v1586_v5 = vrot.slane %v1579_v54, 4 }
 0x4bd   : > { %v1572_v51 = vpop.permute.xlu1 %1571 }
 0x4be   : > { %v1581_v52 = vmul.f32 %v1572_v51, %v1557_v55 }
 0x4c0   : > { %v1583_v56 = vrot.slane %v1581_v52, 4  ;;  %v1587_v61 = vsel %vm296_vm0, %v1581_v52, %v1586_v5 }
 0x4c1   : > { %v1595_v1 = vperm.slane %v1587_v61, %v2027_v8 }
 0x4c2   : > { %v1585_v9 = vsel %vm296_vm0, %v1583_v56, %v1579_v54 }
 0x4c3   : > { %v1591_v3 = vperm.slane %v1585_v9, %v2027_v8  ;;  %v1622_v0 = vrot.slane %v1595_v1, 4 }
 0x4c5   : > { %v1577_v62 = vpop.permute.xlu0 %1576  ;;  %v1610_v10 = vrot.slane %v1591_v3, 4 }
 0x4c6   : > { %v1582_v12 = vmul.f32 %v1577_v62, %v1558_v58 }
 0x4c8   : > { %v1596_v60 = vrot.slane %v1582_v12, 4 }
 0x4cd   : > { %v1567_v57 = vpop.permute.xlu1 %1566 }
 0x4ce   : > { %v1580_v63 = vmul.f32 %v1567_v57, %v1556_v7 }
 0x4d0   : > { %v1597_v4 = vsel %vm296_vm0, %v1596_v60, %v1580_v63  ;;  %v1598_v6 = vrot.slane %v1580_v63, 4 }
 0x4d1   : > { %v1603_v11 = vperm.slane %v1597_v4, %v2027_v8 }
 0x4d2   : > { %v1599_v59 = vsel %vm296_vm0, %v1582_v12, %v1598_v6 }
 0x4d3   : > { %v1607_v2 = vperm.slane %v1599_v59, %v2027_v8  ;;  %v1608_v13 = vrot.slane %v1603_v11, 4  ;;  %v1611_v14 = vsel %vm296_vm0, %v1603_v11, %v1610_v10 }
 0x4d4   : > { %v1619_v15 = vperm.slane %v1611_v14, %v2031_v26 }
 0x4d5   : > { %v1609_v16 = vsel %vm296_vm0, %v1608_v13, %v1591_v3  ;;  %v1620_v17 = vrot.slane %v1607_v2, 4  ;;  %v1623_v18 = vsel %vm296_vm0, %v1607_v2, %v1622_v0 }
 0x4d6   : > { %v1615_v19 = vperm.slane %v1609_v16, %v2031_v26  ;;  %v1631_v20 = vperm.slane %v1623_v18, %v2031_v26  ;;  %v1634_v21 = vrot.slane %v1619_v15, 4 }
 0x4d7   : > { %v1621_v22 = vsel %vm296_vm0, %v1620_v17, %v1595_v1 }
 0x4d8   : > { %v1627_v23 = vperm.slane %v1621_v22, %v2031_v26  ;;  %v1632_v24 = vrot.slane %v1615_v19, 4  ;;  %v1635_v25 = vsel %vm296_vm0, 0.0, %v1634_v21  ;;  %v1638_v27 = vrot.slane %v1631_v20, 4 }
 0x4d9   : > { %v1640_v47 = vsel %vm296_vm0, %v1634_v21, %v1615_v19  ;;  %v1645_v28 = vrot.slane %v1635_v25, 4 }
 0x4da   : > { %v1639_v29 = vsel %vm296_vm0, 0.0, %v1638_v27  ;;  %v1633_v30 = vsel %vm296_vm0, 0.0, %v1632_v24  ;;  %v1636_v31 = vrot.slane %v1627_v23, 4  ;;  %v1644_v32 = vperm.slane %v1640_v47, %v2027_v8 }
 0x4db   : > { %v1656_v33 = vrot.slane %v1639_v29, 4  ;;  %v1646_v34 = vsel %vm296_vm0, %v1645_v28, %v1633_v30  ;;  %v1651_v35 = vsel %vm296_vm0, %v1638_v27, %v1627_v23 }
 0x4dc   : > { %v1637_v36 = vsel %vm296_vm0, 0.0, %v1636_v31  ;;  %v1650_v37 = vperm.slane %v1646_v34, %v2027_v8  ;;  %v1655_v38 = vperm.slane %v1651_v35, %v2027_v8  ;;  %v1664_v39 = vrot.slane %v1644_v32, 4 }
 0x4dd   : > { %v1657_v40 = vsel %vm296_vm0, %v1656_v33, %v1637_v36 }
 0x4de   : > { %v1661_v42 = vperm.slane %v1657_v40, %v2027_v8  ;;  %v1665_v43 = vsel %vm296_vm0, %v1650_v37, %v1664_v39  ;;  %v1676_v44 = vrot.slane %v1655_v38, 4  ;;  %v1662_v41 = vrot.slane %v1650_v37, 4 }
 0x4df   : > { %v1673_v46 = vperm.slane %v1665_v43, %v2031_v26 }
 0x4e0   : > { %v1677_v48 = vsel %vm296_vm0, %v1661_v42, %v1676_v44  ;;  %v1663_v49 = vsel %vm296_vm0, %v1662_v41, %v1644_v32  ;;  %v1674_v50 = vrot.slane %v1661_v42, 4 }
 0x4e1   : > { %v1685_v51 = vperm.slane %v1677_v48, %v2031_v26  ;;  %v1692_v55 = vrot.slane %v1673_v46, 4  ;;  %v1669_v52 = vperm.slane %v1663_v49, %v2031_v26 }
 0x4e2   : > { %v1675_v45 = vsel %vm296_vm0, %v1674_v50, %v1655_v38 }
 0x4e3   : > { %v1693_v8 = vsel %vm296_vm0, %v1685_v51, %v1692_v55  ;;  %v1690_v53 = vrot.slane %v1685_v51, 4  ;;  %v1681_v54 = vperm.slane %v1675_v45, %v2031_v26  ;;  %v1688_v56 = vrot.slane %v1669_v52, 4 }
 0x4e4   : > { %1703 = vrot.lane.b32.xlu1 %v1693_v8, %s1970_s29 }
 0x4e5   : > { %v1691_v62 = vsel %vm296_vm0, %v1690_v53, %v1673_v46  ;;  %v1686_v58 = vrot.slane %v1681_v54, 4  ;;  %v1689_v5 = vsel %vm296_vm0, %v1681_v54, %v1688_v56 }
 0x4e6   : > { %1699 = vrot.lane.b32.xlu0 %v1691_v62, %s1971_s30  ;;  %1695 = vrot.lane.b32.xlu2 %v1689_v5, %s1972_s4 }
 0x4e7   : > { %v1687_v9 = vsel %vm296_vm0, %v1686_v58, %v1669_v52 }
 0x540   : > { %v1696_v12 = vpop.permute.xlu2 %1695 }
 0x541   : > { %v1706_v26 = vsel %vm356_vm2, %v1687_v9, %v1696_v12 }
 0x556   : > { %v1704_v3 = vpop.permute.xlu1 %1703 }
 0x558   : > { %v1700_v61 = vpop.permute.xlu0 %1699 }
 0x559   : > { %v1708_v7 = vsel %vm1707_vm6, %v1706_v26, %v1700_v61 }
 0x55a   : > { %v1710_v57 = vsel %vm1709_vm7, %v1708_v7, %v1704_v3 }
 0x55b   : > { %v1711_v60 = vpack.c.bf16 %v1710_v57, %v1710_v57 }
 0x55d   : > { %1713 = vst.msk [vmem:[%s259_s7] sm:$0xf] %vm1712_vm8, %v1711_v60 }
 0x55e PF: > { %s13_s14 = sadd.s32 1, %s1960_s14   ;;  %s2370_s12 = smov %s1956_s13 }
 0x55f   : > { %p10_p5 = scmp.ge.s32.totalorder %s13_s14, 4   ;;  %s2371_s13 = smov %s2373_s15 }
 0x561   :  { %12 = sbr.rel (!%p10_p5) target bundleno = 2 (0x2), region = 80 }

// kernel: gpt2_forward.22
= control target key start
LH: loop header
LB: loop body
LE: loop exit
PB: predicated region body
PF: predicated region fallthrough
CT: control target
= control target key end

     0   :  { %vm82_vm0 = vcmask 523264   ;;  %s535_s1 = inlined_call_operand.vmem [shape: bf16[64,256], index: 1, kind: input, shape index: {}]   ;;  %s536_s0 = inlined_call_operand.vmem [shape: bf16[16,64], index: 0, kind: input, shape index: {}]   ;;  %s537_s2 = inlined_call_operand.vmem [shape: f32[1,256], index: 2, kind: input, shape index: {}]   ;;  %s538_s3 = inlined_call_operand.vmem [shape: bf16[16,256], index: 3, kind: output, shape index: {}]  }
   0x1   :  { %v353_v0 = vld [vmem:[%s535_s1 + $0x30] sm:$0xf]  ;;  %v373_v1 = vld [vmem:[%s535_s1 + $0x34] sm:$0xf0]  ;;  %v372_v2 = vld [vmem:[%s535_s1 + $0x34] sm:$0xf] }
   0x2   :  { %v354_v3 = vor.u32 %v373_v1, %v353_v0  ;;  %v355_v4 = vld [vmem:[%s535_s1 + $0x38] sm:$0xf0]  ;;  %v345_v5 = vld [vmem:[%s535_s1 + $0x20] sm:$0xf]  ;;  %v371_v6 = vld [vmem:[%s535_s1 + $0x24] sm:$0xf0] }
   0x3   :  { %v358_v7 = vor.u32 %v372_v2, %v355_v4  ;;  %v370_v8 = vld [vmem:[%s535_s1 + $0x24] sm:$0xf]  ;;  %v347_v9 = vld [vmem:[%s535_s1 + $0x28] sm:$0xf0]  ;;  %v346_v10 = vor.u32 %v371_v6, %v345_v5  ;;  %v337_v12 = vld [vmem:[%s535_s1 + $0x10] sm:$0xf] }
   0x4   :  { %90 = vmatpush.bf16.msra.mxu0 %v354_v3  ;;  %v350_v11 = vor.u32 %v370_v8, %v347_v9  ;;  %v369_v13 = vld [vmem:[%s535_s1 + $0x14] sm:$0xf0]  ;;  %v368_v14 = vld [vmem:[%s535_s1 + $0x14] sm:$0xf]  ;;  %v339_v15 = vld [vmem:[%s535_s1 + $0x18] sm:$0xf0] }
   0x5   :  { %104 = vmatpush.bf16.msra.mxu1 %v358_v7  ;;  %v338_v16 = vor.u32 %v369_v13, %v337_v12  ;;  %v342_v17 = vor.u32 %v368_v14, %v339_v15  ;;  %v329_v18 = vld [vmem:[%s535_s1] sm:$0xf]  ;;  %v367_v19 = vld [vmem:[%s535_s1 + $0x4] sm:$0xf0]  ;;  %v366_v20 = vld [vmem:[%s535_s1 + $0x4] sm:$0xf] }
   0x6   :  { %v331_v21 = vld [vmem:[%s535_s1 + $0x8] sm:$0xf0]  ;;  %v330_v22 = vor.u32 %v367_v19, %v329_v18  ;;  %v365_v24 = vld [vmem:[%s536_s0] sm:$0xff] }
   0x7   :  { %v334_v23 = vor.u32 %v366_v20, %v331_v21  ;;  %v129_v25 = vld [vmem:[%s537_s2] sm:$0x3] }
   0x8   :  { %91 = vmatpush.bf16.msra.mxu0 %v346_v10  ;;  %v131_v26 = vperm.slane %v129_v25, 0  ;;  %v132_v27 = vperm.slane %v129_v25, 1 }
   0x9   :  { %105 = vmatpush.bf16.msra.mxu1 %v350_v11 }
   0xc   :  { %92 = vmatpush.bf16.msra.mxu0 %v338_v16 }
   0xd   :  { %106 = vmatpush.bf16.msra.mxu1 %v342_v17 }
  0x10   :  { %93 = vmatpush.bf16.msra.mxu0 %v330_v22 }
  0x11   :  { %107 = vmatpush.bf16.msra.mxu1 %v334_v23 }
  0x13   :  { %359 = vmatmul.msk.bf16.vlgmr.msra.gmra.mxu0 %vm82_vm0, %v365_v24 }
  0x14   :  { %360 = vmatmul.msk.bf16.vlgmr.msra.gmra.mxu1 %vm82_vm0, %v365_v24 }
  0x90   :  { %v95_v28 = vpop.f32.mrf.mxu0 }
  0x91   :  { %v456_v29 = vadd.f32 %v131_v26, %v95_v28  ;;  %v109_v30 = vpop.f32.mrf.mxu1 }
  0x92   :  { %v458_v31 = vadd.f32 %v132_v27, %v109_v30 }
  0x93   :  { %v461_v32 = vmul.f32 0.70710677, %v456_v29 }
  0x94   :  { %v464_v33 = vmul.f32 0.70710677, %v458_v31 }
  0x95   :  { %v147_v34 = vmul.f32 %v461_v32, %v461_v32 }
  0x96   :  { %v187_v35 = vmul.f32 %v464_v33, %v464_v33 }
  0x97   :  { %v148_v36 = vmin.f32 %v147_v34, 16.0 }
  0x98   :  { %v470_v37 = vmin.f32 %v187_v35, 16.0  ;;  %v97_v38 = vpop.f32.mrf.mxu0 }
  0x99   :  { %v149_v39 = vmul.f32 2.1237322e-06, %v148_v36  ;;  %v160_v40 = vmul.f32 3.8918573e-05, %v148_v36  ;;  %v472_v41 = vadd.f32 %v131_v26, %v97_v38  ;;  %v111_v42 = vpop.f32.mrf.mxu1 }
  0x9a   :  { %v189_v43 = vmul.f32 2.1237322e-06, %v470_v37  ;;  %v200_v44 = vmul.f32 3.8918573e-05, %v470_v37  ;;  %v476_v45 = vadd.f32 %v132_v27, %v111_v42 }
  0x9b   :  { %v150_v46 = vadd.f32 0.00028619796, %v149_v39  ;;  %v161_v47 = vadd.f32 0.001143296, %v160_v40  ;;  %v479_v50 = vmul.f32 0.70710677, %v472_v41 }
  0x9c   :  { %v190_v48 = vadd.f32 0.00028619796, %v189_v43  ;;  %v201_v49 = vadd.f32 0.001143296, %v200_v44  ;;  %v482_v53 = vmul.f32 0.70710677, %v476_v45 }
  0x9d   :  { %v151_v51 = vmul.f32 %v150_v46, %v148_v36  ;;  %v162_v52 = vmul.f32 %v161_v47, %v148_v36  ;;  %v227_v56 = vmul.f32 %v479_v50, %v479_v50 }
  0x9e   :  { %v191_v54 = vmul.f32 %v190_v48, %v470_v37  ;;  %v202_v55 = vmul.f32 %v201_v49, %v470_v37  ;;  %v267_v59 = vmul.f32 %v482_v53, %v482_v53 }
  0x9f   :  { %v152_v57 = vadd.f32 0.0036580483, %v151_v51  ;;  %v163_v58 = vadd.f32 0.014752088, %v162_v52  ;;  %v490_v62 = vmin.f32 %v227_v56, 16.0 }
  0xa0   :  { %v192_v60 = vadd.f32 0.0036580483, %v191_v54  ;;  %v203_v61 = vadd.f32 0.014752088, %v202_v55  ;;  %v492_v1 = vmin.f32 %v267_v59, 16.0 }
  0xa1   :  { %v153_v63 = vmul.f32 %v152_v57, %v148_v36  ;;  %v164_v0 = vmul.f32 %v163_v58, %v148_v36  ;;  %v229_v4 = vmul.f32 2.1237322e-06, %v490_v62  ;;  %v240_v5 = vmul.f32 3.8918573e-05, %v490_v62 }
  0xa2   :  { %v193_v2 = vmul.f32 %v192_v60, %v470_v37  ;;  %v204_v3 = vmul.f32 %v203_v61, %v470_v37  ;;  %v269_v8 = vmul.f32 2.1237322e-06, %v492_v1  ;;  %v280_v16 = vmul.f32 3.8918573e-05, %v492_v1 }
  0xa3   :  { %v154_v6 = vadd.f32 0.05243302, %v153_v63  ;;  %v165_v7 = vadd.f32 0.112945676, %v164_v0  ;;  %v230_v11 = vadd.f32 0.00028619796, %v229_v4 }
  0xa4   :  { %v194_v9 = vadd.f32 0.05243302, %v193_v2  ;;  %v205_v10 = vadd.f32 0.112945676, %v204_v3  ;;  %v241_v14 = vadd.f32 0.001143296, %v240_v5 }
  0xa5   :  { %v155_v12 = vmul.f32 %v154_v6, %v148_v36  ;;  %v166_v13 = vmul.f32 %v165_v7, %v148_v36  ;;  %v231_v18 = vmul.f32 %v230_v11, %v490_v62  ;;  %v270_v22 = vadd.f32 0.00028619796, %v269_v8 }
  0xa6   :  { %v206_v15 = vmul.f32 %v205_v10, %v470_v37  ;;  %v242_v19 = vmul.f32 %v241_v14, %v490_v62  ;;  %v195_v20 = vmul.f32 %v194_v9, %v470_v37  ;;  %v281_v27 = vadd.f32 0.001143296, %v280_v16 }
  0xa7   :  { %v167_v17 = vadd.f32 0.4994258, %v166_v13  ;;  %v156_v23 = vadd.f32 0.18741608, %v155_v12  ;;  %v232_v30 = vadd.f32 0.0036580483, %v231_v18  ;;  %v271_v39 = vmul.f32 %v270_v22, %v492_v1 }
  0xa8   :  { %v207_v21 = vadd.f32 0.4994258, %v206_v15  ;;  %v243_v25 = vadd.f32 0.014752088, %v242_v19  ;;  %v196_v34 = vadd.f32 0.18741608, %v195_v20  ;;  %v282_v42 = vmul.f32 %v281_v27, %v492_v1 }
  0xa9   :  { %v168_v24 = vmul.f32 %v167_v17, %v148_v36  ;;  %v157_v40 = vmul.f32 %v156_v23, %v148_v36  ;;  %v233_v43 = vmul.f32 %v232_v30, %v490_v62  ;;  %v272_v47 = vadd.f32 0.0036580483, %v271_v39 }
  0xaa   :  { %v208_v26 = vmul.f32 %v207_v21, %v470_v37  ;;  %v244_v38 = vmul.f32 %v243_v25, %v490_v62  ;;  %v197_v44 = vmul.f32 %v196_v34, %v470_v37  ;;  %v283_v49 = vadd.f32 0.014752088, %v282_v42 }
  0xab   :  { %v169_v28 = vadd.f32 1.0, %v168_v24  ;;  %v158_v48 = vadd.f32 1.1283791, %v157_v40  ;;  %v234_v54 = vadd.f32 0.05243302, %v233_v43  ;;  %v273_v59 = vmul.f32 %v272_v47, %v492_v1 }
  0xac   :  { %v209_v35 = vadd.f32 1.0, %v208_v26  ;;  %v245_v46 = vadd.f32 0.112945676, %v244_v38  ;;  %v284_v55 = vmul.f32 %v283_v49, %v492_v1  ;;  %v198_v57 = vadd.f32 1.1283791, %v197_v44 }
  0xad   :  { %374 = vrcp.f32 %v169_v28  ;;  %v159_v60 = vmul.f32 %v158_v48, %v461_v32  ;;  %vm175_vm1 = vweird.f32 %v169_v28  ;;  %v179_v0 = vand.u32 2147483647, %v169_v28 }
  0xae   :  { %376 = vrcp.f32 %v209_v35  ;;  %v246_v51 = vmul.f32 %v245_v46, %v490_v62  ;;  %v285_v61 = vadd.f32 0.112945676, %v284_v55  ;;  %v181_v2 = vand.u32 2147483648, %v169_v28 }
  0xaf   :  { %v221_v5 = vand.u32 2147483648, %v209_v35  ;;  %v235_v6 = vmul.f32 %v234_v54, %v490_v62  ;;  %v274_v10 = vadd.f32 0.05243302, %v273_v59  ;;  %v219_v32 = vand.u32 2147483647, %v209_v35 }
  0xb0   :  { %v247_v58 = vadd.f32 0.4994258, %v246_v51  ;;  %v286_v7 = vmul.f32 %v285_v61, %v492_v1  ;;  %v199_v14 = vmul.f32 %v198_v57, %v464_v33  ;;  %vm215_vm4 = vweird.f32 %v209_v35 }
  0xb1   :  { %vm180_vm6 = vcmp.eq.f32.partialorder %v179_v0, 8.507059e+37  ;;  %v182_v15 = vor.u32 1.1754944e-38, %v181_v2  ;;  %v222_v19 = vor.u32 1.1754944e-38, %v221_v5  ;;  %v236_v20 = vadd.f32 0.18741608, %v235_v6 }
  0xb2   :  { %v248_v3 = vmul.f32 %v247_v58, %v490_v62  ;;  %v287_v12 = vadd.f32 0.4994258, %v286_v7  ;;  %v275_v21 = vmul.f32 %v274_v10, %v492_v1  ;;  %vm220_vm8 = vcmp.eq.f32.partialorder %v219_v32, 8.507059e+37 }
  0xb3   :  { %v375_v52 = vpop.eup %374  ;;  %v237_v30 = vmul.f32 %v236_v20, %v490_v62  ;;  %v139_v39 = vmul.f32 0.5, %v456_v29  ;;  %v140_v42 = vmul.f32 0.5, %v458_v31 }
  0xb4   :  { %v377_v56 = vpop.eup %376  ;;  %v171_v36 = vmul.f32 %v375_v52, %v169_v28  ;;  %vm176_vm2 = vweird.f32 %v375_v52  ;;  %v249_v9 = vadd.f32 1.0, %v248_v3  ;;  %v288_v17 = vmul.f32 %v287_v12, %v492_v1 }
  0xb5   :  { %v211_v37 = vmul.f32 %v377_v56, %v209_v35  ;;  %vm216_vm3 = vweird.f32 %v377_v56  ;;  %vm177_vm5 = vmor %vm175_vm1, %vm176_vm2  ;;  %v276_v34 = vadd.f32 0.18741608, %v275_v21  ;;  %v238_v47 = vadd.f32 1.1283791, %v237_v30 }
  0xb6   :  { %v172_v63 = vsub.f32 1.0, %v171_v36  ;;  %378 = vrcp.f32 %v249_v9  ;;  %vm217_vm7 = vmor %vm215_vm4, %vm216_vm3  ;;  %v289_v24 = vadd.f32 1.0, %v288_v17  ;;  %v261_v48 = vand.u32 2147483648, %v249_v9 }
  0xb7   :  { %v212_v4 = vsub.f32 1.0, %v211_v37  ;;  %v277_v49 = vmul.f32 %v276_v34, %v492_v1  ;;  %v259_v62 = vand.u32 2147483647, %v249_v9  ;;  %vm255_vm10 = vweird.f32 %v249_v9 }
  0xb8   :  { %v173_v8 = vmul.f32 %v375_v52, %v172_v63  ;;  %380 = vrcp.f32 %v289_v24  ;;  %v239_v29 = vmul.f32 %v238_v47, %v479_v50  ;;  %v262_v31 = vor.u32 1.1754944e-38, %v261_v48 }
  0xb9   :  { %v213_v11 = vmul.f32 %v377_v56, %v212_v4  ;;  %vm260_vm12 = vcmp.eq.f32.partialorder %v259_v62, 8.507059e+37  ;;  %v278_v1 = vadd.f32 1.1283791, %v277_v49  ;;  %v301_v59 = vand.u32 2147483648, %v289_v24 }
  0xba   :  { %v174_v13 = vadd.f32 %v375_v52, %v173_v8  ;;  %v299_v61 = vand.u32 2147483647, %v289_v24  ;;  %vm295_vm14 = vweird.f32 %v289_v24  ;;  %v141_v8 = vmul.f32 0.5, %v472_v41 }
  0xbb   :  { %v214_v16 = vadd.f32 %v377_v56, %v213_v11  ;;  %v302_v50 = vor.u32 1.1754944e-38, %v301_v59  ;;  %v279_v3 = vmul.f32 %v278_v1, %v482_v53  ;;  %v142_v11 = vmul.f32 0.5, %v476_v45 }
  0xbc   :  { %v178_v18 = vsel %vm177_vm5, %v375_v52, %v174_v13  ;;  %v379_v27 = vpop.eup %378  ;;  %vm300_vm0 = vcmp.eq.f32.partialorder %v299_v61, 8.507059e+37 }
  0xbd   :  { %v183_v22 = vsel %vm180_vm6, %v182_v15, %v178_v18  ;;  %v218_v23 = vsel %vm217_vm7, %v377_v56, %v214_v16  ;;  %v251_v38 = vmul.f32 %v379_v27, %v249_v9  ;;  %vm256_vm9 = vweird.f32 %v379_v27 }
  0xbe   :  { %v184_v33 = vmul.f32 %v183_v22, %v159_v60  ;;  %v223_v25 = vsel %vm220_vm8, %v222_v19, %v218_v23  ;;  %v381_v51 = vpop.eup %380  ;;  %vm257_vm11 = vmor %vm255_vm10, %vm256_vm9 }
  0xbf   :  { %v224_v26 = vmul.f32 %v223_v25, %v199_v14  ;;  %v252_v44 = vsub.f32 1.0, %v251_v38  ;;  %v291_v55 = vmul.f32 %v381_v51, %v289_v24  ;;  %vm296_vm13 = vweird.f32 %v381_v51 }
  0xc0   :  { %v361_v28 = vclamps-f32 %v184_v33, 1.0  ;;  %vm297_vm15 = vmor %vm295_vm14, %vm296_vm13 }
  0xc1   :  { %v362_v35 = vclamps-f32 %v224_v26, 1.0  ;;  %v253_v54 = vmul.f32 %v379_v27, %v252_v44  ;;  %v292_v57 = vsub.f32 1.0, %v291_v55 }
  0xc2   :  { %v307_v40 = vadd.f32 1.0, %v361_v28 }
  0xc3   :  { %v308_v43 = vadd.f32 1.0, %v362_v35  ;;  %v254_v36 = vadd.f32 %v379_v27, %v253_v54  ;;  %v293_v37 = vmul.f32 %v381_v51, %v292_v57 }
  0xc4   :  { %v311_v46 = vmul.f32 %v307_v40, %v139_v39 }
  0xc5   :  { %v312_v52 = vmul.f32 %v308_v43, %v140_v42  ;;  %v258_v58 = vsel %vm257_vm11, %v379_v27, %v254_v36  ;;  %v294_v0 = vadd.f32 %v381_v51, %v293_v37 }
  0xc6   :  { %v263_v60 = vsel %vm260_vm12, %v262_v31, %v258_v58 }
  0xc7   :  { %v315_v56 = vpack.c.bf16 %v312_v52, %v311_v46  ;;  %v264_v63 = vmul.f32 %v263_v60, %v239_v29  ;;  %v298_v4 = vsel %vm297_vm15, %v381_v51, %v294_v0 }
  0xc8   :  { %v303_v5 = vsel %vm300_vm0, %v302_v50, %v298_v4 }
  0xc9   :  { %317 = vst [vmem:[%s538_s3] sm:$0xff] %v315_v56  ;;  %v363_v2 = vclamps-f32 %v264_v63, 1.0  ;;  %v304_v7 = vmul.f32 %v303_v5, %v279_v3 }
  0xcb   :  { %v309_v6 = vadd.f32 1.0, %v363_v2  ;;  %v364_v9 = vclamps-f32 %v304_v7, 1.0 }
  0xcd   :  { %v313_v10 = vmul.f32 %v309_v6, %v141_v8  ;;  %v310_v32 = vadd.f32 1.0, %v364_v9 }
  0xcf   :  { %v314_v12 = vmul.f32 %v310_v32, %v142_v11 }
  0xd1   :  { %v316_v13 = vpack.c.bf16 %v314_v12, %v313_v10 }
  0xd3   :  { %318 = vst [vmem:[%s538_s3 + $0x8] sm:$0xff] %v316_v13 }

// kernel: gpt2_forward.30
= control target key start
LH: loop header
LB: loop body
LE: loop exit
PB: predicated region body
PF: predicated region fallthrough
CT: control target
= control target key end

     0   :  { %s584_s0 = inlined_call_operand.vmem [shape: bf16[16,256], index: 0, kind: input, shape index: {}]   ;;  %s585_s1 = inlined_call_operand.vmem [shape: bf16[256,64], index: 1, kind: input, shape index: {}]   ;;  %s586_s2 = inlined_call_operand.vmem [shape: f32[1,64], index: 2, kind: input, shape index: {}]   ;;  %s587_s3 = inlined_call_operand.vmem [shape: f32[16,64], index: 3, kind: input, shape index: {}]   ;;  %s588_s4 = inlined_call_operand.vmem [shape: f32[1,64], index: 4, kind: input, shape index: {}]   ;;  %s589_s5 = inlined_call_operand.vmem [shape: f32[1,64], index: 5, kind: input, shape index: {}]   ;;  %s590_s6 = inlined_call_operand.hbm [shape: f32[16,64], index: 6, kind: output, shape index: {0}]   ;;  %s591_s7 = inlined_call_operand.vmem [shape: bf16[16,64], index: 7, kind: output, shape index: {1}]  }
   0x1   :  { %v396_v0 = vld [vmem:[%s585_s1 + $0x38] sm:$0xff]  ;;  %v395_v2 = vld [vmem:[%s585_s1 + $0x30] sm:$0xff]  ;;  %v394_v4 = vld [vmem:[%s585_s1 + $0x28] sm:$0xff] }
   0x2   :  { %v404_v1 = vld [vmem:[%s585_s1 + $0x78] sm:$0xff]  ;;  %175 = vmatpush.bf16.msra.mxu0 %v396_v0  ;;  %v403_v3 = vld [vmem:[%s585_s1 + $0x70] sm:$0xff]  ;;  %v402_v5 = vld [vmem:[%s585_s1 + $0x68] sm:$0xff] }
   0x3   :  { %189 = vmatpush.bf16.msra.mxu1 %v404_v1 }
   0x6   :  { %176 = vmatpush.bf16.msra.mxu0 %v395_v2 }
   0x7   :  { %190 = vmatpush.bf16.msra.mxu1 %v403_v3 }
   0x8   :  { %13 = vsyncpa [#allocation4], 0  ;;  %v393_v6 = vld [vmem:[%s585_s1 + $0x20] sm:$0xff]  ;;  %v392_v8 = vld [vmem:[%s585_s1 + $0x18] sm:$0xff]  ;;  %vm30_vm0 = vcmask 523264   ;;  %v445_v22 = vmov 0.0  }
   0x9   :  { %v401_v7 = vld [vmem:[%s585_s1 + $0x60] sm:$0xff]  ;;  %v400_v9 = vld [vmem:[%s585_s1 + $0x58] sm:$0xff]  ;;  %v391_v10 = vld [vmem:[%s585_s1 + $0x10] sm:$0xff]  ;;  %31 = vst.msk [vmem:[#allocation2] sm:$0xff] %vm30_vm0, %v445_v22  ;;  %v446_v44 = vmov 64.0   ;;  %s299_s24 = sshll.u32 %s590_s6, 4  ;;  %s300_s24 = int_to_ptr.hbm [resolvable:$true] %s299_s24 }
   0xa   :  { %177 = vmatpush.bf16.msra.mxu0 %v394_v4  ;;  %v399_v11 = vld [vmem:[%s585_s1 + $0x50] sm:$0xff]  ;;  %v390_v12 = vld [vmem:[%s585_s1 + $0x8] sm:$0xff]  ;;  %v389_v14 = vld [vmem:[%s585_s1] sm:$0xff]  ;;  %32 = vst.msk [vmem:[#allocation2 + $0x8] sm:$0xff] %vm30_vm0, %v445_v22  ;;  %413 = vrcp.f32 %v446_v44  ;;  %s448_s25 = smov 128   ;;  %s449_s26 = smov 8  }
   0xb   :  { %191 = vmatpush.bf16.msra.mxu1 %v402_v5  ;;  %v398_v13 = vld [vmem:[%s585_s1 + $0x48] sm:$0xff]  ;;  %v397_v15 = vld [vmem:[%s585_s1 + $0x40] sm:$0xff]  ;;  %vm290_vm6 = vcmask 519168  }
   0xc   :  { %v317_v16 = vld [vmem:[%s584_s0] sm:$0xf]  ;;  %v388_v17 = vld [vmem:[%s584_s0 + $0x4] sm:$0xf0]  ;;  %v387_v18 = vld [vmem:[%s584_s0 + $0x4] sm:$0xf] }
   0xd   :  { %v319_v19 = vld [vmem:[%s584_s0 + $0x8] sm:$0xf0]  ;;  %v318_v20 = vor.u32 %v388_v17, %v317_v16  ;;  %v410_v32 = vld [vmem:[%s586_s2] ss:$0 sm:$0xff]  ;;  %s447_s2 = smov [#allocation3]  }
   0xe   :  { %178 = vmatpush.bf16.msra.mxu0 %v393_v6  ;;  %v322_v21 = vor.u32 %v387_v18, %v319_v19  ;;  %v219_v35 = vld [vmem:[%s587_s3] sm:$0xff]  ;;  %v220_v40 = vld [vmem:[%s587_s3 + $0x8] sm:$0xff]  ;;  %s297_s3 = sshll.u32 %s447_s2, 4  ;;  %s298_s3 = int_to_ptr.vmem [resolvable:$true] %s297_s3 }
   0xf   :  { %192 = vmatpush.bf16.msra.mxu1 %v401_v7 }
  0x10   :  { %v33_v24 = vld [vmem:[#allocation2] sm:$0xff]  ;;  %v414_v45 = vpop.eup %413 }
  0x11   :  { %v34_v29 = vld [vmem:[#allocation2 + $0x8] sm:$0xff]  ;;  %v232_v46 = vmul.f32 64.0, %v414_v45  ;;  %vm236_vm1 = vweird.f32 %v414_v45 }
  0x12   :  { %179 = vmatpush.bf16.msra.mxu0 %v392_v8 }
  0x13   :  { %193 = vmatpush.bf16.msra.mxu1 %v400_v9  ;;  %v233_v47 = vsub.f32 1.0, %v232_v46 }
  0x15   :  { %v234_v48 = vmul.f32 %v414_v45, %v233_v47 }
  0x16   :  { %180 = vmatpush.bf16.msra.mxu0 %v391_v10 }
  0x17   :  { %194 = vmatpush.bf16.msra.mxu1 %v399_v11  ;;  %v235_v49 = vadd.f32 %v414_v45, %v234_v48  ;;  %v411_v11 = vld [vmem:[%s588_s4] ss:$0 sm:$0xff] }
  0x19   :  { %v237_v50 = vsel %vm236_vm1, %v414_v45, %v235_v49 }
  0x1a   :  { %181 = vmatpush.bf16.msra.mxu0 %v390_v12 }
  0x1b   :  { %195 = vmatpush.bf16.msra.mxu1 %v398_v13 }
  0x1e   :  { %182 = vmatpush.bf16.msra.mxu0 %v389_v14  ;;  %v412_v14 = vld [vmem:[%s589_s5] ss:$0 sm:$0xff] }
  0x1f   :  { %196 = vmatpush.bf16.msra.mxu1 %v397_v15 }
  0x21   :  { %183 = vmatmul.bf16.vlgmr.msra.gmra.mxu0 %v318_v20 }
  0x22   :  { %197 = vmatmul.bf16.vlgmr.msra.gmra.mxu1 %v322_v21 }
  0x9e   :  { %v184_v23 = vpop.f32.mrf.mxu0 }
  0x9f   :  { %v198_v25 = vpop.f32.mrf.mxu1 }
  0xa0   :  { %v199_v26 = vadd.f32 %v198_v25, %v184_v23 }
  0xa2   :  { %v203_v27 = vadd.f32 %v199_v26, %v33_v24 }
  0xa4   :  { %206 = vst.msk [vmem:[#allocation2] sm:$0xff] %vm30_vm0, %v203_v27 }
  0xa6   :  { %v186_v28 = vpop.f32.mrf.mxu0 }
  0xa7   :  { %v200_v30 = vpop.f32.mrf.mxu1 }
  0xa8   :  { %v201_v31 = vadd.f32 %v200_v30, %v186_v28 }
  0xaa   :  { %v204_v33 = vadd.f32 %v201_v31, %v34_v29 }
  0xab   :  { %v211_v34 = vld [vmem:[#allocation2] sm:$0xff] }
  0xac   :  { %207 = vst.msk [vmem:[#allocation2 + $0x8] sm:$0xff] %vm30_vm0, %v204_v33  ;;  %v217_v36 = vadd.f32 %v410_v32, %v211_v34 }
  0xae   :  { %v221_v37 = vadd.f32 %v219_v35, %v217_v36 }
  0xb0   :  { %v225_v38 = vsel %vm30_vm0, %v221_v37, 0.0  ;;  %223 = vst.msk [vmem:[#allocation3] sm:$0xff] %vm30_vm0, %v221_v37 }
  0xb1   :  { %226 = vadd.xlane.f32.xlu0 %v225_v38 }
  0xb3   :  { %v212_v39 = vld [vmem:[#allocation2 + $0x8] sm:$0xff] }
  0xb4   :  { %v218_v41 = vadd.f32 %v410_v32, %v212_v39 }
  0xb6   :  { %v222_v42 = vadd.f32 %v220_v40, %v218_v41 }
  0xb8   :  { %224 = vst.msk [vmem:[#allocation3 + $0x8] sm:$0xff] %vm30_vm0, %v222_v42  ;;  %v228_v43 = vsel %vm30_vm0, %v222_v42, 0.0 }
  0xb9   :  { %229 = vadd.xlane.f32.xlu0 %v228_v43  ;;  %305 = dma.vmem_to_hbm [thread:$0]  %s298_s3, 256, %s300_s24, [#allocation4], %s448_s25, %s448_s25, %s449_s26  }
 0x124   :  { %v227_v51 = vpop.xlane.xlu0 %226 }
 0x125   :  { %v238_v52 = vmul.f32 %v237_v50, %v227_v51 }
 0x127   :  { %v240_v53 = vsub.f32 %v221_v37, %v238_v52 }
 0x129   :  { %v242_v54 = vmul.f32 %v240_v53, %v240_v53 }
 0x12b   :  { %v244_v55 = vsel %vm30_vm0, %v242_v54, 0.0 }
 0x12c   :  { %245 = vadd.xlane.f32.xlu1 %v244_v55  ;;  %v230_v56 = vpop.xlane.xlu0 %229 }
 0x12d   :  { %v239_v57 = vmul.f32 %v237_v50, %v230_v56 }
 0x12f   :  { %v241_v58 = vsub.f32 %v222_v42, %v239_v57 }
 0x131   :  { %v243_v59 = vmul.f32 %v241_v58, %v241_v58 }
 0x133   :  { %v247_v60 = vsel %vm30_vm0, %v243_v59, 0.0 }
 0x134   :  { %248 = vadd.xlane.f32.xlu1 %v247_v60 }
 0x19f   :  { %v246_v61 = vpop.xlane.xlu1 %245 }
 0x1a0   :  { %v250_v62 = vmul.f32 %v246_v61, %v237_v50 }
 0x1a2   :  { %v252_v63 = vadd.f32 1e-05, %v250_v62 }
 0x1a4   :  { %415 = vrsqrt.f32 %v252_v63  ;;  %vm260_vm3 = vweird.f32 %v252_v63 }
 0x1a7   :  { %v249_v0 = vpop.xlane.xlu1 %248 }
 0x1a8   :  { %v251_v1 = vmul.f32 %v249_v0, %v237_v50 }
 0x1aa   :  { %v416_v2 = vpop.eup %415  ;;  %v253_v3 = vadd.f32 1e-05, %v251_v1 }
 0x1ab   :  { %v255_v4 = vmul.f32 %v416_v2, %v252_v63  ;;  %vm261_vm2 = vweird.f32 %v416_v2 }
 0x1ac   :  { %417 = vrsqrt.f32 %v253_v3  ;;  %vm262_vm4 = vmor %vm260_vm3, %vm261_vm2  ;;  %vm270_vm7 = vweird.f32 %v253_v3 }
 0x1ad   :  { %v256_v5 = vmul.f32 %v416_v2, %v255_v4 }
 0x1af   :  { %v257_v6 = vmul.f32 0.5, %v256_v5 }
 0x1b1   :  { %v258_v7 = vsub.f32 1.5, %v257_v6 }
 0x1b2   :  { %v418_v8 = vpop.eup %417 }
 0x1b3   :  { %v259_v9 = vmul.f32 %v416_v2, %v258_v7  ;;  %v265_v10 = vmul.f32 %v418_v8, %v253_v3  ;;  %vm271_vm5 = vweird.f32 %v418_v8 }
 0x1b4   :  { %vm272_vm8 = vmor %vm270_vm7, %vm271_vm5 }
 0x1b5   :  { %v263_v12 = vsel %vm262_vm4, %v416_v2, %v259_v9  ;;  %v266_v13 = vmul.f32 %v418_v8, %v265_v10 }
 0x1b6   :  { %v274_v15 = vmul.f32 %v263_v12, %v240_v53 }
 0x1b7   :  { %v267_v16 = vmul.f32 0.5, %v266_v13 }
 0x1b8   :  { %v280_v17 = vmul.f32 %v411_v11, %v274_v15 }
 0x1b9   :  { %v268_v18 = vsub.f32 1.5, %v267_v16 }
 0x1ba   :  { %v286_v19 = vadd.f32 %v412_v14, %v280_v17 }
 0x1bb   :  { %v269_v20 = vmul.f32 %v418_v8, %v268_v18 }
 0x1bc   :  { %v288_v21 = vpack.c.bf16 %v286_v19, %v286_v19 }
 0x1bd   :  { %v273_v22 = vsel %vm272_vm8, %v418_v8, %v269_v20 }
 0x1be   :  { %291 = vst.msk [vmem:[%s591_s7] sm:$0xf] %vm290_vm6, %v288_v21  ;;  %v275_v23 = vmul.f32 %v273_v22, %v241_v58 }
 0x1c0   :  { %v281_v24 = vmul.f32 %v411_v11, %v275_v23 }
 0x1c2   :  { %v287_v25 = vadd.f32 %v412_v14, %v281_v24 }
 0x1c4   :  { %v289_v26 = vpack.c.bf16 %v287_v25, %v287_v25 }
 0x1c6   :  { %292 = vst.msk [vmem:[%s591_s7 + $0x4] sm:$0xf] %vm290_vm6, %v289_v26 }
 0x1c7   :  { %443 = dma.done.wait [#allocation4], 256  }
 0x1c8   :  { %444 = vsyncadd [#allocation4], 4294967040 }
 0x1c9   :  { %314 = vsyncpa [#allocation4], 1 }

// kernel: gpt2_forward.23
= control target key start
LH: loop header
LB: loop body
LE: loop exit
PB: predicated region body
PF: predicated region fallthrough
CT: control target
= control target key end

     0   :  { %vm29_vm0 = vcmask 523264   ;;  %v401_v22 = vmov 0.0   ;;  %v402_v44 = vmov 64.0   ;;  %vm289_vm6 = vcmask 519168   ;;  %s540_s1 = inlined_call_operand.vmem [shape: bf16[256,64], index: 1, kind: input, shape index: {}]   ;;  %s541_s0 = inlined_call_operand.vmem [shape: bf16[16,256], index: 0, kind: input, shape index: {}]   ;;  %s542_s2 = inlined_call_operand.vmem [shape: f32[1,64], index: 2, kind: input, shape index: {}]   ;;  %s543_s3 = inlined_call_operand.vmem [shape: f32[16,64], index: 3, kind: input, shape index: {}]   ;;  %s544_s6 = inlined_call_operand.vmem [shape: f32[16,64], index: 6, kind: output, shape index: {0}]   ;;  %s545_s4 = inlined_call_operand.vmem [shape: f32[1,64], index: 4, kind: input, shape index: {}]   ;;  %s546_s5 = inlined_call_operand.vmem [shape: f32[1,64], index: 5, kind: input, shape index: {}]   ;;  %s547_s7 = inlined_call_operand.vmem [shape: bf16[16,64], index: 7, kind: output, shape index: {1}]  }
   0x1   :  { %v381_v0 = vld [vmem:[%s540_s1 + $0x38] sm:$0xff]  ;;  %v380_v2 = vld [vmem:[%s540_s1 + $0x30] sm:$0xff]  ;;  %v379_v4 = vld [vmem:[%s540_s1 + $0x28] sm:$0xff]  ;;  %30 = vst.msk [vmem:[#allocation2] sm:$0xff] %vm29_vm0, %v401_v22  ;;  %395 = vrcp.f32 %v402_v44 }
   0x2   :  { %v389_v1 = vld [vmem:[%s540_s1 + $0x78] sm:$0xff]  ;;  %174 = vmatpush.bf16.msra.mxu0 %v381_v0  ;;  %v388_v3 = vld [vmem:[%s540_s1 + $0x70] sm:$0xff]  ;;  %v387_v5 = vld [vmem:[%s540_s1 + $0x68] sm:$0xff]  ;;  %31 = vst.msk [vmem:[#allocation2 + $0x8] sm:$0xff] %vm29_vm0, %v401_v22 }
   0x3   :  { %188 = vmatpush.bf16.msra.mxu1 %v389_v1  ;;  %v378_v6 = vld [vmem:[%s540_s1 + $0x20] sm:$0xff]  ;;  %v377_v8 = vld [vmem:[%s540_s1 + $0x18] sm:$0xff]  ;;  %v376_v10 = vld [vmem:[%s540_s1 + $0x10] sm:$0xff] }
   0x4   :  { %v386_v7 = vld [vmem:[%s540_s1 + $0x60] sm:$0xff]  ;;  %v385_v9 = vld [vmem:[%s540_s1 + $0x58] sm:$0xff]  ;;  %v384_v11 = vld [vmem:[%s540_s1 + $0x50] sm:$0xff] }
   0x5   :  { %v375_v12 = vld [vmem:[%s540_s1 + $0x8] sm:$0xff]  ;;  %v374_v14 = vld [vmem:[%s540_s1] sm:$0xff] }
   0x6   :  { %175 = vmatpush.bf16.msra.mxu0 %v380_v2  ;;  %v383_v13 = vld [vmem:[%s540_s1 + $0x48] sm:$0xff]  ;;  %v382_v15 = vld [vmem:[%s540_s1 + $0x40] sm:$0xff] }
   0x7   :  { %189 = vmatpush.bf16.msra.mxu1 %v388_v3  ;;  %v302_v16 = vld [vmem:[%s541_s0] sm:$0xf]  ;;  %v373_v17 = vld [vmem:[%s541_s0 + $0x4] sm:$0xf0]  ;;  %v372_v18 = vld [vmem:[%s541_s0 + $0x4] sm:$0xf]  ;;  %v396_v45 = vpop.eup %395 }
   0x8   :  { %v304_v19 = vld [vmem:[%s541_s0 + $0x8] sm:$0xf0]  ;;  %v303_v20 = vor.u32 %v373_v17, %v302_v16  ;;  %v32_v24 = vld [vmem:[#allocation2] sm:$0xff]  ;;  %v231_v46 = vmul.f32 64.0, %v396_v45  ;;  %vm235_vm1 = vweird.f32 %v396_v45 }
   0x9   :  { %v307_v21 = vor.u32 %v372_v18, %v304_v19  ;;  %v33_v29 = vld [vmem:[#allocation2 + $0x8] sm:$0xff]  ;;  %v392_v32 = vld [vmem:[%s542_s2] ss:$0 sm:$0xff] }
   0xa   :  { %176 = vmatpush.bf16.msra.mxu0 %v379_v4  ;;  %v218_v35 = vld [vmem:[%s543_s3] sm:$0xff]  ;;  %v219_v40 = vld [vmem:[%s543_s3 + $0x8] sm:$0xff]  ;;  %v232_v47 = vsub.f32 1.0, %v231_v46 }
   0xb   :  { %190 = vmatpush.bf16.msra.mxu1 %v387_v5 }
   0xc   :  { %v233_v48 = vmul.f32 %v396_v45, %v232_v47 }
   0xe   :  { %177 = vmatpush.bf16.msra.mxu0 %v378_v6  ;;  %v234_v49 = vadd.f32 %v396_v45, %v233_v48 }
   0xf   :  { %191 = vmatpush.bf16.msra.mxu1 %v386_v7 }
  0x10   :  { %v236_v50 = vsel %vm235_vm1, %v396_v45, %v234_v49 }
  0x12   :  { %178 = vmatpush.bf16.msra.mxu0 %v377_v8 }
  0x13   :  { %192 = vmatpush.bf16.msra.mxu1 %v385_v9 }
  0x16   :  { %179 = vmatpush.bf16.msra.mxu0 %v376_v10 }
  0x17   :  { %193 = vmatpush.bf16.msra.mxu1 %v384_v11  ;;  %v393_v11 = vld [vmem:[%s545_s4] ss:$0 sm:$0xff] }
  0x1a   :  { %180 = vmatpush.bf16.msra.mxu0 %v375_v12 }
  0x1b   :  { %194 = vmatpush.bf16.msra.mxu1 %v383_v13 }
  0x1e   :  { %181 = vmatpush.bf16.msra.mxu0 %v374_v14  ;;  %v394_v14 = vld [vmem:[%s546_s5] ss:$0 sm:$0xff] }
  0x1f   :  { %195 = vmatpush.bf16.msra.mxu1 %v382_v15 }
  0x21   :  { %182 = vmatmul.bf16.vlgmr.msra.gmra.mxu0 %v303_v20 }
  0x22   :  { %196 = vmatmul.bf16.vlgmr.msra.gmra.mxu1 %v307_v21 }
  0x9e   :  { %v183_v23 = vpop.f32.mrf.mxu0 }
  0x9f   :  { %v197_v25 = vpop.f32.mrf.mxu1 }
  0xa0   :  { %v198_v26 = vadd.f32 %v197_v25, %v183_v23 }
  0xa2   :  { %v202_v27 = vadd.f32 %v198_v26, %v32_v24 }
  0xa4   :  { %205 = vst.msk [vmem:[#allocation2] sm:$0xff] %vm29_vm0, %v202_v27 }
  0xa6   :  { %v185_v28 = vpop.f32.mrf.mxu0 }
  0xa7   :  { %v199_v30 = vpop.f32.mrf.mxu1 }
  0xa8   :  { %v200_v31 = vadd.f32 %v199_v30, %v185_v28 }
  0xaa   :  { %v203_v33 = vadd.f32 %v200_v31, %v33_v29 }
  0xab   :  { %v210_v34 = vld [vmem:[#allocation2] sm:$0xff] }
  0xac   :  { %206 = vst.msk [vmem:[#allocation2 + $0x8] sm:$0xff] %vm29_vm0, %v203_v33  ;;  %v216_v36 = vadd.f32 %v392_v32, %v210_v34 }
  0xae   :  { %v220_v37 = vadd.f32 %v218_v35, %v216_v36 }
  0xb0   :  { %v224_v38 = vsel %vm29_vm0, %v220_v37, 0.0  ;;  %222 = vst.msk [vmem:[%s544_s6] sm:$0xff] %vm29_vm0, %v220_v37 }
  0xb1   :  { %225 = vadd.xlane.f32.xlu0 %v224_v38 }
  0xb3   :  { %v211_v39 = vld [vmem:[#allocation2 + $0x8] sm:$0xff] }
  0xb4   :  { %v217_v41 = vadd.f32 %v392_v32, %v211_v39 }
  0xb6   :  { %v221_v42 = vadd.f32 %v219_v40, %v217_v41 }
  0xb8   :  { %223 = vst.msk [vmem:[%s544_s6 + $0x8] sm:$0xff] %vm29_vm0, %v221_v42  ;;  %v227_v43 = vsel %vm29_vm0, %v221_v42, 0.0 }
  0xb9   :  { %228 = vadd.xlane.f32.xlu0 %v227_v43 }
 0x124   :  { %v226_v51 = vpop.xlane.xlu0 %225 }
 0x125   :  { %v237_v52 = vmul.f32 %v236_v50, %v226_v51 }
 0x127   :  { %v239_v53 = vsub.f32 %v220_v37, %v237_v52 }
 0x129   :  { %v241_v54 = vmul.f32 %v239_v53, %v239_v53 }
 0x12b   :  { %v243_v55 = vsel %vm29_vm0, %v241_v54, 0.0 }
 0x12c   :  { %244 = vadd.xlane.f32.xlu1 %v243_v55  ;;  %v229_v56 = vpop.xlane.xlu0 %228 }
 0x12d   :  { %v238_v57 = vmul.f32 %v236_v50, %v229_v56 }
 0x12f   :  { %v240_v58 = vsub.f32 %v221_v42, %v238_v57 }
 0x131   :  { %v242_v59 = vmul.f32 %v240_v58, %v240_v58 }
 0x133   :  { %v246_v60 = vsel %vm29_vm0, %v242_v59, 0.0 }
 0x134   :  { %247 = vadd.xlane.f32.xlu1 %v246_v60 }
 0x19f   :  { %v245_v61 = vpop.xlane.xlu1 %244 }
 0x1a0   :  { %v249_v62 = vmul.f32 %v245_v61, %v236_v50 }
 0x1a2   :  { %v251_v63 = vadd.f32 1e-05, %v249_v62 }
 0x1a4   :  { %397 = vrsqrt.f32 %v251_v63  ;;  %vm259_vm3 = vweird.f32 %v251_v63 }
 0x1a7   :  { %v248_v0 = vpop.xlane.xlu1 %247 }
 0x1a8   :  { %v250_v1 = vmul.f32 %v248_v0, %v236_v50 }
 0x1aa   :  { %v398_v2 = vpop.eup %397  ;;  %v252_v3 = vadd.f32 1e-05, %v250_v1 }
 0x1ab   :  { %v254_v4 = vmul.f32 %v398_v2, %v251_v63  ;;  %vm260_vm2 = vweird.f32 %v398_v2 }
 0x1ac   :  { %399 = vrsqrt.f32 %v252_v3  ;;  %vm261_vm4 = vmor %vm259_vm3, %vm260_vm2  ;;  %vm269_vm7 = vweird.f32 %v252_v3 }
 0x1ad   :  { %v255_v5 = vmul.f32 %v398_v2, %v254_v4 }
 0x1af   :  { %v256_v6 = vmul.f32 0.5, %v255_v5 }
 0x1b1   :  { %v257_v7 = vsub.f32 1.5, %v256_v6 }
 0x1b2   :  { %v400_v8 = vpop.eup %399 }
 0x1b3   :  { %v258_v9 = vmul.f32 %v398_v2, %v257_v7  ;;  %v264_v10 = vmul.f32 %v400_v8, %v252_v3  ;;  %vm270_vm5 = vweird.f32 %v400_v8 }
 0x1b4   :  { %vm271_vm8 = vmor %vm269_vm7, %vm270_vm5 }
 0x1b5   :  { %v262_v12 = vsel %vm261_vm4, %v398_v2, %v258_v9  ;;  %v265_v13 = vmul.f32 %v400_v8, %v264_v10 }
 0x1b6   :  { %v273_v15 = vmul.f32 %v262_v12, %v239_v53 }
 0x1b7   :  { %v266_v16 = vmul.f32 0.5, %v265_v13 }
 0x1b8   :  { %v279_v17 = vmul.f32 %v393_v11, %v273_v15 }
 0x1b9   :  { %v267_v18 = vsub.f32 1.5, %v266_v16 }
 0x1ba   :  { %v285_v19 = vadd.f32 %v394_v14, %v279_v17 }
 0x1bb   :  { %v268_v20 = vmul.f32 %v400_v8, %v267_v18 }
 0x1bc   :  { %v287_v21 = vpack.c.bf16 %v285_v19, %v285_v19 }
 0x1bd   :  { %v272_v22 = vsel %vm271_vm8, %v400_v8, %v268_v20 }
 0x1be   :  { %290 = vst.msk [vmem:[%s547_s7] sm:$0xf] %vm289_vm6, %v287_v21  ;;  %v274_v23 = vmul.f32 %v272_v22, %v240_v58 }
 0x1c0   :  { %v280_v24 = vmul.f32 %v393_v11, %v274_v23 }
 0x1c2   :  { %v286_v25 = vadd.f32 %v394_v14, %v280_v24 }
 0x1c4   :  { %v288_v26 = vpack.c.bf16 %v286_v25, %v286_v25 }
 0x1c6   :  { %291 = vst.msk [vmem:[%s547_s7 + $0x4] sm:$0xf] %vm289_vm6, %v288_v26 }

// kernel: gpt2_forward.31
= control target key start
LH: loop header
LB: loop body
LE: loop exit
PB: predicated region body
PF: predicated region fallthrough
CT: control target
= control target key end

     0   :  { %s198_s0 = inlined_call_operand.vmem [shape: bf16[16,64], index: 0, kind: input, shape index: {}]   ;;  %s199_s1 = inlined_call_operand.vmem [shape: bf16[64,128], index: 1, kind: input, shape index: {}]   ;;  %s200_s2 = inlined_call_operand.hbm [shape: f32[16,128], index: 2, kind: output, shape index: {}]  }
   0x1   :  { %v132_v0 = vld [vmem:[%s199_s1 + $0x18] sm:$0xff] }
   0x2   :  { %7 = vsyncpa [#allocation4], 0  ;;  %68 = vmatpush.bf16.msra.mxu0 %v132_v0  ;;  %v131_v1 = vld [vmem:[%s199_s1 + $0x10] sm:$0xff]  ;;  %v130_v2 = vld [vmem:[%s199_s1 + $0x8] sm:$0xff]  ;;  %vm60_vm0 = vcmask 523264   ;;  %s162_s19 = smov [#allocation3]  }
   0x3   :  { %v129_v3 = vld [vmem:[%s199_s1] sm:$0xff]  ;;  %s93_s20 = sshll.u32 %s162_s19, 4  ;;  %s95_s23 = sshll.u32 %s200_s2, 4  ;;  %s94_s20 = int_to_ptr.vmem [resolvable:$true] %s93_s20  ;;  %s96_s23 = int_to_ptr.hbm [resolvable:$true] %s95_s23 }
   0x4   :  { %v128_v4 = vld [vmem:[%s198_s0] sm:$0xff]  ;;  %s163_s1 = smov 128   ;;  %s164_s24 = smov 8  }
   0x6   :  { %69 = vmatpush.bf16.msra.mxu0 %v131_v1 }
   0xa   :  { %70 = vmatpush.bf16.msra.mxu0 %v130_v2 }
   0xe   :  { %71 = vmatpush.bf16.msra.mxu0 %v129_v3 }
  0x11   :  { %127 = vmatmul.msk.bf16.vlgmr.msra.gmra.mxu0 %vm60_vm0, %v128_v4 }
  0x8e   :  { %v73_v5 = vpop.f32.mrf.mxu0 }
  0x8f   :  { %87 = vst [vmem:[#allocation3] sm:$0xff] %v73_v5 }
  0x96   :  { %v75_v6 = vpop.f32.mrf.mxu0 }
  0x97   :  { %88 = vst [vmem:[#allocation3 + $0x8] sm:$0xff] %v75_v6 }
  0x98   :  { %101 = dma.vmem_to_hbm [thread:$0]  %s94_s20, 256, %s96_s23, [#allocation4], %s163_s1, %s163_s1, %s164_s24  }
  0x99   :  { %160 = dma.done.wait [#allocation4], 256  }
  0x9a   :  { %161 = vsyncadd [#allocation4], 4294967040 }
  0x9b   :  { %106 = vsyncpa [#allocation4], 1 }

</bundles_post_ra>
